<compile_context>
chip_gen: v7x
topology: tpu7x:2x2x1
jax: 0.10.0
libtpu: 0.0.40
codegen_flags: <defaults>
</compile_context>

<pallas_src>
import functools

import jax
import jax.numpy as jnp
from jax import lax
from jax.experimental import pallas as pl
from jax.experimental.pallas import tpu as pltpu

ALPHA = 0.01  # load-balancing loss coefficient (matches the PyTorch module)


def _round_up(x, m):
  return (x + m - 1) // m * m


def _moe_kernel(x_ref, gate_ref, w2d_ref, wt_ref, b_ref,
                out_ref, psum_ref, fsum_ref, *,
                k, n_experts, h_pad, tile_b, total_b):
  """One batch tile of the MoE forward pass.

  x_ref    : (tb, Fp)        features tile (kept in input dtype for the MXU)
  gate_ref : (E, Fp)         gating weights
  w2d_ref  : (Fp, E*Hp)      expert down-proj weights, fused on the lane axis
  wt_ref   : (E, Hp, Fp)     expert up-proj weights, pre-transposed
  b_ref    : (E, Fp)         final bias
  out_ref  : (tb, Fp)        final output tile
  psum_ref : (1, 1, E)       per-tile sum over valid rows of gate_probs
  fsum_ref : (1, 1, E)       per-tile sum over valid rows of the top-k mask
  """
  step = pl.program_id(0)
  E = n_experts

  x = x_ref[...]                       # input dtype (bf16 stays bf16)
  gate = gate_ref[...]
  tb = x.shape[0]

  # ---- gating: scores -> softmax over experts (f32) -------------------------
  scores = lax.dot_general(x, gate, (((1,), (1,)), ((), ())),
                           preferred_element_type=jnp.float32)      # (tb, E)
  m = jnp.max(scores, axis=-1, keepdims=True)
  ex = jnp.exp(scores - m)
  probs = ex * pl.reciprocal(jnp.sum(ex, axis=-1, keepdims=True), approx=True)

  # ---- top-k active-expert mask (torch.topk + scatter(1.0)) -----------------
  # k rounds of "take first occurrence of the max, then remove it".  Only the
  # 0/1 mask is needed downstream (indices themselves are unused by forward).
  # Tie-break = lowest expert index.
  eidx = lax.broadcasted_iota(jnp.int32, probs.shape, 1)
  mask = jnp.zeros_like(probs)
  work = probs
  for _ in range(k):
    cur_max = jnp.max(work, axis=-1, keepdims=True)
    is_max = work >= cur_max
    sel_idx = jnp.min(jnp.where(is_max, eidx, E), axis=-1, keepdims=True)
    sel = eidx == sel_idx
    mask = jnp.where(sel, 1.0, mask)
    work = jnp.where(sel, -1.0, work)      # probs >= 0, so -1 == "removed"

  active_sum = jnp.sum(probs * mask, axis=-1, keepdims=True)
  weights = mask * probs * pl.reciprocal(active_sum, approx=True)   # (tb, E)

  # ---- per-tile load-balancing statistics (batch padding masked out) --------
  row = step * tile_b + lax.broadcasted_iota(jnp.int32, (tb, 1), 0)
  valid = (row < total_b).astype(jnp.float32)                       # (tb, 1)
  psum_ref[...] = jnp.sum(probs * valid, axis=0,
                          keepdims=True).reshape(psum_ref.shape)
  fsum_ref[...] = jnp.sum(mask * valid, axis=0,
                          keepdims=True).reshape(fsum_ref.shape)

  # ---- expert compute --------------------------------------------------------
  # One fused, lane-dense down-projection for all experts at once, then E small
  # up-projections with pre-transposed weights (E is small & static -> unrolled).
  hidden_all = jnp.dot(x, w2d_ref[...],
                       preferred_element_type=jnp.float32)          # (tb, E*Hp)
  b = b_ref[...]
  acc = jnp.zeros(out_ref.shape, jnp.float32)
  for e in range(E):
    h = hidden_all[:, e * h_pad:(e + 1) * h_pad]                    # (tb, Hp)
    wt = wt_ref[e]                                                  # (Hp, Fp)
    eo = jnp.dot(h.astype(wt.dtype), wt,
                 preferred_element_type=jnp.float32)                # (tb, Fp)
    eo = jnp.maximum(eo + b[e:e + 1, :].astype(jnp.float32), 0.0)
    acc = acc + weights[:, e:e + 1] * eo
  out_ref[...] = acc.astype(out_ref.dtype)


def moe_forward(features, w_experts, b_final, gate, *, n_active_experts,
                tile_b=None, load_balancing_loss=True):
  """Pallas MoE forward.  features: (B, F).  Returns (final_output, loss)."""
  B, F = features.shape
  E, F2, H = w_experts.shape
  assert F == F2

  # --- layout prep (wrapper-side, one-time) ----------------------------------
  F_pad = _round_up(F, 128)          # lane-dense output / weight last dims
  H_pad = _round_up(H, 8)            # sublane-aligned contraction dim
  if tile_b is None:
    tile_b = max(8, min(512, _round_up(B, 8)))
  B_pad = _round_up(B, tile_b)
  n_tiles = B_pad // tile_b

  x_p = jnp.pad(features, ((0, B_pad - B), (0, F_pad - F)))
  gate_p = jnp.pad(gate, ((0, 0), (0, F_pad - F)))
  b_p = jnp.pad(b_final, ((0, 0), (0, F_pad - F)))
  w_p = jnp.pad(w_experts, ((0, 0), (0, F_pad - F), (0, H_pad - H)))
  w2d = jnp.transpose(w_p, (1, 0, 2)).reshape(F_pad, E * H_pad)  # (Fp, E*Hp)
  w_t = jnp.transpose(w_p, (0, 2, 1))                            # (E, Hp, Fp)

  # --- VMEM budget: estimate footprint, clamp to physical capacity -----------
  in_sz = jnp.dtype(features.dtype).itemsize
  w_sz = jnp.dtype(w_experts.dtype).itemsize
  weight_bytes = (2 * E * H_pad * F_pad + 2 * E * F_pad) * w_sz
  io_bytes = 2 * tile_b * F_pad * (in_sz + in_sz) + 4 * 2 * E * 4
  tmp_bytes = 4 * tile_b * (E * H_pad + 2 * F_pad)
  est = weight_bytes + io_bytes + tmp_bytes
  try:
    vmem_cap = pltpu.get_tpu_info().vmem_capacity_bytes   # 64 MiB on v7x
  except Exception:
    vmem_cap = 64 * 1024 * 1024
  vmem_limit = int(min(max(2 * est, 32 * 1024 * 1024), int(0.9 * vmem_cap)))

  kernel = functools.partial(
      _moe_kernel, k=n_active_experts, n_experts=E, h_pad=H_pad,
      tile_b=tile_b, total_b=B)

  out, psum, fsum = pl.pallas_call(
      kernel,
      out_shape=(
          jax.ShapeDtypeStruct((B_pad, F_pad), features.dtype),
          jax.ShapeDtypeStruct((n_tiles, 1, E), jnp.float32),
          jax.ShapeDtypeStruct((n_tiles, 1, E), jnp.float32),
      ),
      grid_spec=pltpu.PrefetchScalarGridSpec(
          num_scalar_prefetch=0,
          grid=(n_tiles,),
          in_specs=[
              pl.BlockSpec((tile_b, F_pad), lambda i: (i, 0)),       # features
              pl.BlockSpec((E, F_pad), lambda i: (0, 0)),            # gate
              pl.BlockSpec((F_pad, E * H_pad), lambda i: (0, 0)),    # W (down)
              pl.BlockSpec((E, H_pad, F_pad), lambda i: (0, 0, 0)),  # W (up, T)
              pl.BlockSpec((E, F_pad), lambda i: (0, 0)),            # b_final
          ],
          out_specs=[
              pl.BlockSpec((tile_b, F_pad), lambda i: (i, 0)),       # output
              pl.BlockSpec((1, 1, E), lambda i: (i, 0, 0)),          # probs sum
              pl.BlockSpec((1, 1, E), lambda i: (i, 0, 0)),          # mask sum
          ]),
      compiler_params=pltpu.CompilerParams(
          dimension_semantics=("parallel",),   # no carried state -> megacore OK
          vmem_limit_bytes=vmem_limit),
  )(x_p, gate_p, w2d, w_t, b_p)

  final_out = out[:B, :F]
  if not load_balancing_loss:
    return final_out, None
  # Tiny (n_tiles, E) reduction + loss formula in plain JAX (keeps grid parallel).
  P_i = jnp.sum(psum, axis=(0, 1)) / B      # mean over batch of gate_probs
  f_i = jnp.sum(fsum, axis=(0, 1)) / B      # mean over batch of active mask
  loss = ALPHA * E * jnp.sum(f_i * P_i)
  return final_out, loss


# ---------------- pure-JAX reference (mirrors the PyTorch module) ------------
def moe_reference(features, w_experts, b_final, gate, *, n_active_experts):
  B, F = features.shape
  E = gate.shape[0]
  scores = jnp.einsum('bf,ef->be', features, gate)
  probs = jax.nn.softmax(scores, axis=-1)
  _, idx = lax.top_k(probs, n_active_experts)
  mask = jnp.zeros_like(probs).at[jnp.arange(B)[:, None], idx].set(1.0)
  P_i = jnp.mean(probs, axis=0)
  f_i = jnp.mean(mask, axis=0)
  loss = ALPHA * E * jnp.sum(f_i * P_i)
  active_sum = jnp.sum(probs * mask, axis=-1, keepdims=True)
  weights = jnp.where(mask > 0, probs / active_sum, 0.0)
  hidden = jnp.einsum('bf,efh->beh', features, w_experts)
  eo = jnp.einsum('beh,efh->bef', hidden, w_experts) + b_final
  eo = jnp.maximum(eo, 0.0)
  out = jnp.einsum('be,bef->bf', weights, eo)
  return out, loss


if __name__ == "__main__":
  # Small config consistent with the module's __init__ shapes.
  n_experts, n_features, n_hidden, n_active = 8, 32, 16, 2
  batch = 256          # small, but enough rows for a 128-row tile x 2 grid steps

  key = jax.random.PRNGKey(0)
  k_w, k_g, k_x = jax.random.split(key, 3)

  # xavier_normal_ on (E, F, H): fan_in = F*H, fan_out = E*H.
  xavier_std = (2.0 / (n_features * n_hidden + n_experts * n_hidden)) ** 0.5
  w_experts = xavier_std * jax.random.normal(
      k_w, (n_experts, n_features, n_hidden), jnp.float32)
  b_final = jnp.zeros((n_experts, n_features), jnp.float32)
  # NOTE: the module inits gate to zeros (degenerate routing, all probs equal);
  # use a small deterministic random gate so the top-k path is exercised.
  gate = 0.1 * jax.random.normal(k_g, (n_experts, n_features), jnp.float32)

  # generate_batch with feature_probability = 1  ->  uniform [0, 1) features.
  features = jax.random.uniform(k_x, (batch, n_features), jnp.float32)

  fwd = jax.jit(functools.partial(moe_forward, n_active_experts=n_active,
                                  tile_b=128))
  out, loss = fwd(features, w_experts, b_final, gate)
  out = jax.block_until_ready(out)
  loss = jax.block_until_ready(loss)

  ref_out, ref_loss = moe_reference(features, w_experts, b_final, gate,
                                    n_active_experts=n_active)

  # Tolerances slightly relaxed vs exact divides because both softmax and
  # top-k renormalization use the EUP approx reciprocal.
  assert jnp.allclose(out, ref_out, atol=2e-3, rtol=2e-3), "output mismatch"
  assert jnp.allclose(loss, ref_loss, atol=5e-4, rtol=1e-3), "loss mismatch"
  print("KERNEL_OK")
</pallas_src>

<mosaic_0001>
module attributes {stable_mosaic.version = 11 : i64} {
  func.func @_moe_kernel(%arg0: i32, %arg1: memref<128x128xf32, #tpu.memory_space<vmem>>, %arg2: memref<8x128xf32, #tpu.memory_space<vmem>>, %arg3: memref<128x128xf32, #tpu.memory_space<vmem>>, %arg4: memref<8x16x128xf32, #tpu.memory_space<vmem>>, %arg5: memref<8x128xf32, #tpu.memory_space<vmem>>, %arg6: memref<128x128xf32, #tpu.memory_space<vmem>>, %arg7: memref<1x1x8xf32, #tpu.memory_space<vmem>>, %arg8: memref<1x1x8xf32, #tpu.memory_space<vmem>>) attributes {dimension_semantics = [#tpu.dimension_semantics<parallel>], iteration_bounds = array<i64: 2>, scalar_prefetch = 0 : i64, scratch_operands = 0 : i64, tpu.core_type = #tpu.core_type<tc>, window_params = [{transform_indices = @transform_0, window_bounds = array<i64: 128, 128>}, {pipeline_mode = #tpu.pipeline_mode<synchronous>, transform_indices = @transform_1, window_bounds = array<i64: 8, 128>}, {pipeline_mode = #tpu.pipeline_mode<synchronous>, transform_indices = @transform_2, window_bounds = array<i64: 128, 128>}, {pipeline_mode = #tpu.pipeline_mode<synchronous>, transform_indices = @transform_3, window_bounds = array<i64: 8, 16, 128>}, {pipeline_mode = #tpu.pipeline_mode<synchronous>, transform_indices = @transform_4, window_bounds = array<i64: 8, 128>}, {transform_indices = @transform_5, window_bounds = array<i64: 128, 128>}, {transform_indices = @transform_6, window_bounds = array<i64: 1, 1, 8>}, {transform_indices = @transform_7, window_bounds = array<i64: 1, 1, 8>}]} {
    %c0 = arith.constant 0 : index
    %c0_0 = arith.constant 0 : index
    %0 = vector.load %arg1[%c0, %c0_0] : memref<128x128xf32, #tpu.memory_space<vmem>>, vector<128x128xf32>
    %c0_1 = arith.constant 0 : index
    %c0_2 = arith.constant 0 : index
    %1 = vector.load %arg2[%c0_1, %c0_2] : memref<8x128xf32, #tpu.memory_space<vmem>>, vector<8x128xf32>
    %cst = arith.constant dense<0.000000e+00> : vector<128x8xf32>
    %2 = tpu.matmul %0, %1, %cst {dimension_numbers = #tpu.dot_dimension_numbers<[1], [1], [0], [0], [0, 0, 1, 0], [], []>} : vector<128x128xf32>, vector<8x128xf32>, vector<128x8xf32> -> vector<128x8xf32>
    %cst_3 = arith.constant dense<0xFF800000> : vector<128xf32>
    %3 = vector.multi_reduction <maximumf>, %2, %cst_3 [1] : vector<128x8xf32> to vector<128xf32>
    %4 = vector.shape_cast %3 : vector<128xf32> to vector<128x1xf32>
    %5 = vector.broadcast %4 : vector<128x1xf32> to vector<128x8xf32>
    %6 = arith.subf %2, %5 : vector<128x8xf32>
    %7 = math.exp %6 : vector<128x8xf32>
    %cst_4 = arith.constant dense<0.000000e+00> : vector<128xf32>
    %8 = vector.multi_reduction <add>, %7, %cst_4 [1] : vector<128x8xf32> to vector<128xf32>
    %9 = vector.shape_cast %8 : vector<128xf32> to vector<128x1xf32>
    %10 = tpu.reciprocal %9 {approx = true} : vector<128x1xf32> -> vector<128x1xf32>
    %11 = vector.broadcast %10 : vector<128x1xf32> to vector<128x8xf32>
    %12 = arith.mulf %7, %11 : vector<128x8xf32>
    %13 = tpu.iota {dimensions = array<i32: 1>} : vector<128x8xi32>
    %cst_5 = arith.constant 0.000000e+00 : f32
    %14 = vector.broadcast %cst_5 : f32 to vector<128x8xf32>
    %cst_6 = arith.constant dense<0xFF800000> : vector<128xf32>
    %15 = vector.multi_reduction <maximumf>, %12, %cst_6 [1] : vector<128x8xf32> to vector<128xf32>
    %16 = vector.shape_cast %15 : vector<128xf32> to vector<128x1xf32>
    %17 = vector.broadcast %16 : vector<128x1xf32> to vector<128x8xf32>
    %18 = arith.cmpf oge, %12, %17 : vector<128x8xf32>
    %c8_i32 = arith.constant 8 : i32
    %19 = vector.broadcast %c8_i32 : i32 to vector<128x8xi32>
    %20 = arith.select %18, %13, %19 : vector<128x8xi1>, vector<128x8xi32>
    %cst_7 = arith.constant dense<2147483647> : vector<128xi32>
    %21 = vector.multi_reduction <minsi>, %20, %cst_7 [1] : vector<128x8xi32> to vector<128xi32>
    %22 = vector.shape_cast %21 : vector<128xi32> to vector<128x1xi32>
    %23 = vector.broadcast %22 : vector<128x1xi32> to vector<128x8xi32>
    %24 = arith.cmpi eq, %13, %23 : vector<128x8xi32>
    %cst_8 = arith.constant 1.000000e+00 : f32
    %25 = vector.broadcast %cst_8 : f32 to vector<128x8xf32>
    %26 = arith.select %24, %25, %14 : vector<128x8xi1>, vector<128x8xf32>
    %cst_9 = arith.constant -1.000000e+00 : f32
    %27 = vector.broadcast %cst_9 : f32 to vector<128x8xf32>
    %28 = arith.select %24, %27, %12 : vector<128x8xi1>, vector<128x8xf32>
    %cst_10 = arith.constant dense<0xFF800000> : vector<128xf32>
    %29 = vector.multi_reduction <maximumf>, %28, %cst_10 [1] : vector<128x8xf32> to vector<128xf32>
    %30 = vector.shape_cast %29 : vector<128xf32> to vector<128x1xf32>
    %31 = vector.broadcast %30 : vector<128x1xf32> to vector<128x8xf32>
    %32 = arith.cmpf oge, %28, %31 : vector<128x8xf32>
    %c8_i32_11 = arith.constant 8 : i32
    %33 = vector.broadcast %c8_i32_11 : i32 to vector<128x8xi32>
    %34 = arith.select %32, %13, %33 : vector<128x8xi1>, vector<128x8xi32>
    %cst_12 = arith.constant dense<2147483647> : vector<128xi32>
    %35 = vector.multi_reduction <minsi>, %34, %cst_12 [1] : vector<128x8xi32> to vector<128xi32>
    %36 = vector.shape_cast %35 : vector<128xi32> to vector<128x1xi32>
    %37 = vector.broadcast %36 : vector<128x1xi32> to vector<128x8xi32>
    %38 = arith.cmpi eq, %13, %37 : vector<128x8xi32>
    %cst_13 = arith.constant 1.000000e+00 : f32
    %39 = vector.broadcast %cst_13 : f32 to vector<128x8xf32>
    %40 = arith.select %38, %39, %26 : vector<128x8xi1>, vector<128x8xf32>
    %41 = arith.mulf %12, %40 : vector<128x8xf32>
    %cst_14 = arith.constant dense<0.000000e+00> : vector<128xf32>
    %42 = vector.multi_reduction <add>, %41, %cst_14 [1] : vector<128x8xf32> to vector<128xf32>
    %43 = vector.shape_cast %42 : vector<128xf32> to vector<128x1xf32>
    %44 = arith.mulf %40, %12 : vector<128x8xf32>
    %45 = tpu.reciprocal %43 {approx = true} : vector<128x1xf32> -> vector<128x1xf32>
    %46 = vector.broadcast %45 : vector<128x1xf32> to vector<128x8xf32>
    %47 = arith.mulf %44, %46 : vector<128x8xf32>
    %c128_i32 = arith.constant 128 : i32
    %48 = arith.muli %arg0, %c128_i32 : i32
    %49 = tpu.iota {dimensions = array<i32: 0>} : vector<128x1xi32>
    %50 = vector.broadcast %48 : i32 to vector<128x1xi32>
    %51 = arith.addi %50, %49 : vector<128x1xi32>
    %c256_i32 = arith.constant 256 : i32
    %52 = vector.broadcast %c256_i32 : i32 to vector<128x1xi32>
    %53 = arith.cmpi slt, %51, %52 : vector<128x1xi32>
    %54 = arith.extui %53 : vector<128x1xi1> to vector<128x1xi32>
    %55 = arith.sitofp %54 : vector<128x1xi32> to vector<128x1xf32>
    %56 = vector.broadcast %55 : vector<128x1xf32> to vector<128x8xf32>
    %57 = arith.mulf %12, %56 : vector<128x8xf32>
    %cst_15 = arith.constant dense<0.000000e+00> : vector<8xf32>
    %58 = vector.multi_reduction <add>, %57, %cst_15 [0] : vector<128x8xf32> to vector<8xf32>
    %59 = vector.shape_cast %58 : vector<8xf32> to vector<1x8xf32>
    %60 = vector.shape_cast %59 : vector<1x8xf32> to vector<1x1x8xf32>
    %c0_16 = arith.constant 0 : index
    %c0_17 = arith.constant 0 : index
    %c0_18 = arith.constant 0 : index
    %61 = vector.load %arg7[%c0_16, %c0_17, %c0_18] : memref<1x1x8xf32, #tpu.memory_space<vmem>>, vector<1x1x8xf32>
    tpu.vector_store %arg7[%c0_16, %c0_17, %c0_18], %60 {strides = array<i32>} : memref<1x1x8xf32, #tpu.memory_space<vmem>>, vector<1x1x8xf32>,
    %62 = vector.broadcast %55 : vector<128x1xf32> to vector<128x8xf32>
    %63 = arith.mulf %40, %62 : vector<128x8xf32>
    %cst_19 = arith.constant dense<0.000000e+00> : vector<8xf32>
    %64 = vector.multi_reduction <add>, %63, %cst_19 [0] : vector<128x8xf32> to vector<8xf32>
    %65 = vector.shape_cast %64 : vector<8xf32> to vector<1x8xf32>
    %66 = vector.shape_cast %65 : vector<1x8xf32> to vector<1x1x8xf32>
    %c0_20 = arith.constant 0 : index
    %c0_21 = arith.constant 0 : index
    %c0_22 = arith.constant 0 : index
    %67 = vector.load %arg8[%c0_20, %c0_21, %c0_22] : memref<1x1x8xf32, #tpu.memory_space<vmem>>, vector<1x1x8xf32>
    tpu.vector_store %arg8[%c0_20, %c0_21, %c0_22], %66 {strides = array<i32>} : memref<1x1x8xf32, #tpu.memory_space<vmem>>, vector<1x1x8xf32>,
    %c0_23 = arith.constant 0 : index
    %c0_24 = arith.constant 0 : index
    %68 = vector.load %arg3[%c0_23, %c0_24] : memref<128x128xf32, #tpu.memory_space<vmem>>, vector<128x128xf32>
    %cst_25 = arith.constant dense<0.000000e+00> : vector<128x128xf32>
    %69 = tpu.matmul %0, %68, %cst_25 {dimension_numbers = #tpu.dot_dimension_numbers<[1], [0], [0], [1], [0, 0, 1, 1], [], []>} : vector<128x128xf32>, vector<128x128xf32>, vector<128x128xf32> -> vector<128x128xf32>
    %c0_26 = arith.constant 0 : index
    %c0_27 = arith.constant 0 : index
    %70 = vector.load %arg5[%c0_26, %c0_27] : memref<8x128xf32, #tpu.memory_space<vmem>>, vector<8x128xf32>
    %cst_28 = arith.constant 0.000000e+00 : f32
    %71 = vector.broadcast %cst_28 : f32 to vector<128x128xf32>
    %72 = vector.extract_strided_slice %69 {offsets = [0, 0], sizes = [128, 16], strides = [1, 1]} : vector<128x128xf32> to vector<128x16xf32>
    %c0_29 = arith.constant 0 : index
    %c0_30 = arith.constant 0 : index
    %c0_31 = arith.constant 0 : index
    %73 = vector.load %arg4[%c0_29, %c0_30, %c0_31] : memref<8x16x128xf32, #tpu.memory_space<vmem>>, vector<1x16x128xf32>
    %74 = vector.shape_cast %73 : vector<1x16x128xf32> to vector<16x128xf32>
    %cst_32 = arith.constant dense<0.000000e+00> : vector<128x128xf32>
    %75 = tpu.matmul %72, %74, %cst_32 {dimension_numbers = #tpu.dot_dimension_numbers<[1], [0], [0], [1], [0, 0, 1, 1], [], []>} : vector<128x16xf32>, vector<16x128xf32>, vector<128x128xf32> -> vector<128x128xf32>
    %76 = vector.extract_strided_slice %70 {offsets = [0, 0], sizes = [1, 128], strides = [1, 1]} : vector<8x128xf32> to vector<1x128xf32>
    %77 = vector.broadcast %76 : vector<1x128xf32> to vector<128x128xf32>
    %78 = arith.addf %75, %77 : vector<128x128xf32>
    %cst_33 = arith.constant 0.000000e+00 : f32
    %79 = vector.broadcast %cst_33 : f32 to vector<128x128xf32>
    %80 = arith.maximumf %78, %79 : vector<128x128xf32>
    %81 = vector.extract_strided_slice %47 {offsets = [0, 0], sizes = [128, 1], strides = [1, 1]} : vector<128x8xf32> to vector<128x1xf32>
    %82 = vector.broadcast %81 : vector<128x1xf32> to vector<128x128xf32>
    %83 = arith.mulf %82, %80 : vector<128x128xf32>
    %84 = arith.addf %71, %83 : vector<128x128xf32>
    %85 = vector.extract_strided_slice %69 {offsets = [0, 16], sizes = [128, 16], strides = [1, 1]} : vector<128x128xf32> to vector<128x16xf32>
    %c1 = arith.constant 1 : index
    %c0_34 = arith.constant 0 : index
    %c0_35 = arith.constant 0 : index
    %86 = vector.load %arg4[%c1, %c0_34, %c0_35] : memref<8x16x128xf32, #tpu.memory_space<vmem>>, vector<1x16x128xf32>
    %87 = vector.shape_cast %86 : vector<1x16x128xf32> to vector<16x128xf32>
    %cst_36 = arith.constant dense<0.000000e+00> : vector<128x128xf32>
    %88 = tpu.matmul %85, %87, %cst_36 {dimension_numbers = #tpu.dot_dimension_numbers<[1], [0], [0], [1], [0, 0, 1, 1], [], []>} : vector<128x16xf32>, vector<16x128xf32>, vector<128x128xf32> -> vector<128x128xf32>
    %89 = vector.extract_strided_slice %70 {offsets = [1, 0], sizes = [1, 128], strides = [1, 1]} : vector<8x128xf32> to vector<1x128xf32>
    %90 = vector.broadcast %89 : vector<1x128xf32> to vector<128x128xf32>
    %91 = arith.addf %88, %90 : vector<128x128xf32>
    %cst_37 = arith.constant 0.000000e+00 : f32
    %92 = vector.broadcast %cst_37 : f32 to vector<128x128xf32>
    %93 = arith.maximumf %91, %92 : vector<128x128xf32>
    %94 = vector.extract_strided_slice %47 {offsets = [0, 1], sizes = [128, 1], strides = [1, 1]} : vector<128x8xf32> to vector<128x1xf32>
    %95 = vector.broadcast %94 : vector<128x1xf32> to vector<128x128xf32>
    %96 = arith.mulf %95, %93 : vector<128x128xf32>
    %97 = arith.addf %84, %96 : vector<128x128xf32>
    %98 = vector.extract_strided_slice %69 {offsets = [0, 32], sizes = [128, 16], strides = [1, 1]} : vector<128x128xf32> to vector<128x16xf32>
    %c2 = arith.constant 2 : index
    %c0_38 = arith.constant 0 : index
    %c0_39 = arith.constant 0 : index
    %99 = vector.load %arg4[%c2, %c0_38, %c0_39] : memref<8x16x128xf32, #tpu.memory_space<vmem>>, vector<1x16x128xf32>
    %100 = vector.shape_cast %99 : vector<1x16x128xf32> to vector<16x128xf32>
    %cst_40 = arith.constant dense<0.000000e+00> : vector<128x128xf32>
    %101 = tpu.matmul %98, %100, %cst_40 {dimension_numbers = #tpu.dot_dimension_numbers<[1], [0], [0], [1], [0, 0, 1, 1], [], []>} : vector<128x16xf32>, vector<16x128xf32>, vector<128x128xf32> -> vector<128x128xf32>
    %102 = vector.extract_strided_slice %70 {offsets = [2, 0], sizes = [1, 128], strides = [1, 1]} : vector<8x128xf32> to vector<1x128xf32>
    %103 = vector.broadcast %102 : vector<1x128xf32> to vector<128x128xf32>
    %104 = arith.addf %101, %103 : vector<128x128xf32>
    %cst_41 = arith.constant 0.000000e+00 : f32
    %105 = vector.broadcast %cst_41 : f32 to vector<128x128xf32>
    %106 = arith.maximumf %104, %105 : vector<128x128xf32>
    %107 = vector.extract_strided_slice %47 {offsets = [0, 2], sizes = [128, 1], strides = [1, 1]} : vector<128x8xf32> to vector<128x1xf32>
    %108 = vector.broadcast %107 : vector<128x1xf32> to vector<128x128xf32>
    %109 = arith.mulf %108, %106 : vector<128x128xf32>
    %110 = arith.addf %97, %109 : vector<128x128xf32>
    %111 = vector.extract_strided_slice %69 {offsets = [0, 48], sizes = [128, 16], strides = [1, 1]} : vector<128x128xf32> to vector<128x16xf32>
    %c3 = arith.constant 3 : index
    %c0_42 = arith.constant 0 : index
    %c0_43 = arith.constant 0 : index
    %112 = vector.load %arg4[%c3, %c0_42, %c0_43] : memref<8x16x128xf32, #tpu.memory_space<vmem>>, vector<1x16x128xf32>
    %113 = vector.shape_cast %112 : vector<1x16x128xf32> to vector<16x128xf32>
    %cst_44 = arith.constant dense<0.000000e+00> : vector<128x128xf32>
    %114 = tpu.matmul %111, %113, %cst_44 {dimension_numbers = #tpu.dot_dimension_numbers<[1], [0], [0], [1], [0, 0, 1, 1], [], []>} : vector<128x16xf32>, vector<16x128xf32>, vector<128x128xf32> -> vector<128x128xf32>
    %115 = vector.extract_strided_slice %70 {offsets = [3, 0], sizes = [1, 128], strides = [1, 1]} : vector<8x128xf32> to vector<1x128xf32>
    %116 = vector.broadcast %115 : vector<1x128xf32> to vector<128x128xf32>
    %117 = arith.addf %114, %116 : vector<128x128xf32>
    %cst_45 = arith.constant 0.000000e+00 : f32
    %118 = vector.broadcast %cst_45 : f32 to vector<128x128xf32>
    %119 = arith.maximumf %117, %118 : vector<128x128xf32>
    %120 = vector.extract_strided_slice %47 {offsets = [0, 3], sizes = [128, 1], strides = [1, 1]} : vector<128x8xf32> to vector<128x1xf32>
    %121 = vector.broadcast %120 : vector<128x1xf32> to vector<128x128xf32>
    %122 = arith.mulf %121, %119 : vector<128x128xf32>
    %123 = arith.addf %110, %122 : vector<128x128xf32>
    %124 = vector.extract_strided_slice %69 {offsets = [0, 64], sizes = [128, 16], strides = [1, 1]} : vector<128x128xf32> to vector<128x16xf32>
    %c4 = arith.constant 4 : index
    %c0_46 = arith.constant 0 : index
    %c0_47 = arith.constant 0 : index
    %125 = vector.load %arg4[%c4, %c0_46, %c0_47] : memref<8x16x128xf32, #tpu.memory_space<vmem>>, vector<1x16x128xf32>
    %126 = vector.shape_cast %125 : vector<1x16x128xf32> to vector<16x128xf32>
    %cst_48 = arith.constant dense<0.000000e+00> : vector<128x128xf32>
    %127 = tpu.matmul %124, %126, %cst_48 {dimension_numbers = #tpu.dot_dimension_numbers<[1], [0], [0], [1], [0, 0, 1, 1], [], []>} : vector<128x16xf32>, vector<16x128xf32>, vector<128x128xf32> -> vector<128x128xf32>
    %128 = vector.extract_strided_slice %70 {offsets = [4, 0], sizes = [1, 128], strides = [1, 1]} : vector<8x128xf32> to vector<1x128xf32>
    %129 = vector.broadcast %128 : vector<1x128xf32> to vector<128x128xf32>
    %130 = arith.addf %127, %129 : vector<128x128xf32>
    %cst_49 = arith.constant 0.000000e+00 : f32
    %131 = vector.broadcast %cst_49 : f32 to vector<128x128xf32>
    %132 = arith.maximumf %130, %131 : vector<128x128xf32>
    %133 = vector.extract_strided_slice %47 {offsets = [0, 4], sizes = [128, 1], strides = [1, 1]} : vector<128x8xf32> to vector<128x1xf32>
    %134 = vector.broadcast %133 : vector<128x1xf32> to vector<128x128xf32>
    %135 = arith.mulf %134, %132 : vector<128x128xf32>
    %136 = arith.addf %123, %135 : vector<128x128xf32>
    %137 = vector.extract_strided_slice %69 {offsets = [0, 80], sizes = [128, 16], strides = [1, 1]} : vector<128x128xf32> to vector<128x16xf32>
    %c5 = arith.constant 5 : index
    %c0_50 = arith.constant 0 : index
    %c0_51 = arith.constant 0 : index
    %138 = vector.load %arg4[%c5, %c0_50, %c0_51] : memref<8x16x128xf32, #tpu.memory_space<vmem>>, vector<1x16x128xf32>
    %139 = vector.shape_cast %138 : vector<1x16x128xf32> to vector<16x128xf32>
    %cst_52 = arith.constant dense<0.000000e+00> : vector<128x128xf32>
    %140 = tpu.matmul %137, %139, %cst_52 {dimension_numbers = #tpu.dot_dimension_numbers<[1], [0], [0], [1], [0, 0, 1, 1], [], []>} : vector<128x16xf32>, vector<16x128xf32>, vector<128x128xf32> -> vector<128x128xf32>
    %141 = vector.extract_strided_slice %70 {offsets = [5, 0], sizes = [1, 128], strides = [1, 1]} : vector<8x128xf32> to vector<1x128xf32>
    %142 = vector.broadcast %141 : vector<1x128xf32> to vector<128x128xf32>
    %143 = arith.addf %140, %142 : vector<128x128xf32>
    %cst_53 = arith.constant 0.000000e+00 : f32
    %144 = vector.broadcast %cst_53 : f32 to vector<128x128xf32>
    %145 = arith.maximumf %143, %144 : vector<128x128xf32>
    %146 = vector.extract_strided_slice %47 {offsets = [0, 5], sizes = [128, 1], strides = [1, 1]} : vector<128x8xf32> to vector<128x1xf32>
    %147 = vector.broadcast %146 : vector<128x1xf32> to vector<128x128xf32>
    %148 = arith.mulf %147, %145 : vector<128x128xf32>
    %149 = arith.addf %136, %148 : vector<128x128xf32>
    %150 = vector.extract_strided_slice %69 {offsets = [0, 96], sizes = [128, 16], strides = [1, 1]} : vector<128x128xf32> to vector<128x16xf32>
    %c6 = arith.constant 6 : index
    %c0_54 = arith.constant 0 : index
    %c0_55 = arith.constant 0 : index
    %151 = vector.load %arg4[%c6, %c0_54, %c0_55] : memref<8x16x128xf32, #tpu.memory_space<vmem>>, vector<1x16x128xf32>
    %152 = vector.shape_cast %151 : vector<1x16x128xf32> to vector<16x128xf32>
    %cst_56 = arith.constant dense<0.000000e+00> : vector<128x128xf32>
    %153 = tpu.matmul %150, %152, %cst_56 {dimension_numbers = #tpu.dot_dimension_numbers<[1], [0], [0], [1], [0, 0, 1, 1], [], []>} : vector<128x16xf32>, vector<16x128xf32>, vector<128x128xf32> -> vector<128x128xf32>
    %154 = vector.extract_strided_slice %70 {offsets = [6, 0], sizes = [1, 128], strides = [1, 1]} : vector<8x128xf32> to vector<1x128xf32>
    %155 = vector.broadcast %154 : vector<1x128xf32> to vector<128x128xf32>
    %156 = arith.addf %153, %155 : vector<128x128xf32>
    %cst_57 = arith.constant 0.000000e+00 : f32
    %157 = vector.broadcast %cst_57 : f32 to vector<128x128xf32>
    %158 = arith.maximumf %156, %157 : vector<128x128xf32>
    %159 = vector.extract_strided_slice %47 {offsets = [0, 6], sizes = [128, 1], strides = [1, 1]} : vector<128x8xf32> to vector<128x1xf32>
    %160 = vector.broadcast %159 : vector<128x1xf32> to vector<128x128xf32>
    %161 = arith.mulf %160, %158 : vector<128x128xf32>
    %162 = arith.addf %149, %161 : vector<128x128xf32>
    %163 = vector.extract_strided_slice %69 {offsets = [0, 112], sizes = [128, 16], strides = [1, 1]} : vector<128x128xf32> to vector<128x16xf32>
    %c7 = arith.constant 7 : index
    %c0_58 = arith.constant 0 : index
    %c0_59 = arith.constant 0 : index
    %164 = vector.load %arg4[%c7, %c0_58, %c0_59] : memref<8x16x128xf32, #tpu.memory_space<vmem>>, vector<1x16x128xf32>
    %165 = vector.shape_cast %164 : vector<1x16x128xf32> to vector<16x128xf32>
    %cst_60 = arith.constant dense<0.000000e+00> : vector<128x128xf32>
    %166 = tpu.matmul %163, %165, %cst_60 {dimension_numbers = #tpu.dot_dimension_numbers<[1], [0], [0], [1], [0, 0, 1, 1], [], []>} : vector<128x16xf32>, vector<16x128xf32>, vector<128x128xf32> -> vector<128x128xf32>
    %167 = vector.extract_strided_slice %70 {offsets = [7, 0], sizes = [1, 128], strides = [1, 1]} : vector<8x128xf32> to vector<1x128xf32>
    %168 = vector.broadcast %167 : vector<1x128xf32> to vector<128x128xf32>
    %169 = arith.addf %166, %168 : vector<128x128xf32>
    %cst_61 = arith.constant 0.000000e+00 : f32
    %170 = vector.broadcast %cst_61 : f32 to vector<128x128xf32>
    %171 = arith.maximumf %169, %170 : vector<128x128xf32>
    %172 = vector.extract_strided_slice %47 {offsets = [0, 7], sizes = [128, 1], strides = [1, 1]} : vector<128x8xf32> to vector<128x1xf32>
    %173 = vector.broadcast %172 : vector<128x1xf32> to vector<128x128xf32>
    %174 = arith.mulf %173, %171 : vector<128x128xf32>
    %175 = arith.addf %162, %174 : vector<128x128xf32>
    %c0_62 = arith.constant 0 : index
    %c0_63 = arith.constant 0 : index
    %176 = vector.load %arg6[%c0_62, %c0_63] : memref<128x128xf32, #tpu.memory_space<vmem>>, vector<128x128xf32>
    tpu.vector_store %arg6[%c0_62, %c0_63], %175 {strides = array<i32>} : memref<128x128xf32, #tpu.memory_space<vmem>>, vector<128x128xf32>,
    return
  }
  func.func @transform_0(%arg0: i32) -> (i32, i32) {
    %c0_i32 = arith.constant 0 : i32
    %c0_i32_0 = arith.constant 0 : i32
    return %arg0, %c0_i32 : i32, i32
  }
  func.func @transform_1(%arg0: i32) -> (i32, i32) {
    %c0_i32 = arith.constant 0 : i32
    %c0_i32_0 = arith.constant 0 : i32
    %c0_i32_1 = arith.constant 0 : i32
    return %c0_i32, %c0_i32_0 : i32, i32
  }
  func.func @transform_2(%arg0: i32) -> (i32, i32) {
    %c0_i32 = arith.constant 0 : i32
    %c0_i32_0 = arith.constant 0 : i32
    %c0_i32_1 = arith.constant 0 : i32
    return %c0_i32, %c0_i32_0 : i32, i32
  }
  func.func @transform_3(%arg0: i32) -> (i32, i32, i32) {
    %c0_i32 = arith.constant 0 : i32
    %c0_i32_0 = arith.constant 0 : i32
    %c0_i32_1 = arith.constant 0 : i32
    %c0_i32_2 = arith.constant 0 : i32
    return %c0_i32, %c0_i32_0, %c0_i32_1 : i32, i32, i32
  }
  func.func @transform_4(%arg0: i32) -> (i32, i32) {
    %c0_i32 = arith.constant 0 : i32
    %c0_i32_0 = arith.constant 0 : i32
    %c0_i32_1 = arith.constant 0 : i32
    return %c0_i32, %c0_i32_0 : i32, i32
  }
  func.func @transform_5(%arg0: i32) -> (i32, i32) {
    %c0_i32 = arith.constant 0 : i32
    %c0_i32_0 = arith.constant 0 : i32
    return %arg0, %c0_i32 : i32, i32
  }
  func.func @transform_6(%arg0: i32) -> (i32, i32, i32) {
    %c0_i32 = arith.constant 0 : i32
    %c0_i32_0 = arith.constant 0 : i32
    %c0_i32_1 = arith.constant 0 : i32
    return %arg0, %c0_i32, %c0_i32_0 : i32, i32, i32
  }
  func.func @transform_7(%arg0: i32) -> (i32, i32, i32) {
    %c0_i32 = arith.constant 0 : i32
    %c0_i32_0 = arith.constant 0 : i32
    %c0_i32_1 = arith.constant 0 : i32
    return %arg0, %c0_i32, %c0_i32_0 : i32, i32, i32
  }
}

</mosaic_0001>

<bundles_post_ra>
// kernel: moe_forward.1
= control target key start
LH: loop header
LB: loop body
LE: loop exit
PB: predicated region body
PF: predicated region fallthrough
CT: control target
= control target key end

     0   :  { %s5618_s24 = smov 0   ;;  %s8607_s0 = inlined_call_operand.vmem [shape: f32[256,128], index: 0, kind: input, shape index: {}]   ;;  %s8608_s1 = inlined_call_operand.vmem [shape: f32[8,128], index: 1, kind: input, shape index: {}]   ;;  %s8609_s2 = inlined_call_operand.vmem [shape: f32[128,128], index: 2, kind: input, shape index: {}]   ;;  %s8610_s3 = inlined_call_operand.vmem [shape: f32[8,16,128], index: 3, kind: input, shape index: {}]   ;;  %s8611_s4 = inlined_call_operand.vmem [shape: f32[8,128], index: 4, kind: input, shape index: {}]   ;;  %s8612_s5 = inlined_call_operand.vmem [shape: f32[256,128], index: 5, kind: output, shape index: {0}]   ;;  %s8613_s6 = inlined_call_operand.vmem [shape: f32[2,1,8], index: 6, kind: output, shape index: {1}]   ;;  %s8614_s7 = inlined_call_operand.vmem [shape: f32[2,1,8], index: 7, kind: output, shape index: {2}]  }
   0x1 LB: > { %s5624_s25 = sadd.s32 4294967295, %s5560_s24   ;;  %p4560_p0 = scmp.ge.s32.totalorder %s5560_s24, 1  ;;  %s5560_s24 = sphi %s5618_s24, %s18_s24  }
   0x2   : > { %p243_p1 = scmp.lt.s32.totalorder %s5560_s24, 3 }
   0x4   : > { %p244_p2 = pnand %p4560_p0, %p243_p1 }
   0x6   : > { %247 = sbr.rel (%p244_p2) target bundleno = 2244 (0x8c4), region = 40 }
   0xd   : > { %v315_v0 = vld [vmem:[%s8608_s1] sm:$0xff]  ;;  %s4561_s28 = sshll.u32 %s5624_s25, 4  ;;  %v1649_v2 = vld [vmem:[%s8609_s2 + $0x8] sm:$0xff]  ;;  %v1650_v4 = vld [vmem:[%s8609_s2 + $0x10] sm:$0xff]  ;;  %vm461_vm0 = vcmask 64512   ;;  %vm1816_vm1 = vcmask 130048  }
   0xe   : > { %v1648_v1 = vld [vmem:[%s8609_s2] sm:$0xff]  ;;  %4919 = vmatprep.subr.mxu0 %v315_v0  ;;  %p282_p3 = scmp.lt.s32.totalorder %s4561_s28, 31  ;;  %v1651_v5 = vld [vmem:[%s8609_s2 + $0x18] sm:$0xff]  ;;  %v1653_v8 = vld [vmem:[%s8609_s2 + $0x28] sm:$0xff]  ;;  %s5562_s30 = smov 96  }
   0xf   : > { %v5225_v3 = vpack.c.bf16 %v1649_v2, %v1648_v1  ;;  %4920 = vmatpush3.xpose.msra.mxu0 %v315_v0  ;;  %v5229_v6 = vpack.c.bf16 %v1651_v5, %v1650_v4  ;;  %v1652_v7 = vld [vmem:[%s8609_s2 + $0x20] sm:$0xff]  ;;  %v1654_v13 = vld [vmem:[%s8609_s2 + $0x30] sm:$0xff]  ;;  %v1655_v14 = vld [vmem:[%s8609_s2 + $0x38] sm:$0xff]  ;;  %s5563_s8 = smov 112   ;;  %s5564_s9 = smov 64  }
  0x10   : > { %s9076_s28 = smov (!%p282_p3, %s4561_s28), 31  ;;  %v5233_v12 = vpack.c.bf16 %v1653_v8, %v1652_v7  ;;  %v5237_v18 = vpack.c.bf16 %v1655_v14, %v1654_v13  ;;  %v1656_v19 = vld [vmem:[%s8609_s2 + $0x40] sm:$0xff]  ;;  %v1657_v20 = vld [vmem:[%s8609_s2 + $0x48] sm:$0xff]  ;;  %v1658_v23 = vld [vmem:[%s8609_s2 + $0x50] sm:$0xff]  ;;  %s5565_s10 = smov 80  }
  0x11   : > { %5226 = vmatprep.subr.bf16.mxu0 %v5225_v3  ;;  %5289 = vmatprep.subr.bf16.mxu1 %v5225_v3  ;;  %s4562_s18 = sshll.u32 %s9076_s28, 3  ;;  %v5241_v22 = vpack.c.bf16 %v1657_v20, %v1656_v19  ;;  %v1659_v24 = vld [vmem:[%s8609_s2 + $0x58] sm:$0xff]  ;;  %v1660_v28 = vld [vmem:[%s8609_s2 + $0x60] sm:$0xff]  ;;  %v1661_v29 = vld [vmem:[%s8609_s2 + $0x68] sm:$0xff]  ;;  %s5566_s11 = smov 48  }
  0x12   : > { %5297 = vmatpush3.bf16.msra.mxu1 %v5225_v3  ;;  %s5658_s21 = scalar_lea.vmem %s8607_s0, %s4562_s18  ;;  %v5245_v27 = vpack.c.bf16 %v1659_v24, %v1658_v23  ;;  %v5249_v32 = vpack.c.bf16 %v1661_v29, %v1660_v28  ;;  %v1662_v33 = vld [vmem:[%s8609_s2 + $0x70] sm:$0xff]  ;;  %v1663_v34 = vld [vmem:[%s8609_s2 + $0x78] sm:$0xff]  ;;  %v1810_v41 = vld [vmem:[%s8610_s3] sm:$0xff]  ;;  %s5567_s12 = smov 32  }
  0x13   : > { %5290 = vmatprep.subr.bf16.mxu1 %v5229_v6  ;;  %v5661_v9 = vld [vmem:[%s5658_s21] sm:$0xff]  ;;  %v5664_v10 = vld [vmem:[%s5658_s21 + $0x8] sm:$0xff]  ;;  %v5667_v11 = vld [vmem:[%s5658_s21 + $0x10] sm:$0xff]  ;;  %v5253_v37 = vpack.c.bf16 %v1663_v34, %v1662_v33  ;;  %s5568_s13 = smov 16   ;;  %s4565_s29 = sshll.u32 %s5624_s25, 7 }
  0x14   : > { %4921 = vmatprep.mubr.f32.mxu0 %v5661_v9  ;;  %v5679_v15 = vld [vmem:[%s5658_s21 + $0x18] sm:$0xff]  ;;  %v305_v16 = vld [vmem:[%s5658_s21 + $0x30] sm:$0xff]  ;;  %v5683_v17 = vld [vmem:[%s5658_s21 + $0x20] sm:$0xff]  ;;  %p293_p4 = scmp.lt.s32.totalorder %s5624_s25, 1  ;;  %s8163_s19 = scalar_lea.vmem %s8612_s5, %s4562_s18 }
  0x15   : > { %4922 = vmatmul.mubr.f32.vlgmr.msra.gmra.mrb[0].mxu0 %v5664_v10  ;;  %4986 = vmatprep.mubr.f32.mxu1 %v305_v16  ;;  %v5694_v21 = vld [vmem:[%s5658_s21 + $0x28] sm:$0xff]  ;;  %v306_v25 = vld [vmem:[%s5658_s21 + $0x38] sm:$0xff]  ;;  %v307_v26 = vld [vmem:[%s5658_s21 + $0x40] sm:$0xff] }
  0x16   : > { %5298 = vmatpush3.bf16.msra.mxu1 %v5229_v6  ;;  %5228 = vmatpush3.bf16.msra.mxu0 %v5225_v3  ;;  %v308_v30 = vld [vmem:[%s5658_s21 + $0x48] sm:$0xff]  ;;  %v309_v31 = vld [vmem:[%s5658_s21 + $0x50] sm:$0xff]  ;;  %v310_v35 = vld [vmem:[%s5658_s21 + $0x58] sm:$0xff]  ;;  %s9078_s25 = smov (!%p293_p4, %s5624_s25), 1 }
  0x17   : > { %5291 = vmatprep.subr.bf16.mxu1 %v5233_v12  ;;  %4924 = vmatprep.mubr.f32.mxu0 %v5667_v11  ;;  %v311_v36 = vld [vmem:[%s5658_s21 + $0x60] sm:$0xff]  ;;  %v312_v38 = vld [vmem:[%s5658_s21 + $0x68] sm:$0xff]  ;;  %v313_v39 = vld [vmem:[%s5658_s21 + $0x70] sm:$0xff]  ;;  %s295_s14 = scalar_lea.vmem %s8613_s6, %s9078_s25 }
  0x18   : > { %5230 = vmatprep.subr.bf16.mxu0 %v5229_v6  ;;  %v314_v40 = vld [vmem:[%s5658_s21 + $0x78] sm:$0xff]  ;;  %v1811_v42 = vld [vmem:[%s8610_s3 + $0x8] sm:$0xff]  ;;  %v4616_v28 = vld [vmem:[%s8610_s3 + $0x20] sm:$0xff] }
  0x19   : > { %4925 = vmatmul.mubr.f32.gmra.mrb[2].mxu0 %v5679_v15  ;;  %v5257_v43 = vpack.c.bf16 %v1811_v42, %v1810_v41  ;;  %v4617_v29 = vld [vmem:[%s8610_s3 + $0x28] sm:$0xff]  ;;  %v4598_v33 = vld [vmem:[%s8610_s3 + $0x10] sm:$0xff]  ;;  %v4599_v34 = vld [vmem:[%s8610_s3 + $0x18] sm:$0xff] }
  0x1a   : > { %5299 = vmatpush3.bf16.msra.mxu1 %v5233_v12  ;;  %5232 = vmatpush3.bf16.msra.mxu0 %v5229_v6 }
  0x1b   : > { %5292 = vmatprep.subr.bf16.mxu1 %v5237_v18  ;;  %4927 = vmatprep.mubr.f32.mxu0 %v5683_v17 }
  0x1c   : > { %5234 = vmatprep.subr.bf16.mxu0 %v5233_v12 }
  0x1d   : > { %4928 = vmatmul.mubr.f32.gmra.mrb[4].mxu0 %v5694_v21 }
  0x1e   : > { %5300 = vmatpush3.bf16.msra.mxu1 %v5237_v18  ;;  %5236 = vmatpush3.bf16.msra.mxu0 %v5233_v12 }
  0x1f   : > { %5293 = vmatprep.subr.bf16.mxu1 %v5241_v22  ;;  %4930 = vmatprep.mubr.f32.mxu0 %v305_v16 }
  0x20   : > { %5238 = vmatprep.subr.bf16.mxu0 %v5237_v18 }
  0x21   : > { %4931 = vmatmul.mubr.f32.gmra.mrb[6].mxu0 %v306_v25 }
  0x22   : > { %5301 = vmatpush3.bf16.msra.mxu1 %v5241_v22  ;;  %5240 = vmatpush3.bf16.msra.mxu0 %v5237_v18 }
  0x23   : > { %5294 = vmatprep.subr.bf16.mxu1 %v5245_v27  ;;  %4933 = vmatprep.mubr.f32.mxu0 %v307_v26 }
  0x24   : > { %5242 = vmatprep.subr.bf16.mxu0 %v5241_v22 }
  0x25   : > { %4934 = vmatmul.mubr.f32.gmra.mrb[8].mxu0 %v308_v30 }
  0x26   : > { %5302 = vmatpush3.bf16.msra.mxu1 %v5245_v27  ;;  %5244 = vmatpush3.bf16.msra.mxu0 %v5241_v22 }
  0x27   : > { %5295 = vmatprep.subr.bf16.mxu1 %v5249_v32  ;;  %4936 = vmatprep.mubr.f32.mxu0 %v309_v31 }
  0x28   : > { %5246 = vmatprep.subr.bf16.mxu0 %v5245_v27 }
  0x29   : > { %4937 = vmatmul.mubr.f32.gmra.mrb[10].mxu0 %v310_v35 }
  0x2a   : > { %5303 = vmatpush3.bf16.msra.mxu1 %v5249_v32  ;;  %5248 = vmatpush3.bf16.msra.mxu0 %v5245_v27 }
  0x2b   : > { %5296 = vmatprep.subr.bf16.mxu1 %v5253_v37  ;;  %4939 = vmatprep.mubr.f32.mxu0 %v311_v36 }
  0x2c   : > { %5250 = vmatprep.subr.bf16.mxu0 %v5249_v32 }
  0x2d   : > { %4940 = vmatmul.mubr.f32.gmra.mrb[12].mxu0 %v312_v38 }
  0x2e   : > { %5304 = vmatpush3.bf16.msra.mxu1 %v5253_v37  ;;  %5252 = vmatpush3.bf16.msra.mxu0 %v5249_v32 }
  0x2f   : > { %4942 = vmatprep.mubr.f32.mxu0 %v313_v39  ;;  %5254 = vmatprep.subr.bf16.mxu0 %v5253_v37 }
  0x31   : > { %4987 = vmatmul.mubr.f32.vlgmr.msra.gmra.mrb[0].mxu1 %v306_v25  ;;  %4943 = vmatmul.mubr.f32.gmra.mrb[14].mxu0 %v314_v40 }
  0x32   : > { %4989 = vmatprep.mubr.f32.mxu1 %v307_v26  ;;  %5256 = vmatpush3.bf16.msra.mxu0 %v5253_v37 }
  0x33   : > { %4977 = vmatprep.mubr.f32.mxu0 %v5661_v9  ;;  %5258 = vmatprep.subr.bf16.mxu0 %v5257_v43 }
  0x35   : > { %4990 = vmatmul.mubr.f32.gmra.mrb[2].mxu1 %v308_v30  ;;  %4978 = vmatmul.mubr.f32.vlgmr.msra.gmra.mrb[16].mxu0 %v5664_v10  ;;  %v5265_v30 = vpack.c.bf16 %v4617_v29, %v4616_v28 }
  0x36   : > { %4992 = vmatprep.mubr.f32.mxu1 %v309_v31  ;;  %4980 = vmatprep.mubr.f32.mxu0 %v5667_v11 }
  0x37   : > { %5260 = vmatpush3.bf16.msra.mxu0 %v5257_v43 }
  0x38   : > { %5266 = vmatprep.subr.bf16.mxu0 %v5265_v30 }
  0x39   : > { %4993 = vmatmul.mubr.f32.gmra.mrb[4].mxu1 %v310_v35  ;;  %4981 = vmatmul.mubr.f32.gmra.mrb[18].mxu0 %v5679_v15 }
  0x3a   : > { %4995 = vmatprep.mubr.f32.mxu1 %v311_v36  ;;  %4983 = vmatprep.mubr.f32.mxu0 %v5683_v17  ;;  %v5261_v36 = vpack.c.bf16 %v4599_v34, %v4598_v33 }
  0x3c   : > { %5262 = vmatprep.subr.bf16.mxu1 %v5261_v36 }
  0x3d   : > { %4996 = vmatmul.mubr.f32.gmra.mrb[6].mxu1 %v312_v38  ;;  %4984 = vmatmul.mubr.f32.gmra.mrb[20].mxu0 %v5694_v21 }
  0x3e   : > { %4998 = vmatprep.mubr.f32.mxu1 %v313_v39  ;;  %5264 = vmatpush3.bf16.msra.mxu1 %v5261_v36 }
  0x41   : > { %4999 = vmatmul.mubr.f32.gmra.mrb[8].mxu1 %v314_v40 }
  0xe8   : > { %v5736_v44 = vpop.f32.mrb[0].mxu0 }
  0xe9   : > { %v5738_v45 = vpop.f32.mrb[1].mxu0  ;;  %v465_v46 = vsel %vm461_vm0, %v5736_v44, -inf }
  0xea   : > { %466 = vmax.xlane.f32.xlu0 %v465_v46  ;;  %v462_v49 = vsel %vm461_vm0, %v5738_v45, -inf }
  0xec   : > { %v5742_v47 = vpop.f32.mrb[2].mxu0 }
  0xed   : > { %v5744_v48 = vpop.f32.mrb[3].mxu0  ;;  %v471_v50 = vsel %vm461_vm0, %v5742_v47, -inf }
  0xee   : > { %463 = vmax.xlane.f32.xlu0 %v462_v49  ;;  %472 = vmax.xlane.f32.xlu1 %v471_v50  ;;  %v468_v53 = vsel %vm461_vm0, %v5744_v48, -inf }
  0xf0   : > { %v5750_v51 = vpop.f32.mrb[4].mxu0 }
  0xf1   : > { %v5752_v52 = vpop.f32.mrb[5].mxu0  ;;  %v477_v55 = vsel %vm461_vm0, %v5750_v51, -inf }
  0xf2   : > { %469 = vmax.xlane.f32.xlu1 %v468_v53  ;;  %v474_v54 = vsel %vm461_vm0, %v5752_v52, -inf }
  0xf3   : > { %475 = vmax.xlane.f32.xlu0 %v474_v54 }
  0xf4   : > { %v5760_v56 = vpop.f32.mrb[6].mxu0 }
  0xf5   : > { %v5762_v57 = vpop.f32.mrb[7].mxu0  ;;  %v483_v59 = vsel %vm461_vm0, %v5760_v56, -inf }
  0xf6   : > { %478 = vmax.xlane.f32.xlu1 %v477_v55  ;;  %v480_v58 = vsel %vm461_vm0, %v5762_v57, -inf }
  0xf7   : > { %481 = vmax.xlane.f32.xlu0 %v480_v58 }
  0xf8   : > { %v5768_v60 = vpop.f32.mrb[8].mxu0 }
  0xf9   : > { %v5770_v61 = vpop.f32.mrb[9].mxu0  ;;  %v489_v63 = vsel %vm461_vm0, %v5768_v60, -inf }
  0xfa   : > { %484 = vmax.xlane.f32.xlu1 %v483_v59  ;;  %v486_v62 = vsel %vm461_vm0, %v5770_v61, -inf }
  0xfb   : > { %487 = vmax.xlane.f32.xlu0 %v486_v62 }
  0xfc   : > { %v5776_v0 = vpop.f32.mrb[10].mxu0 }
  0xfd   : > { %v5778_v1 = vpop.f32.mrb[11].mxu0  ;;  %v495_v3 = vsel %vm461_vm0, %v5776_v0, -inf }
  0xfe   : > { %490 = vmax.xlane.f32.xlu1 %v489_v63  ;;  %v492_v2 = vsel %vm461_vm0, %v5778_v1, -inf }
  0xff   : > { %493 = vmax.xlane.f32.xlu0 %v492_v2 }
 0x100   : > { %v5784_v4 = vpop.f32.mrb[12].mxu0 }
 0x101   : > { %v5786_v5 = vpop.f32.mrb[13].mxu0  ;;  %v501_v8 = vsel %vm461_vm0, %v5784_v4, -inf }
 0x102   : > { %496 = vmax.xlane.f32.xlu1 %v495_v3  ;;  %v498_v6 = vsel %vm461_vm0, %v5786_v5, -inf }
 0x103   : > { %499 = vmax.xlane.f32.xlu0 %v498_v6 }
 0x104   : > { %v4988_v7 = vpop.f32.mrb[0].mxu1  ;;  %v5792_v10 = vpop.f32.mrb[14].mxu0 }
 0x105   : > { %v1760_v9 = vpop.f32.mrb[1].mxu1  ;;  %v5794_v11 = vpop.f32.mrb[15].mxu0  ;;  %v507_v25 = vsel %vm461_vm0, %v5792_v10, -inf }
 0x106   : > { %502 = vmax.xlane.f32.xlu1 %v501_v8  ;;  %v504_v24 = vsel %vm461_vm0, %v5794_v11, -inf }
 0x108   : > { %v4991_v12 = vpop.f32.mrb[2].mxu1  ;;  %v5798_v14 = vpop.f32.mrb[16].mxu0 }
 0x109   : > { %v5796_v13 = vpop.f32.mrb[3].mxu1  ;;  %v5800_v15 = vpop.f32.mrb[17].mxu0 }
 0x10a   : > { %5005 = vmatprep.mubr.msk.f32.mxu0 %vm1816_vm1, %v5800_v15 }
 0x10b   : > { %5006 = vmatmul.mubr.msk.f32.vlgmr.msra.gmra.mrb[22].mxu0 %vm1816_vm1, %v5798_v14 }
 0x10c   : > { %v5806_v16 = vpop.f32.mrb[18].mxu0  ;;  %v5827_v20 = vpop.f32.mrb[4].mxu1  ;;  %5268 = vmatpush3.bf16.msra.mxu0 %v5265_v30 }
 0x10d   : > { %v5808_v17 = vpop.f32.mrb[19].mxu0  ;;  %v5830_v21 = vpop.f32.mrb[5].mxu1 }
 0x10e   : > { %5008 = vmatprep.mubr.msk.f32.mxu0 %vm1816_vm1, %v5808_v17 }
 0x10f   : > { %5009 = vmatmul.mubr.msk.f32.gmra.mrb[24].mxu0 %vm1816_vm1, %v5806_v16 }
 0x110   : > { %v5814_v18 = vpop.f32.mrb[20].mxu0  ;;  %v5849_v22 = vpop.f32.mrb[6].mxu1 }
 0x111   : > { %v5816_v19 = vpop.f32.mrb[21].mxu0  ;;  %8673 = vst [vmem:[#allocation2_spill] sm:$0xff] %v5849_v22  ;;  %v5851_v23 = vpop.f32.mrb[7].mxu1 }
 0x112   : > { %5011 = vmatprep.mubr.msk.f32.mxu0 %vm1816_vm1, %v5816_v19 }
 0x113   : > { %5012 = vmatmul.mubr.msk.f32.gmra.mrb[26].mxu0 %vm1816_vm1, %v5814_v18 }
 0x114   : > { %5014 = vmatprep.mubr.msk.f32.mxu0 %vm1816_vm1, %v1760_v9  ;;  %v5878_v26 = vpop.f32.mrb[8].mxu1 }
 0x115   : > { %8674 = vst [vmem:[#allocation3_spill] sm:$0xff] %v5878_v26  ;;  %v5882_v27 = vpop.f32.mrb[9].mxu1 }
 0x116   : > { %8675 = vst [vmem:[#allocation4_spill] sm:$0xff] %v5882_v27 }
 0x117   : > { %2487 = vrot.lane.b32.xlu1 %v4988_v7, %s5562_s30  ;;  %5015 = vmatmul.mubr.msk.f32.gmra.mrb[28].mxu0 %vm1816_vm1, %v4988_v7 }
 0x118   : > { %5017 = vmatprep.mubr.msk.f32.mxu0 %vm1816_vm1, %v5796_v13 }
 0x119   : > { %2159 = vrot.lane.b32.xlu0 %v4988_v7, %s5563_s8 }
 0x11b   : > { %3143 = vrot.lane.b32.xlu1 %v4988_v7, %s5564_s9  ;;  %5018 = vmatmul.mubr.msk.f32.gmra.mrb[30].mxu0 %vm1816_vm1, %v4991_v12 }
 0x11c   : > { %5020 = vmatprep.mubr.msk.f32.mxu0 %vm1816_vm1, %v5830_v21 }
 0x11d   : > { %2815 = vrot.lane.b32.xlu0 %v4988_v7, %s5565_s10 }
 0x11f   : > { %3471 = vrot.lane.b32.xlu1 %v4988_v7, %s5566_s11  ;;  %5021 = vmatmul.mubr.msk.f32.gmra.mrb[32].mxu0 %vm1816_vm1, %v5827_v20 }
 0x120   : > { %5023 = vmatprep.mubr.msk.f32.mxu0 %vm1816_vm1, %v5851_v23 }
 0x121   : > { %2485 = vrot.lane.b32.xlu0 %v1760_v9, %s5562_s30 }
 0x123   : > { %3799 = vrot.lane.b32.xlu1 %v4988_v7, %s5567_s12  ;;  %5024 = vmatmul.mubr.msk.f32.gmra.mrb[34].mxu0 %vm1816_vm1, %v5849_v22 }
 0x124   : > { %5026 = vmatprep.mubr.msk.f32.mxu0 %vm1816_vm1, %v5882_v27 }
 0x125   : > { %3141 = vrot.lane.b32.xlu0 %v1760_v9, %s5564_s9 }
 0x127   : > { %4127 = vrot.lane.b32.xlu1 %v4988_v7, %s5568_s13  ;;  %5027 = vmatmul.mubr.msk.f32.gmra.mrb[36].mxu0 %vm1816_vm1, %v5878_v26 }
 0x129   : > { %3469 = vrot.lane.b32.xlu0 %v1760_v9, %s5566_s11 }
 0x12b   : > { %2157 = vrot.lane.b32.xlu1 %v1760_v9, %s5563_s8 }
 0x12d   : > { %3797 = vrot.lane.b32.xlu0 %v1760_v9, %s5567_s12 }
 0x12f   : > { %2813 = vrot.lane.b32.xlu1 %v1760_v9, %s5565_s10 }
 0x131   : > { %4125 = vrot.lane.b32.xlu0 %v1760_v9, %s5568_s13 }
 0x150   : > { %505 = vmax.xlane.f32.xlu0 %v504_v24 }
 0x153   : > { %508 = vmax.xlane.f32.xlu1 %v507_v25 }
 0x164   : > { %2491 = vrot.lane.b32.xlu1 %v4991_v12, %s5562_s30 }
 0x166   : > { %2163 = vrot.lane.b32.xlu0 %v4991_v12, %s5563_s8 }
 0x168   : > { %3147 = vrot.lane.b32.xlu1 %v4991_v12, %s5564_s9 }
 0x16a   : > { %2819 = vrot.lane.b32.xlu0 %v4991_v12, %s5565_s10 }
 0x16c   : > { %3475 = vrot.lane.b32.xlu1 %v4991_v12, %s5566_s11 }
 0x16e   : > { %2489 = vrot.lane.b32.xlu0 %v5796_v13, %s5562_s30 }
 0x170   : > { %3803 = vrot.lane.b32.xlu1 %v4991_v12, %s5567_s12 }
 0x172   : > { %3145 = vrot.lane.b32.xlu0 %v5796_v13, %s5564_s9 }
 0x174   : > { %4131 = vrot.lane.b32.xlu1 %v4991_v12, %s5568_s13 }
 0x176   : > { %3473 = vrot.lane.b32.xlu0 %v5796_v13, %s5566_s11 }
 0x177   : > { %v5908_v31 = vpop.xlane.xlu0 %466 }
 0x178   : > { %2161 = vrot.lane.b32.xlu1 %v5796_v13, %s5563_s8 }
 0x17a   : > { %3801 = vrot.lane.b32.xlu0 %v5796_v13, %s5567_s12 }
 0x17b   : > { %v5912_v32 = vpop.xlane.xlu1 %472  ;;  %v5924_v35 = vpop.xlane.xlu0 %463 }
 0x17c   : > { %2817 = vrot.lane.b32.xlu1 %v5796_v13, %s5565_s10 }
 0x17e   : > { %4129 = vrot.lane.b32.xlu0 %v5796_v13, %s5568_s13 }
 0x17f   : > { %v5928_v37 = vpop.xlane.xlu1 %469 }
 0x180   : > { %2475 = vrot.lane.b32.xlu1 %v5798_v14, %s5562_s30  ;;  %v5934_v38 = vpop.xlane.xlu0 %475 }
 0x182   : > { %2147 = vrot.lane.b32.xlu0 %v5798_v14, %s5563_s8 }
 0x183   : > { %v5938_v39 = vpop.xlane.xlu1 %478 }
 0x184   : > { %3131 = vrot.lane.b32.xlu1 %v5798_v14, %s5564_s9  ;;  %v5944_v40 = vpop.xlane.xlu0 %481 }
 0x186   : > { %2803 = vrot.lane.b32.xlu0 %v5798_v14, %s5565_s10 }
 0x187   : > { %v5948_v41 = vpop.xlane.xlu1 %484 }
 0x188   : > { %3459 = vrot.lane.b32.xlu1 %v5798_v14, %s5566_s11  ;;  %v5954_v42 = vpop.xlane.xlu0 %487 }
 0x18a   : > { %2473 = vrot.lane.b32.xlu0 %v5800_v15, %s5562_s30 }
 0x18b   : > { %v5958_v43 = vpop.xlane.xlu1 %490 }
 0x18c   : > { %3787 = vrot.lane.b32.xlu1 %v5798_v14, %s5567_s12  ;;  %v5964_v46 = vpop.xlane.xlu0 %493 }
 0x18e   : > { %3129 = vrot.lane.b32.xlu0 %v5800_v15, %s5564_s9 }
 0x18f   : > { %v5968_v49 = vpop.xlane.xlu1 %496 }
 0x190   : > { %4115 = vrot.lane.b32.xlu1 %v5798_v14, %s5568_s13  ;;  %v5974_v50 = vpop.xlane.xlu0 %499 }
 0x192   : > { %3457 = vrot.lane.b32.xlu0 %v5800_v15, %s5566_s11 }
 0x193   : > { %v5978_v53 = vpop.xlane.xlu1 %502 }
 0x194   : > { %2145 = vrot.lane.b32.xlu1 %v5800_v15, %s5563_s8  ;;  %v5984_v54 = vpop.permute.xlu0 %2159 }
 0x196   : > { %3785 = vrot.lane.b32.xlu0 %v5800_v15, %s5567_s12 }
 0x197   : > { %v5988_v55 = vpop.permute.xlu1 %2487 }
 0x198   : > { %2801 = vrot.lane.b32.xlu1 %v5800_v15, %s5565_s10  ;;  %v5994_v58 = vpop.permute.xlu0 %2815 }
 0x19a   : > { %4113 = vrot.lane.b32.xlu0 %v5800_v15, %s5568_s13 }
 0x19b   : > { %v5998_v59 = vpop.permute.xlu1 %3143 }
 0x19c   : > { %2495 = vrot.lane.b32.xlu1 %v5827_v20, %s5562_s30  ;;  %v6004_v62 = vpop.permute.xlu0 %2485 }
 0x19e   : > { %2167 = vrot.lane.b32.xlu0 %v5827_v20, %s5563_s8 }
 0x19f   : > { %v6008_v63 = vpop.permute.xlu1 %3471 }
 0x1a0   : > { %3151 = vrot.lane.b32.xlu1 %v5827_v20, %s5564_s9  ;;  %8676 = vst [vmem:[#allocation5_spill] sm:$0xff] %v6008_v63  ;;  %v6014_v2 = vpop.permute.xlu0 %3141 }
 0x1a2   : > { %2823 = vrot.lane.b32.xlu0 %v5827_v20, %s5565_s10 }
 0x1a3   : > { %v6018_v3 = vpop.permute.xlu1 %3799 }
 0x1a4   : > { %3479 = vrot.lane.b32.xlu1 %v5827_v20, %s5566_s11  ;;  %8677 = vst [vmem:[#allocation6_spill] sm:$0xff] %v6018_v3  ;;  %v6024_v6 = vpop.permute.xlu0 %3469  ;;  %v4653_v3 = vld [vmem:[%s8610_s3 + $0x48] sm:$0xff] }
 0x1a5   : > { %8678 = vst [vmem:[#allocation7_spill] sm:$0xff] %v6024_v6  ;;  %v4634_v6 = vld [vmem:[%s8610_s3 + $0x30] sm:$0xff] }
 0x1a6   : > { %2493 = vrot.lane.b32.xlu0 %v5830_v21, %s5562_s30 }
 0x1a7   : > { %v6028_v7 = vpop.permute.xlu1 %4127 }
 0x1a8   : > { %3807 = vrot.lane.b32.xlu1 %v5827_v20, %s5567_s12  ;;  %8679 = vst [vmem:[#allocation8_spill] sm:$0xff] %v6028_v7  ;;  %v6034_v8 = vpop.permute.xlu0 %3797 }
 0x1a9   : > { %8680 = vst [vmem:[#allocation9_spill] sm:$0xff] %v6034_v8  ;;  %v4635_v8 = vld [vmem:[%s8610_s3 + $0x38] sm:$0xff] }
 0x1aa   : > { %3149 = vrot.lane.b32.xlu0 %v5830_v21, %s5564_s9 }
 0x1ab   : > { %v6038_v9 = vpop.permute.xlu1 %2157 }
 0x1ac   : > { %2165 = vrot.lane.b32.xlu1 %v5830_v21, %s5563_s8  ;;  %v6044_v12 = vpop.permute.xlu0 %4125 }
 0x1ad   : > { %8681 = vst [vmem:[#allocation10_spill] sm:$0xff] %v6044_v12 }
 0x1ae   : > { %3477 = vrot.lane.b32.xlu0 %v5830_v21, %s5566_s11 }
 0x1af   : > { %v6048_v13 = vpop.permute.xlu1 %2813 }
 0x1b0   : > { %2821 = vrot.lane.b32.xlu1 %v5830_v21, %s5565_s10 }
 0x1b2   : > { %3805 = vrot.lane.b32.xlu0 %v5830_v21, %s5567_s12 }
 0x1b4   : > { %2479 = vrot.lane.b32.xlu1 %v5806_v16, %s5562_s30 }
 0x1b6   : > { %4133 = vrot.lane.b32.xlu0 %v5830_v21, %s5568_s13 }
 0x1b8   : > { %3135 = vrot.lane.b32.xlu1 %v5806_v16, %s5564_s9 }
 0x1ba   : > { %2151 = vrot.lane.b32.xlu0 %v5806_v16, %s5563_s8 }
 0x1bc   : > { %3463 = vrot.lane.b32.xlu1 %v5806_v16, %s5566_s11 }
 0x1be   : > { %2807 = vrot.lane.b32.xlu0 %v5806_v16, %s5565_s10 }
 0x1c0   : > { %3791 = vrot.lane.b32.xlu1 %v5806_v16, %s5567_s12 }
 0x1c2   : > { %2477 = vrot.lane.b32.xlu0 %v5808_v17, %s5562_s30 }
 0x1c4   : > { %4119 = vrot.lane.b32.xlu1 %v5806_v16, %s5568_s13 }
 0x1c6   : > { %3133 = vrot.lane.b32.xlu0 %v5808_v17, %s5564_s9 }
 0x1c8   : > { %2149 = vrot.lane.b32.xlu1 %v5808_v17, %s5563_s8 }
 0x1ca   : > { %3461 = vrot.lane.b32.xlu0 %v5808_v17, %s5566_s11 }
 0x1cc   : > { %2805 = vrot.lane.b32.xlu1 %v5808_v17, %s5565_s10 }
 0x1ce   : > { %3789 = vrot.lane.b32.xlu0 %v5808_v17, %s5567_s12 }
 0x1d0   : > { %2499 = vrot.lane.b32.xlu1 %v5849_v22, %s5562_s30 }
 0x1d2   : > { %4117 = vrot.lane.b32.xlu0 %v5808_v17, %s5568_s13 }
 0x1d4   : > { %3155 = vrot.lane.b32.xlu1 %v5849_v22, %s5564_s9 }
 0x1d6   : > { %2171 = vrot.lane.b32.xlu0 %v5849_v22, %s5563_s8 }
 0x1d8   : > { %3483 = vrot.lane.b32.xlu1 %v5849_v22, %s5566_s11 }
 0x1da   : > { %2827 = vrot.lane.b32.xlu0 %v5849_v22, %s5565_s10 }
 0x1dc   : > { %2169 = vrot.lane.b32.xlu1 %v5851_v23, %s5563_s8 }
 0x1dd   : > { %v6052_v14 = vpop.xlane.xlu0 %505 }
 0x1de   : > { %2497 = vrot.lane.b32.xlu0 %v5851_v23, %s5562_s30  ;;  %v6056_v15 = vpop.f32.mrb[22].mxu0 }
 0x1df   : > { %8682 = vst [vmem:[#allocation11_spill] sm:$0xff] %v6056_v15  ;;  %v6058_v16 = vpop.f32.mrb[23].mxu0 }
 0x1e0   : > { %8683 = vst [vmem:[#allocation12_spill] sm:$0xff] %v6058_v16  ;;  %v6060_v17 = vpop.xlane.xlu1 %508  ;;  %2825 = vrot.lane.b32.xlu1 %v5851_v23, %s5565_s10 }
 0x1e1   : > { %v6064_v21 = vpop.permute.xlu0 %2163 }
 0x1e2   : > { %3153 = vrot.lane.b32.xlu0 %v5851_v23, %s5564_s9  ;;  %v6068_v24 = vpop.f32.mrb[24].mxu0 }
 0x1e3   : > { %8684 = vst [vmem:[#allocation13_spill] sm:$0xff] %v6068_v24  ;;  %v6070_v25 = vpop.f32.mrb[25].mxu0 }
 0x1e4   : > { %8685 = vst [vmem:[#allocation14_spill] sm:$0xff] %v6070_v25  ;;  %v6072_v28 = vpop.permute.xlu1 %2491  ;;  %2483 = vrot.lane.b32.xlu1 %v5814_v18, %s5562_s30 }
 0x1e5   : > { %v6076_v29 = vpop.permute.xlu0 %2819 }
 0x1e6   : > { %8686 = vst [vmem:[#allocation15_spill] sm:$0xff] %v6076_v29  ;;  %3481 = vrot.lane.b32.xlu0 %v5851_v23, %s5566_s11  ;;  %v6080_v30 = vpop.f32.mrb[26].mxu0  ;;  %v5269_v29 = vpack.c.bf16 %v4635_v8, %v4634_v6 }
 0x1e7   : > { %8687 = vst [vmem:[#allocation16_spill] sm:$0xff] %v6080_v30  ;;  %v6082_v33 = vpop.f32.mrb[27].mxu0 }
 0x1e8   : > { %8688 = vst [vmem:[#allocation17_spill] sm:$0xff] %v6082_v33  ;;  %v6084_v34 = vpop.permute.xlu1 %3147  ;;  %3139 = vrot.lane.b32.xlu1 %v5814_v18, %s5564_s9  ;;  %5270 = vmatprep.subr.bf16.mxu1 %v5269_v29 }
 0x1e9   : > { %8689 = vst [vmem:[#allocation18_spill] sm:$0xff] %v6084_v34  ;;  %v6088_v36 = vpop.permute.xlu0 %2489 }
 0x1ea   : > { %v6090_v25 = vpop.f32.mrb[28].mxu0  ;;  %2155 = vrot.lane.b32.xlu0 %v5814_v18, %s5563_s8 }
 0x1eb   : > { %8690 = vst [vmem:[#allocation19_spill] sm:$0xff] %v6090_v25  ;;  %v6094_v24 = vpop.f32.mrb[29].mxu0 }
 0x1ec   : > { %8691 = vst [vmem:[#allocation20_spill] sm:$0xff] %v6094_v24  ;;  %v6096_v16 = vpop.permute.xlu1 %3475  ;;  %3467 = vrot.lane.b32.xlu1 %v5814_v18, %s5566_s11 }
 0x1ed   : > { %8692 = vst [vmem:[#allocation21_spill] sm:$0xff] %v6096_v16  ;;  %v6100_v33 = vpop.permute.xlu0 %3145 }
 0x1ee   : > { %2811 = vrot.lane.b32.xlu0 %v5814_v18, %s5565_s10  ;;  %v6104_v30 = vpop.f32.mrb[30].mxu0 }
 0x1ef   : > { %8693 = vst [vmem:[#allocation22_spill] sm:$0xff] %v6104_v30  ;;  %v6106_v15 = vpop.f32.mrb[31].mxu0 }
 0x1f0   : > { %8694 = vst [vmem:[#allocation23_spill] sm:$0xff] %v6106_v15  ;;  %v6108_v25 = vpop.permute.xlu1 %3803  ;;  %3795 = vrot.lane.b32.xlu1 %v5814_v18, %s5567_s12 }
 0x1f1   : > { %8695 = vst [vmem:[#allocation24_spill] sm:$0xff] %v6108_v25  ;;  %v6112_v24 = vpop.permute.xlu0 %3473 }
 0x1f2   : > { %8696 = vst [vmem:[#allocation25_spill] sm:$0xff] %v6112_v24  ;;  %2481 = vrot.lane.b32.xlu0 %v5816_v19, %s5562_s30  ;;  %v6116_v7 = vpop.f32.mrb[32].mxu0 }
 0x1f3   : > { %8697 = vst [vmem:[#allocation26_spill] sm:$0xff] %v6116_v7  ;;  %v6118_v12 = vpop.f32.mrb[33].mxu0 }
 0x1f4   : > { %8698 = vst [vmem:[#allocation27_spill] sm:$0xff] %v6118_v12  ;;  %v6120_v16 = vpop.permute.xlu1 %4131  ;;  %4123 = vrot.lane.b32.xlu1 %v5814_v18, %s5568_s13 }
 0x1f5   : > { %8699 = vst [vmem:[#allocation28_spill] sm:$0xff] %v6120_v16  ;;  %v6124_v15 = vpop.permute.xlu0 %3801 }
 0x1f6   : > { %8700 = vst [vmem:[#allocation29_spill] sm:$0xff] %v6124_v15  ;;  %3137 = vrot.lane.b32.xlu0 %v5816_v19, %s5564_s9 }
 0x1f8   : > { %v6128_v30 = vpop.permute.xlu1 %2161  ;;  %2153 = vrot.lane.b32.xlu1 %v5816_v19, %s5563_s8 }
 0x1f9   : > { %v6132_v25 = vpop.permute.xlu0 %4129 }
 0x1fa   : > { %8701 = vst [vmem:[#allocation30_spill] sm:$0xff] %v6132_v25  ;;  %3465 = vrot.lane.b32.xlu0 %v5816_v19, %s5566_s11 }
 0x1fc   : > { %v6136_v12 = vpop.permute.xlu1 %2817  ;;  %2809 = vrot.lane.b32.xlu1 %v5816_v19, %s5565_s10 }
 0x1fd   : > { %8702 = vst [vmem:[#allocation31_spill] sm:$0xff] %v6136_v12  ;;  %v2148_v18 = vpop.permute.xlu0 %2147 }
 0x1fe   : > { %3793 = vrot.lane.b32.xlu0 %v5816_v19, %s5567_s12 }
 0x200   : > { %v2476_v7 = vpop.permute.xlu1 %2475  ;;  %2503 = vrot.lane.b32.xlu1 %v5878_v26, %s5562_s30 }
 0x201   : > { %v6144_v16 = vpop.permute.xlu0 %2803 }
 0x202   : > { %4121 = vrot.lane.b32.xlu0 %v5816_v19, %s5568_s13  ;;  %v4652_v19 = vld [vmem:[%s8610_s3 + $0x40] sm:$0xff] }
 0x204   : > { %v6148_v25 = vpop.permute.xlu1 %3131  ;;  %3159 = vrot.lane.b32.xlu1 %v5878_v26, %s5564_s9 }
 0x205   : > { %v2474_v24 = vpop.permute.xlu0 %2473 }
 0x206   : > { %2175 = vrot.lane.b32.xlu0 %v5878_v26, %s5563_s8  ;;  %5061 = vmatprep.mubr.msk.f32.mxu0 %vm1816_vm1, %v2474_v24  ;;  %v5273_v24 = vpack.c.bf16 %v4653_v3, %v4652_v19 }
 0x207   : > { %5062 = vmatmul.mubr.msk.f32.vlgmr.msra.gmra.mrb[38].mxu0 %vm1816_vm1, %v2476_v7 }
 0x208   : > { %v6156_v63 = vpop.permute.xlu1 %3459  ;;  %3487 = vrot.lane.b32.xlu1 %v5878_v26, %s5566_s11  ;;  %5274 = vmatprep.subr.bf16.mxu0 %v5273_v24 }
 0x209   : > { %8703 = vst [vmem:[#allocation32_spill] sm:$0xff] %v6156_v63  ;;  %v6160_v15 = vpop.permute.xlu0 %3129  ;;  %5276 = vmatpush3.bf16.msra.mxu0 %v5273_v24 }
 0x20a   : > { %2831 = vrot.lane.b32.xlu0 %v5878_v26, %s5565_s10 }
 0x20c   : > { %v6170_v7 = vpop.permute.xlu1 %3787  ;;  %2173 = vrot.lane.b32.xlu1 %v5882_v27, %s5563_s8  ;;  %s298_s8 = scalar_lea.vmem %s8614_s7, %s9078_s25 }
 0x20d   : > { %8704 = vst [vmem:[#allocation33_spill] sm:$0xff] %v6170_v7  ;;  %v6180_v63 = vpop.permute.xlu0 %3457 }
 0x20e   : > { %8705 = vst [vmem:[#allocation34_spill] sm:$0xff] %v6180_v63  ;;  %2501 = vrot.lane.b32.xlu0 %v5882_v27, %s5562_s30  ;;  %v511_v63 = vsub.f32 %v5736_v44, %v5908_v31 }
 0x210   : > { %v6184_v3 = vpop.permute.xlu1 %4115  ;;  %2829 = vrot.lane.b32.xlu1 %v5882_v27, %s5565_s10 }
 0x211   : > { %8706 = vst [vmem:[#allocation35_spill] sm:$0xff] %v6184_v3  ;;  %v6188_v19 = vpop.permute.xlu0 %3785 }
 0x212   : > { %8707 = vst [vmem:[#allocation36_spill] sm:$0xff] %v6188_v19  ;;  %3157 = vrot.lane.b32.xlu0 %v5882_v27, %s5564_s9  ;;  %v513_v19 = vsub.f32 %v5742_v47, %v5912_v32  ;;  %v514_v47 = vsub.f32 %v5752_v52, %v5934_v38  ;;  %v516_v38 = vsub.f32 %v5762_v57, %v5944_v40 }
 0x213   : > { %v519_v57 = vsub.f32 %v5768_v60, %v5958_v43  ;;  %v521_v60 = vsub.f32 %v5776_v0, %v5968_v49  ;;  %v523_v49 = vsub.f32 %v5784_v4, %v5978_v53 }
 0x214   : > { %v2146_v26 = vpop.permute.xlu1 %2145  ;;  %v534_v52 = vmul.f32 1.442695, %v514_v47  ;;  %v538_v40 = vmul.f32 1.442695, %v516_v38 }
 0x215   : > { %5033 = vmatprep.mubr.msk.f32.mxu1 %vm1816_vm1, %v2146_v26  ;;  %v6193_v7 = vpop.permute.xlu0 %4113  ;;  %v510_v26 = vsub.f32 %v5738_v45, %v5924_v35  ;;  %v532_v45 = vmul.f32 1.442695, %v513_v19  ;;  %v515_v35 = vsub.f32 %v5750_v51, %v5938_v39  ;;  %v517_v51 = vsub.f32 %v5760_v56, %v5948_v41 }
 0x216   : > { %8708 = vst [vmem:[#allocation37_spill] sm:$0xff] %v6193_v7  ;;  %3485 = vrot.lane.b32.xlu0 %v5882_v27, %s5566_s11  ;;  %5034 = vmatmul.mubr.msk.f32.vlgmr.msra.gmra.mrb[10].mxu1 %vm1816_vm1, %v2148_v18  ;;  %v6214_v18 = vpop.f32.mrb[34].mxu0  ;;  %v548_v0 = vmul.f32 1.442695, %v521_v60  ;;  %v552_v53 = vmul.f32 1.442695, %v523_v49 }
 0x217   : > { %5272 = vmatpush3.bf16.msra.mxu1 %v5269_v29  ;;  %8710 = vst [vmem:[#allocation39_spill] sm:$0xff] %v6214_v18  ;;  %v528_v29 = vmul.f32 1.442695, %v511_v63  ;;  %v6218_v34 = vpop.f32.mrb[35].mxu0  ;;  %v526_v12 = vmul.f32 1.442695, %v510_v26 }
 0x218   : > { %v6198_v6 = vpop.permute.xlu1 %2801  ;;  %8711 = vst [vmem:[#allocation40_spill] sm:$0xff] %v6218_v34  ;;  %v536_v19 = vmul.f32 1.442695, %v515_v35  ;;  %v518_v35 = vsub.f32 %v5770_v61, %v5954_v42  ;;  %v520_v61 = vsub.f32 %v5778_v1, %v5964_v46  ;;  %v522_v46 = vsub.f32 %v5786_v5, %v5974_v50 }
 0x219   : > { %v6200_v8 = vpop.permute.xlu0 %2167  ;;  %5457 = vpow2.f32 %v528_v29  ;;  %v4671_v29 = vld [vmem:[%s8610_s3 + $0x58] sm:$0xff]  ;;  %v525_v5 = vsub.f32 %v5792_v10, %v6060_v17 }
 0x21a   : > { %5459 = vpow2.f32 %v526_v12  ;;  %v542_v43 = vmul.f32 1.442695, %v518_v35  ;;  %v546_v1 = vmul.f32 1.442695, %v520_v61  ;;  %v550_v50 = vmul.f32 1.442695, %v522_v46 }
 0x21b   : > { %5461 = vpow2.f32 %v532_v45  ;;  %v540_v45 = vmul.f32 1.442695, %v517_v51  ;;  %v556_v49 = vmul.f32 1.442695, %v525_v5 }
 0x21c   : > { %v6202_v24 = vpop.permute.xlu1 %2495 }
 0x21d   : > { %v6204_v3 = vpop.permute.xlu0 %2823 }
 0x21e   : > { %8709 = vst [vmem:[#allocation38_spill] sm:$0xff] %v6204_v3  ;;  %v512_v3 = vsub.f32 %v5744_v48, %v5928_v37  ;;  %v4688_v48 = vld [vmem:[%s8610_s3 + $0x60] sm:$0xff]  ;;  %v4689_v37 = vld [vmem:[%s8610_s3 + $0x68] sm:$0xff] }
 0x21f   : > { %v6242_v39 = vpack.c.bf16 %v4689_v37, %v4688_v48 }
 0x220   : > { %v6210_v7 = vpop.permute.xlu1 %3151  ;;  %v530_v63 = vmul.f32 1.442695, %v512_v3  ;;  %v4670_v3 = vld [vmem:[%s8610_s3 + $0x50] sm:$0xff] }
 0x221   : > { %v6212_v27 = vpop.permute.xlu0 %2493  ;;  %5282 = vmatprep.subr.bf16.mxu0 %v6242_v39  ;;  %v6257_v41 = vpack.c.bf16 %v4671_v29, %v4670_v3 }
 0x222   : > { %5463 = vpow2.f32 %v530_v63 }
 0x223   : > { %5465 = vpow2.f32 %v536_v19  ;;  %5278 = vmatprep.subr.bf16.mxu1 %v6257_v41  ;;  %v6264_v63 = vpop.eup %5457  ;;  %v544_v19 = vmul.f32 1.442695, %v519_v57 }
 0x224   : > { %v6222_v44 = vpop.permute.xlu1 %3479  ;;  %5467 = vpow2.f32 %v534_v52  ;;  %v6268_v48 = vpop.eup %5459  ;;  %v561_v42 = vsel %vm461_vm0, %v6264_v63, 0.0 }
 0x225   : > { %v6224_v31 = vpop.permute.xlu0 %3149  ;;  %5469 = vpow2.f32 %v540_v45  ;;  %v6278_v51 = vpop.eup %5461  ;;  %v558_v38 = vsel %vm461_vm0, %v6268_v48, 0.0 }
 0x226   : > { %5471 = vpow2.f32 %v538_v40  ;;  %v567_v45 = vsel %vm461_vm0, %v6278_v51, 0.0 }
 0x227   : > { %5473 = vpow2.f32 %v544_v19 }
 0x228   : > { %v6230_v32 = vpop.permute.xlu1 %3807  ;;  %5475 = vpow2.f32 %v542_v43 }
 0x229   : > { %v6232_v26 = vpop.permute.xlu0 %3477  ;;  %5477 = vpow2.f32 %v548_v0 }
 0x22a   : > { %5479 = vpow2.f32 %v546_v1 }
 0x22b   : > { %5481 = vpow2.f32 %v552_v53 }
 0x22c   : > { %v6246_v12 = vpop.permute.xlu1 %2165  ;;  %v6282_v3 = vpop.eup %5463  ;;  %5483 = vpow2.f32 %v550_v50 }
 0x22d   : > { %v6255_v56 = vpop.permute.xlu0 %3805  ;;  %8713 = vst [vmem:[#allocation42_spill] sm:$0xff] %v6282_v3  ;;  %v6290_v57 = vpop.eup %5465  ;;  %v564_v35 = vsel %vm461_vm0, %v6282_v3, 0.0  ;;  %5485 = vpow2.f32 %v556_v49 }
 0x22e   : > { %8714 = vst [vmem:[#allocation43_spill] sm:$0xff] %v6290_v57  ;;  %v6296_v19 = vpop.eup %5467  ;;  %v573_v60 = vsel %vm461_vm0, %v6290_v57, 0.0  ;;  %v524_v57 = vsub.f32 %v5794_v11, %v6052_v14 }
 0x22f   : > { %8715 = vst [vmem:[#allocation44_spill] sm:$0xff] %v6296_v19  ;;  %v6304_v43 = vpop.eup %5469 }
 0x230   : > { %v6266_v47 = vpop.permute.xlu1 %2821  ;;  %8716 = vst [vmem:[#allocation45_spill] sm:$0xff] %v6304_v43  ;;  %v579_v10 = vsel %vm461_vm0, %v6304_v43, 0.0 }
 0x231   : > { %v6270_v37 = vpop.permute.xlu0 %4133 }
 0x232   : > { %8712 = vst [vmem:[#allocation41_spill] sm:$0xff] %v6270_v37 }
 0x234   : > { %v2480_v52 = vpop.permute.xlu1 %2479  ;;  %562 = vadd.xlane.f32.xlu1 %v561_v42  ;;  %v570_v42 = vsel %vm461_vm0, %v6296_v19, 0.0 }
 0x235   : > { %559 = vadd.xlane.f32.xlu0 %v558_v38  ;;  %v2152_v29 = vpop.permute.xlu0 %2151  ;;  %v6310_v38 = vpop.eup %5471 }
 0x236   : > { %8717 = vst [vmem:[#allocation46_spill] sm:$0xff] %v6310_v38  ;;  %v6316_v17 = vpop.eup %5473  ;;  %v576_v46 = vsel %vm461_vm0, %v6310_v38, 0.0 }
 0x237   : > { %8718 = vst [vmem:[#allocation47_spill] sm:$0xff] %v6316_v17 }
 0x238   : > { %v6292_v40 = vpop.permute.xlu1 %3135  ;;  %568 = vadd.xlane.f32.xlu1 %v567_v45  ;;  %v6322_v45 = vpop.eup %5475 }
 0x239   : > { %565 = vadd.xlane.f32.xlu0 %v564_v35  ;;  %v6298_v4 = vpop.permute.xlu0 %2807  ;;  %8719 = vst [vmem:[#allocation48_spill] sm:$0xff] %v6322_v45  ;;  %v6328_v53 = vpop.eup %5477  ;;  %v582_v50 = vsel %vm461_vm0, %v6322_v45, 0.0 }
 0x23a   : > { %8720 = vst [vmem:[#allocation49_spill] sm:$0xff] %v6328_v53 }
 0x23c   : > { %v6306_v61 = vpop.permute.xlu1 %3463  ;;  %574 = vadd.xlane.f32.xlu1 %v573_v60  ;;  %v6334_v60 = vpop.eup %5479 }
 0x23d   : > { %571 = vadd.xlane.f32.xlu0 %v570_v42  ;;  %v2478_v0 = vpop.permute.xlu0 %2477  ;;  %8722 = vst [vmem:[#allocation51_spill] sm:$0xff] %v6334_v60  ;;  %v6340_v49 = vpop.eup %5481 }
 0x23e   : > { %5064 = vmatprep.mubr.msk.f32.mxu0 %vm1816_vm1, %v2478_v0  ;;  %v591_v0 = vsel %vm461_vm0, %v6328_v53, 0.0  ;;  %8723 = vst [vmem:[#allocation52_spill] sm:$0xff] %v6340_v49  ;;  %v6344_v34 = vpop.eup %5483  ;;  %v6362_v53 = vpop.f32.mrb[36].mxu0 }
 0x23f   : > { %5065 = vmatmul.mubr.msk.f32.gmra.mrb[40].mxu0 %vm1816_vm1, %v2480_v52  ;;  %v585_v52 = vsel %vm461_vm0, %v6316_v17, 0.0  ;;  %8724 = vst [vmem:[#allocation53_spill] sm:$0xff] %v6344_v34  ;;  %v6352_v18 = vpop.eup %5485  ;;  %8727 = vst [vmem:[#allocation56_spill] sm:$0xff] %v6362_v53  ;;  %v6366_v45 = vpop.f32.mrb[37].mxu0 }
 0x240   : > { %v6318_v1 = vpop.permute.xlu1 %3791  ;;  %580 = vadd.xlane.f32.xlu1 %v579_v10  ;;  %8725 = vst [vmem:[#allocation54_spill] sm:$0xff] %v6352_v18  ;;  %8728 = vst [vmem:[#allocation57_spill] sm:$0xff] %v6366_v45 }
 0x241   : > { %577 = vadd.xlane.f32.xlu0 %v576_v46  ;;  %v6324_v35 = vpop.permute.xlu0 %3133  ;;  %v588_v46 = vsel %vm461_vm0, %v6334_v60, 0.0 }
 0x244   : > { %v6330_v5 = vpop.permute.xlu1 %4119  ;;  %586 = vadd.xlane.f32.xlu1 %v585_v52 }
 0x245   : > { %8721 = vst [vmem:[#allocation50_spill] sm:$0xff] %v6330_v5  ;;  %583 = vadd.xlane.f32.xlu0 %v582_v50  ;;  %v6336_v42 = vpop.permute.xlu0 %3461  ;;  %v597_v50 = vsel %vm461_vm0, %v6340_v49, 0.0 }
 0x248   : > { %v2150_v10 = vpop.permute.xlu1 %2149  ;;  %592 = vadd.xlane.f32.xlu1 %v591_v0  ;;  %v594_v0 = vsel %vm461_vm0, %v6344_v34, 0.0 }
 0x249   : > { %589 = vadd.xlane.f32.xlu0 %v588_v46  ;;  %5036 = vmatprep.mubr.msk.f32.mxu1 %vm1816_vm1, %v2150_v10  ;;  %v6347_v52 = vpop.permute.xlu0 %3789  ;;  %v603_v10 = vsel %vm461_vm0, %v6352_v18, 0.0 }
 0x24a   : > { %5037 = vmatmul.mubr.msk.f32.gmra.mrb[12].mxu1 %vm1816_vm1, %v2152_v29 }
 0x24c   : > { %v6354_v37 = vpop.permute.xlu1 %2805  ;;  %598 = vadd.xlane.f32.xlu1 %v597_v50 }
 0x24d   : > { %595 = vadd.xlane.f32.xlu0 %v594_v0  ;;  %v6358_v60 = vpop.permute.xlu0 %4117 }
 0x24e   : > { %8726 = vst [vmem:[#allocation55_spill] sm:$0xff] %v6358_v60 }
 0x250   : > { %v2500_v46 = vpop.permute.xlu1 %2499  ;;  %604 = vadd.xlane.f32.xlu1 %v603_v10 }
 0x251   : > { %v2172_v29 = vpop.permute.xlu0 %2171 }
 0x254   : > { %v6364_v49 = vpop.permute.xlu1 %3155 }
 0x255   : > { %v6368_v17 = vpop.permute.xlu0 %2827 }
 0x258   : > { %v6370_v50 = vpop.permute.xlu1 %3483 }
 0x259   : > { %v2498_v34 = vpop.permute.xlu0 %2497 }
 0x25c   : > { %v2170_v0 = vpop.permute.xlu1 %2169 }
 0x25d   : > { %v6372_v38 = vpop.permute.xlu0 %3153 }
 0x260   : > { %v6374_v43 = vpop.permute.xlu1 %2825 }
 0x261   : > { %4135 = vrot.lane.b32.xlu1 %v5827_v20, %s5568_s13  ;;  %v6378_v10 = vpop.permute.xlu0 %3481 }
 0x263   : > { %3809 = vrot.lane.b32.xlu0 %v5851_v23, %s5567_s12 }
 0x264   : > { %v2484_v53 = vpop.permute.xlu1 %2483 }
 0x265   : > { %3811 = vrot.lane.b32.xlu1 %v5849_v22, %s5567_s12  ;;  %v2156_v45 = vpop.permute.xlu0 %2155  ;;  %v554_v22 = vmul.f32 1.442695, %v524_v57  ;;  %v8742_v57 = vld [vmem:[#allocation25_spill] sm:$0xff] }
 0x267   : > { %4137 = vrot.lane.b32.xlu0 %v5851_v23, %s5568_s13  ;;  %5487 = vpow2.f32 %v554_v22 }
 0x268   : > { %v6386_v18 = vpop.permute.xlu1 %3139 }
 0x269   : > { %v6388_v5 = vpop.permute.xlu0 %2811 }
 0x26c   : > { %v6390_v19 = vpop.permute.xlu1 %3467 }
 0x26d   : > { %v2482_v20 = vpop.permute.xlu0 %2481 }
 0x26e   : > { %5067 = vmatprep.mubr.msk.f32.mxu0 %vm1816_vm1, %v2482_v20 }
 0x26f   : > { %5068 = vmatmul.mubr.msk.f32.gmra.mrb[42].mxu0 %vm1816_vm1, %v2484_v53  ;;  %v8745_v53 = vld [vmem:[#allocation37_spill] sm:$0xff] }
 0x270   : > { %v6396_v60 = vpop.permute.xlu1 %3795  ;;  %5070 = vmatprep.mubr.msk.f32.mxu0 %vm1816_vm1, %v6004_v62 }
 0x271   : > { %v3138_v23 = vpop.permute.xlu0 %3137 }
 0x273   : > { %5071 = vmatmul.mubr.msk.f32.gmra.mrb[44].mxu0 %vm1816_vm1, %v5988_v55 }
 0x274   : > { %v6402_v3 = vpop.permute.xlu1 %4123  ;;  %5073 = vmatprep.mubr.msk.f32.mxu0 %vm1816_vm1, %v6088_v36 }
 0x275   : > { %v6406_v20 = vpop.permute.xlu0 %3465 }
 0x277   : > { %5074 = vmatmul.mubr.msk.f32.gmra.mrb[46].mxu0 %vm1816_vm1, %v6072_v28  ;;  %v6428_v28 = vpop.eup %5487 }
 0x278   : > { %v2154_v11 = vpop.permute.xlu1 %2153  ;;  %5076 = vmatprep.mubr.msk.f32.mxu0 %vm1816_vm1, %v6212_v27 }
 0x279   : > { %5039 = vmatprep.mubr.msk.f32.mxu1 %vm1816_vm1, %v2154_v11  ;;  %v6413_v62 = vpop.permute.xlu0 %3793  ;;  %v8749_v11 = vld [vmem:[#allocation43_spill] sm:$0xff] }
 0x27a   : > { %5040 = vmatmul.mubr.msk.f32.gmra.mrb[14].mxu1 %vm1816_vm1, %v2156_v45 }
 0x27b   : > { %5042 = vmatprep.mubr.msk.f32.mxu1 %vm1816_vm1, %v6038_v9  ;;  %5077 = vmatmul.mubr.msk.f32.gmra.mrb[48].mxu0 %vm1816_vm1, %v6202_v24  ;;  %v4707_v24 = vld [vmem:[%s8610_s3 + $0x78] sm:$0xff] }
 0x27c   : > { %v2810_v55 = vpop.permute.xlu1 %2809  ;;  %5079 = vmatprep.mubr.msk.f32.mxu0 %vm1816_vm1, %v2498_v34 }
 0x27d   : > { %v6421_v22 = vpop.permute.xlu0 %4121 }
 0x27e   : > { %5043 = vmatmul.mubr.msk.f32.gmra.mrb[16].mxu1 %vm1816_vm1, %v5984_v54  ;;  %v600_v54 = vsel %vm461_vm0, %v6428_v28, 0.0 }
 0x27f   : > { %5045 = vmatprep.mubr.msk.f32.mxu1 %vm1816_vm1, %v6128_v30  ;;  %5080 = vmatmul.mubr.msk.f32.gmra.mrb[50].mxu0 %vm1816_vm1, %v2500_v46 }
 0x280   : > { %v2504_v27 = vpop.permute.xlu1 %2503 }
 0x281   : > { %v2176_v14 = vpop.permute.xlu0 %2175 }
 0x282   : > { %5046 = vmatmul.mubr.msk.f32.gmra.mrb[18].mxu1 %vm1816_vm1, %v6064_v21 }
 0x283   : > { %5048 = vmatprep.mubr.msk.f32.mxu1 %vm1816_vm1, %v6246_v12  ;;  %v8739_v12 = vld [vmem:[#allocation6_spill] sm:$0xff] }
 0x284   : > { %v3160_v9 = vpop.permute.xlu1 %3159 }
 0x285   : > { %v2832_v34 = vpop.permute.xlu0 %2831 }
 0x286   : > { %601 = vadd.xlane.f32.xlu0 %v600_v54  ;;  %5049 = vmatmul.mubr.msk.f32.gmra.mrb[20].mxu1 %vm1816_vm1, %v6200_v8  ;;  %v4706_v8 = vld [vmem:[%s8610_s3 + $0x70] sm:$0xff] }
 0x287   : > { %5051 = vmatprep.mubr.msk.f32.mxu1 %vm1816_vm1, %v2170_v0  ;;  %v8748_v0 = vld [vmem:[#allocation55_spill] sm:$0xff] }
 0x288   : > { %v6439_v30 = vpop.permute.xlu1 %3487 }
 0x289   : > { %v2502_v36 = vpop.permute.xlu0 %2501 }
 0x28a   : > { %5052 = vmatmul.mubr.msk.f32.gmra.mrb[22].mxu1 %vm1816_vm1, %v2172_v29  ;;  %5082 = vmatprep.mubr.msk.f32.mxu0 %vm1816_vm1, %v2502_v36  ;;  %v8747_v29 = vld [vmem:[#allocation35_spill] sm:$0xff] }
 0x28b   : > { %5083 = vmatmul.mubr.msk.f32.gmra.mrb[52].mxu0 %vm1816_vm1, %v2504_v27  ;;  %v8750_v27 = vld [vmem:[#allocation44_spill] sm:$0xff] }
 0x28c   : > { %v2174_v21 = vpop.permute.xlu1 %2173  ;;  %5117 = vmatprep.mubr.msk.f32.mxu0 %vm1816_vm1, %v6160_v15  ;;  %v5285_v15 = vpack.c.bf16 %v4707_v24, %v4706_v8  ;;  %v638_v8 = vlaneseq  ;;  %v8752_v24 = vld [vmem:[#allocation45_spill] sm:$0xff] }
 0x28d   : > { %5054 = vmatprep.mubr.msk.f32.mxu1 %vm1816_vm1, %v2174_v21 }
 0x28e   : > { %5055 = vmatmul.mubr.msk.f32.gmra.mrb[24].mxu1 %vm1816_vm1, %v2176_v14 }
 0x28f   : > { %5089 = vmatprep.mubr.msk.f32.mxu1 %vm1816_vm1, %v6198_v6  ;;  %5118 = vmatmul.mubr.msk.f32.vlgmr.msra.gmra.mrb[54].mxu0 %vm1816_vm1, %v6148_v25  ;;  %v8730_v25 = vld [vmem:[#allocation18_spill] sm:$0xff]  ;;  %v8735_v6 = vld [vmem:[#allocation33_spill] sm:$0xff] }
 0x290   : > { %5120 = vmatprep.mubr.msk.f32.mxu0 %vm1816_vm1, %v6324_v35  ;;  %5284 = vmatpush3.bf16.msra.mxu0 %v6242_v39  ;;  %v8738_v39 = vld [vmem:[#allocation7_spill] sm:$0xff] }
 0x292   : > { %5090 = vmatmul.mubr.msk.f32.vlgmr.msra.gmra.mrb[26].mxu1 %vm1816_vm1, %v6144_v16  ;;  %v8729_v16 = vld [vmem:[#allocation31_spill] sm:$0xff] }
 0x293   : > { %5092 = vmatprep.mubr.msk.f32.mxu1 %vm1816_vm1, %v6354_v37  ;;  %5121 = vmatmul.mubr.msk.f32.gmra.mrb[56].mxu0 %vm1816_vm1, %v6292_v40  ;;  %v8741_v37 = vld [vmem:[#allocation5_spill] sm:$0xff]  ;;  %v8743_v40 = vld [vmem:[#allocation24_spill] sm:$0xff] }
 0x294   : > { %5123 = vmatprep.mubr.msk.f32.mxu0 %vm1816_vm1, %v3138_v23  ;;  %5280 = vmatpush3.bf16.msra.mxu1 %v6257_v41  ;;  %v8740_v41 = vld [vmem:[#allocation29_spill] sm:$0xff] }
 0x295   : > { %5286 = vmatprep.subr.bf16.mxu1 %v5285_v15 }
 0x296   : > { %5093 = vmatmul.mubr.msk.f32.gmra.mrb[28].mxu1 %vm1816_vm1, %v6298_v4  ;;  %v8744_v4 = vld [vmem:[#allocation21_spill] sm:$0xff] }
 0x297   : > { %5095 = vmatprep.mubr.msk.f32.mxu1 %vm1816_vm1, %v2810_v55  ;;  %5124 = vmatmul.mubr.msk.f32.gmra.mrb[58].mxu0 %vm1816_vm1, %v6386_v18  ;;  %v8736_v18 = vld [vmem:[#allocation32_spill] sm:$0xff] }
 0x298   : > { %5126 = vmatprep.mubr.msk.f32.mxu0 %vm1816_vm1, %v6014_v2  ;;  %v8731_v2 = vld [vmem:[#allocation15_spill] sm:$0xff] }
 0x29a   : > { %5096 = vmatmul.mubr.msk.f32.gmra.mrb[30].mxu1 %vm1816_vm1, %v6388_v5 }
 0x29b   : > { %5098 = vmatprep.mubr.msk.f32.mxu1 %vm1816_vm1, %v6048_v13  ;;  %5127 = vmatmul.mubr.msk.f32.gmra.mrb[60].mxu0 %vm1816_vm1, %v5998_v59  ;;  %v3158_v59 = vpop.permute.xlu0 %3157  ;;  %v2830_v13 = vpop.permute.xlu1 %2829 }
 0x29c   : > { %5129 = vmatprep.mubr.msk.f32.mxu0 %vm1816_vm1, %v6100_v33  ;;  %v8733_v33 = vld [vmem:[#allocation36_spill] sm:$0xff] }
 0x29e   : > { %5099 = vmatmul.mubr.msk.f32.gmra.mrb[32].mxu1 %vm1816_vm1, %v5994_v58  ;;  %v8732_v58 = vld [vmem:[#allocation38_spill] sm:$0xff] }
 0x29f   : > { %5101 = vmatprep.mubr.msk.f32.mxu1 %vm1816_vm1, %v8729_v16  ;;  %5130 = vmatmul.mubr.msk.f32.gmra.mrb[62].mxu0 %vm1816_vm1, %v8730_v25  ;;  %v8753_v25 = vld [vmem:[#allocation46_spill] sm:$0xff] }
 0x2a0   : > { %5132 = vmatprep.mubr.msk.f32.mxu0 %vm1816_vm1, %v6224_v31  ;;  %v8737_v31 = vld [vmem:[#allocation9_spill] sm:$0xff] }
 0x2a2   : > { %5102 = vmatmul.mubr.msk.f32.gmra.mrb[34].mxu1 %vm1816_vm1, %v8731_v2 }
 0x2a3   : > { %5104 = vmatprep.mubr.msk.f32.mxu1 %vm1816_vm1, %v6266_v47  ;;  %5133 = vmatmul.mubr.msk.f32.gmra.mrb[64].mxu0 %vm1816_vm1, %v6210_v7  ;;  %v8734_v7 = vld [vmem:[#allocation34_spill] sm:$0xff]  ;;  %v3486_v47 = vpop.permute.xlu0 %3485 }
 0x2a4   : > { %5135 = vmatprep.mubr.msk.f32.mxu0 %vm1816_vm1, %v6372_v38 }
 0x2a6   : > { %5105 = vmatmul.mubr.msk.f32.gmra.mrb[36].mxu1 %vm1816_vm1, %v8732_v58 }
 0x2a7   : > { %5107 = vmatprep.mubr.msk.f32.mxu1 %vm1816_vm1, %v6374_v43  ;;  %5136 = vmatmul.mubr.msk.f32.gmra.mrb[66].mxu0 %vm1816_vm1, %v6364_v49 }
 0x2a8   : > { %5138 = vmatprep.mubr.msk.f32.mxu0 %vm1816_vm1, %v3158_v59 }
 0x2aa   : > { %5108 = vmatmul.mubr.msk.f32.gmra.mrb[38].mxu1 %vm1816_vm1, %v6368_v17 }
 0x2ab   : > { %5110 = vmatprep.mubr.msk.f32.mxu1 %vm1816_vm1, %v2830_v13  ;;  %5139 = vmatmul.mubr.msk.f32.gmra.mrb[68].mxu0 %vm1816_vm1, %v3160_v9  ;;  %v8751_v9 = vld [vmem:[#allocation50_spill] sm:$0xff] }
 0x2ac   : > { %5173 = vmatprep.mubr.msk.f32.mxu0 %vm1816_vm1, %v8733_v33  ;;  %v8756_v13 = vld [vmem:[#allocation10_spill] sm:$0xff] }
 0x2ae   : > { %5111 = vmatmul.mubr.msk.f32.gmra.mrb[40].mxu1 %vm1816_vm1, %v2832_v34 }
 0x2af   : > { %5145 = vmatprep.mubr.msk.f32.mxu1 %vm1816_vm1, %v8734_v7  ;;  %5174 = vmatmul.mubr.msk.f32.vlgmr.msra.gmra.mrb[70].mxu0 %vm1816_vm1, %v8735_v6 }
 0x2b0   : > { %5176 = vmatprep.mubr.msk.f32.mxu0 %vm1816_vm1, %v6347_v52  ;;  %v8746_v52 = vld [vmem:[#allocation42_spill] sm:$0xff] }
 0x2b2   : > { %5146 = vmatmul.mubr.msk.f32.vlgmr.msra.gmra.mrb[42].mxu1 %vm1816_vm1, %v8736_v18 }
 0x2b3   : > { %5148 = vmatprep.mubr.msk.f32.mxu1 %vm1816_vm1, %v6336_v42  ;;  %5177 = vmatmul.mubr.msk.f32.gmra.mrb[72].mxu0 %vm1816_vm1, %v6318_v1 }
 0x2b4   : > { %5179 = vmatprep.mubr.msk.f32.mxu0 %vm1816_vm1, %v6413_v62  ;;  %5288 = vmatpush3.bf16.msra.mxu1 %v5285_v15 }
 0x2b6   : > { %5149 = vmatmul.mubr.msk.f32.gmra.mrb[44].mxu1 %vm1816_vm1, %v6306_v61 }
 0x2b7   : > { %5151 = vmatprep.mubr.msk.f32.mxu1 %vm1816_vm1, %v6406_v20  ;;  %5180 = vmatmul.mubr.msk.f32.gmra.mrb[74].mxu0 %vm1816_vm1, %v6396_v60 }
 0x2b8   : > { %5182 = vmatprep.mubr.msk.f32.mxu0 %vm1816_vm1, %v8737_v31  ;;  %v6626_v31 = vshrl.u32 %v638_v8, 7 }
 0x2ba   : > { %5152 = vmatmul.mubr.msk.f32.gmra.mrb[46].mxu1 %vm1816_vm1, %v6390_v19  ;;  %8757 = vst [vmem:[#allocation15_spill] sm:$0xff] %v6626_v31 }
 0x2bb   : > { %5154 = vmatprep.mubr.msk.f32.mxu1 %vm1816_vm1, %v8738_v39  ;;  %5183 = vmatmul.mubr.msk.f32.gmra.mrb[76].mxu0 %vm1816_vm1, %v8739_v12 }
 0x2bc   : > { %5185 = vmatprep.mubr.msk.f32.mxu0 %vm1816_vm1, %v8740_v41  ;;  %v8760_v41 = vld [vmem:[#allocation48_spill] sm:$0xff] }
 0x2be   : > { %5155 = vmatmul.mubr.msk.f32.gmra.mrb[48].mxu1 %vm1816_vm1, %v8741_v37  ;;  %v8762_v37 = vld [vmem:[#allocation8_spill] sm:$0xff] }
 0x2bf   : > { %5157 = vmatprep.mubr.msk.f32.mxu1 %vm1816_vm1, %v8742_v57  ;;  %5186 = vmatmul.mubr.msk.f32.gmra.mrb[78].mxu0 %vm1816_vm1, %v8743_v40  ;;  %v8763_v40 = vld [vmem:[#allocation30_spill] sm:$0xff] }
 0x2c0   : > { %5188 = vmatprep.mubr.msk.f32.mxu0 %vm1816_vm1, %v6255_v56 }
 0x2c1   : > { %v563_v19 = vpop.xlane.xlu1 %562 }
 0x2c2   : > { %5489 = vrcp.f32 %v563_v19  ;;  %5158 = vmatmul.mubr.msk.f32.gmra.mrb[50].mxu1 %vm1816_vm1, %v8744_v4  ;;  %v560_v43 = vpop.xlane.xlu0 %559  ;;  %v1459_v4 = vadd.s32 8, %v6626_v31 }
 0x2c3   : > { %5491 = vrcp.f32 %v560_v43  ;;  %5160 = vmatprep.mubr.msk.f32.mxu1 %vm1816_vm1, %v6232_v26  ;;  %5189 = vmatmul.mubr.msk.f32.gmra.mrb[80].mxu0 %vm1816_vm1, %v6230_v32 }
 0x2c5   : > { %v569_v61 = vpop.xlane.xlu1 %568 }
 0x2c6   : > { %5493 = vrcp.f32 %v569_v61  ;;  %5161 = vmatmul.mubr.msk.f32.gmra.mrb[52].mxu1 %vm1816_vm1, %v6222_v44  ;;  %v566_v38 = vpop.xlane.xlu0 %565 }
 0x2c7   : > { %5495 = vrcp.f32 %v566_v38  ;;  %5163 = vmatprep.mubr.msk.f32.mxu1 %vm1816_vm1, %v6378_v10  ;;  %v6645_v38 = vstv %s4565_s29 }
 0x2c9   : > { %v575_v56 = vpop.xlane.xlu1 %574 }
 0x2ca   : > { %5497 = vrcp.f32 %v575_v56  ;;  %5164 = vmatmul.mubr.msk.f32.gmra.mrb[54].mxu1 %vm1816_vm1, %v6370_v50  ;;  %v572_v17 = vpop.xlane.xlu0 %571 }
 0x2cb   : > { %5499 = vrcp.f32 %v572_v17  ;;  %5166 = vmatprep.mubr.msk.f32.mxu1 %vm1816_vm1, %v3486_v47  ;;  %v8764_v17 = vld [vmem:[#allocation49_spill] sm:$0xff] }
 0x2cc   : > { %v5490_v32 = vpop.eup %5489 }
 0x2cd   : > { %v5492_v26 = vpop.eup %5491  ;;  %v6566_v1 = vmul.f32 %v5490_v32, %v6264_v63  ;;  %v581_v44 = vpop.xlane.xlu1 %580 }
 0x2ce   : > { %v6569_v45 = vmul.f32 %v5492_v26, %v6268_v48  ;;  %5501 = vrcp.f32 %v581_v44  ;;  %5167 = vmatmul.mubr.msk.f32.gmra.mrb[56].mxu1 %vm1816_vm1, %v6439_v30  ;;  %v578_v35 = vpop.xlane.xlu0 %577  ;;  %v1460_v44 = vadd.s32 16, %v6626_v31 }
 0x2cf   : > { %5503 = vrcp.f32 %v578_v35  ;;  %5201 = vmatprep.mubr.msk.f32.mxu1 %vm1816_vm1, %v8745_v53  ;;  %v643_v5 = vsel %vm461_vm0, %v6566_v1, -inf  ;;  %v8766_v35 = vld [vmem:[#allocation51_spill] sm:$0xff] }
 0x2d0   : > { %v5494_v60 = vpop.eup %5493  ;;  %644 = vmax.xlane.f32.xlu1 %v643_v5  ;;  %v640_v63 = vsel %vm461_vm0, %v6569_v45, -inf  ;;  %v8768_v5 = vld [vmem:[#allocation28_spill] sm:$0xff] }
 0x2d1   : > { %v5496_v42 = vpop.eup %5495  ;;  %v6580_v48 = vmul.f32 %v5494_v60, %v6278_v51  ;;  %v587_v49 = vpop.xlane.xlu1 %586  ;;  %641 = vmax.xlane.f32.xlu0 %v640_v63  ;;  %v8769_v60 = vld [vmem:[#allocation41_spill] sm:$0xff] }
 0x2d2   : > { %v6583_v46 = vmul.f32 %v5496_v42, %v8746_v52  ;;  %5505 = vrcp.f32 %v587_v49  ;;  %5202 = vmatmul.mubr.msk.f32.vlgmr.msra.gmra.mrb[58].mxu1 %vm1816_vm1, %v8747_v29  ;;  %v584_v50 = vpop.xlane.xlu0 %583  ;;  %v1476_v42 = vadd.s32 %v6645_v38, %v1459_v4  ;;  %v1475_v49 = vadd.s32 %v6645_v38, %v6626_v31 }
 0x2d3   : > { %5507 = vrcp.f32 %v584_v50  ;;  %5204 = vmatprep.mubr.msk.f32.mxu1 %vm1816_vm1, %v8748_v0  ;;  %v649_v10 = vsel %vm461_vm0, %v6580_v48, -inf  ;;  %v8770_v0 = vld [vmem:[#allocation52_spill] sm:$0xff] }
 0x2d4   : > { %v5498_v23 = vpop.eup %5497  ;;  %650 = vmax.xlane.f32.xlu1 %v649_v10  ;;  %v646_v51 = vsel %vm461_vm0, %v6583_v46, -inf  ;;  %vm1492_vm2 = vcmp.lt.s32.totalorder %v1476_v42, 256  ;;  %vm1491_vm3 = vcmp.lt.s32.totalorder %v1475_v49, 256  ;;  %v1466_v42 = vadd.s32 64, %v6626_v31 }
 0x2d5   : > { %v5500_v20 = vpop.eup %5499  ;;  %v6594_v62 = vmul.f32 %v5498_v23, %v8749_v11  ;;  %v593_v55 = vpop.xlane.xlu1 %592  ;;  %647 = vmax.xlane.f32.xlu0 %v646_v51  ;;  %v1477_v51 = vadd.s32 %v6645_v38, %v1460_v44 }
 0x2d6   : > { %v6597_v14 = vmul.f32 %v5500_v20, %v8750_v27  ;;  %5509 = vrcp.f32 %v593_v55  ;;  %5205 = vmatmul.mubr.msk.f32.gmra.mrb[60].mxu1 %vm1816_vm1, %v8751_v9  ;;  %v590_v34 = vpop.xlane.xlu0 %589  ;;  %v8772_v20 = vld [vmem:[#allocation53_spill] sm:$0xff]  ;;  %v1461_v9 = vadd.s32 24, %v6626_v31 }
 0x2d7   : > { %5511 = vrcp.f32 %v590_v34  ;;  %5207 = vmatprep.mubr.msk.f32.mxu1 %vm1816_vm1, %v6421_v22  ;;  %v655_v54 = vsel %vm461_vm0, %v6594_v62, -inf  ;;  %vm1493_vm4 = vcmp.lt.s32.totalorder %v1477_v51, 256 }
 0x2d8   : > { %v5502_v30 = vpop.eup %5501  ;;  %656 = vmax.xlane.f32.xlu1 %v655_v54  ;;  %v652_v36 = vsel %vm461_vm0, %v6597_v14, -inf }
 0x2d9   : > { %v5504_v21 = vpop.eup %5503  ;;  %v6608_v15 = vmul.f32 %v5502_v30, %v8752_v24  ;;  %v599_v16 = vpop.xlane.xlu1 %598  ;;  %653 = vmax.xlane.f32.xlu0 %v652_v36  ;;  %v8774_v30 = vld [vmem:[#allocation54_spill] sm:$0xff]  ;;  %v1462_v24 = vadd.s32 32, %v6626_v31 }
 0x2da   : > { %v6611_v2 = vmul.f32 %v5504_v21, %v8753_v25  ;;  %5513 = vrcp.f32 %v599_v16  ;;  %v6613_v22 = vpop.f32.mrb[38].mxu0  ;;  %5208 = vmatmul.mubr.msk.f32.gmra.mrb[62].mxu1 %vm1816_vm1, %v6402_v3  ;;  %v596_v58 = vpop.xlane.xlu0 %595  ;;  %v8758_v3 = vld [vmem:[#allocation47_spill] sm:$0xff]  ;;  %v8632_v25 = vmov 0.0  }
 0x2db   : > { %8754 = vst [vmem:[#allocation31_spill] sm:$0xff] %v6613_v22  ;;  %5515 = vrcp.f32 %v596_v58  ;;  %v6617_v59 = vpop.f32.mrb[39].mxu0  ;;  %5210 = vmatprep.mubr.msk.f32.mxu1 %vm1816_vm1, %v8756_v13  ;;  %v661_v33 = vsel %vm461_vm0, %v6608_v15, -inf  ;;  %v6689_v58 = vsel %vm1492_vm2, 1.0, %v8632_v25  ;;  %v6692_v13 = vsel %vm1491_vm3, 1.0, %v8632_v25 }
 0x2dc   : > { %8755 = vst [vmem:[#allocation18_spill] sm:$0xff] %v6617_v59  ;;  %v5506_v7 = vpop.eup %5505  ;;  %662 = vmax.xlane.f32.xlu1 %v661_v33  ;;  %v658_v6 = vsel %vm461_vm0, %v6611_v2, -inf }
 0x2dd   : > { %v5508_v18 = vpop.eup %5507  ;;  %v6629_v39 = vmul.f32 %v5506_v7, %v8758_v3  ;;  %v605_v12 = vpop.xlane.xlu1 %604  ;;  %659 = vmax.xlane.f32.xlu0 %v658_v6  ;;  %v1478_v7 = vadd.s32 %v6645_v38, %v1461_v9  ;;  %v6698_v6 = vsel %vm1493_vm4, 1.0, %v8632_v25  ;;  %v1539_v3 = vmul.f32 %v6692_v13, %v6569_v45 }
 0x2de   : > { %v6633_v47 = vmul.f32 %v5508_v18, %v8760_v41  ;;  %5517 = vrcp.f32 %v605_v12  ;;  %5211 = vmatmul.mubr.msk.f32.gmra.mrb[64].mxu1 %vm1816_vm1, %v8762_v37  ;;  %v3810_v57 = vpop.permute.xlu0 %3809  ;;  %v1540_v18 = vmul.f32 %v6689_v58, %v6566_v1  ;;  %v1479_v12 = vadd.s32 %v6645_v38, %v1462_v24 }
 0x2df   : > { %8759 = vst [vmem:[#allocation38_spill] sm:$0xff] %v6629_v39  ;;  %5191 = vmatprep.mubr.msk.f32.mxu0 %vm1816_vm1, %v3810_v57  ;;  %5213 = vmatprep.mubr.msk.f32.mxu1 %vm1816_vm1, %v8763_v40  ;;  %v667_v19 = vsel %vm461_vm0, %v6629_v39, -inf  ;;  %vm1494_vm5 = vcmp.lt.s32.totalorder %v1478_v7, 256  ;;  %v1541_v41 = vmul.f32 %v6698_v6, %v6583_v46  ;;  %v1463_v37 = vadd.s32 40, %v6626_v31 }
 0x2e0   : > { %8761 = vst [vmem:[#allocation36_spill] sm:$0xff] %v6633_v47  ;;  %v5510_v43 = vpop.eup %5509  ;;  %668 = vmax.xlane.f32.xlu1 %v667_v19  ;;  %v664_v61 = vsel %vm461_vm0, %v6633_v47, -inf  ;;  %v1556_v57 = vsel %vm461_vm0, %v1540_v18, 0.0  ;;  %v1555_v40 = vsel %vm461_vm0, %v1539_v3, 0.0  ;;  %vm1495_vm6 = vcmp.lt.s32.totalorder %v1479_v12, 256 }
 0x2e1   : > { %v5512_v56 = vpop.eup %5511  ;;  %v6648_v32 = vmul.f32 %v5510_v43, %v8764_v17  ;;  %v4136_v26 = vpop.permute.xlu1 %4135  ;;  %665 = vmax.xlane.f32.xlu0 %v664_v61  ;;  %v1464_v19 = vadd.s32 48, %v6626_v31  ;;  %v6712_v4 = vsel %vm1494_vm5, 1.0, %v8632_v25  ;;  %v1558_v43 = vsel %vm461_vm0, %v1541_v41, 0.0 }
 0x2e2   : > { %v6652_v53 = vmul.f32 %v5512_v56, %v8766_v35  ;;  %5214 = vmatmul.mubr.msk.f32.gmra.mrb[66].mxu1 %vm1816_vm1, %v8768_v5  ;;  %v4138_v55 = vpop.permute.xlu0 %4137  ;;  %v1480_v61 = vadd.s32 %v6645_v38, %v1463_v37  ;;  %v1557_v56 = vadd.f32 %v1556_v57, %v1555_v40  ;;  %v6717_v17 = vsel %vm1495_vm6, 1.0, %v8632_v25 }
 0x2e3   : > { %8765 = vst [vmem:[#allocation34_spill] sm:$0xff] %v6648_v32  ;;  %5216 = vmatprep.mubr.msk.f32.mxu1 %vm1816_vm1, %v8769_v60  ;;  %v673_v63 = vsel %vm461_vm0, %v6648_v32, -inf  ;;  %8778 = vst [vmem:[#allocation5_spill] sm:$0xff] %v6717_v17  ;;  %v1481_v44 = vadd.s32 %v6645_v38, %v1464_v19  ;;  %v1543_v5 = vmul.f32 %v6717_v17, %v6597_v14  ;;  %v1465_v60 = vadd.s32 56, %v6626_v31 }
 0x2e4   : > { %8767 = vst [vmem:[#allocation33_spill] sm:$0xff] %v6652_v53  ;;  %v5514_v52 = vpop.eup %5513  ;;  %674 = vmax.xlane.f32.xlu1 %v673_v63  ;;  %v670_v29 = vsel %vm461_vm0, %v6652_v53, -inf  ;;  %v1559_v35 = vadd.f32 %v1558_v43, %v1557_v56  ;;  %vm1496_vm7 = vcmp.lt.s32.totalorder %v1480_v61, 256  ;;  %v1468_v24 = vadd.s32 80, %v6626_v31 }
 0x2e5   : > { %v5516_v50 = vpop.eup %5515  ;;  %v6666_v10 = vmul.f32 %v5514_v52, %v8770_v0  ;;  %v3812_v23 = vpop.permute.xlu1 %3811  ;;  %671 = vmax.xlane.f32.xlu0 %v670_v29  ;;  %vm1497_vm8 = vcmp.lt.s32.totalorder %v1481_v44, 256  ;;  %v6728_v49 = vsel %vm1496_vm7, 1.0, %v8632_v25  ;;  %v1562_v29 = vsel %vm461_vm0, %v1543_v5, 0.0 }
 0x2e6   : > { %v6670_v11 = vmul.f32 %v5516_v50, %v8772_v20  ;;  %5192 = vmatmul.mubr.msk.f32.gmra.mrb[82].mxu0 %vm1816_vm1, %v3812_v23  ;;  %5217 = vmatmul.mubr.msk.f32.gmra.mrb[68].mxu1 %vm1816_vm1, %v4136_v26  ;;  %v1542_v26 = vmul.f32 %v6712_v4, %v6580_v48  ;;  %v1482_v50 = vadd.s32 %v6645_v38, %v1465_v60  ;;  %v6733_v0 = vsel %vm1497_vm8, 1.0, %v8632_v25  ;;  %v8780_v23 = vld [vmem:[#allocation2_spill] sm:$0xff] }
 0x2e7   : > { %8771 = vst [vmem:[#allocation32_spill] sm:$0xff] %v6666_v10  ;;  %5219 = vmatprep.mubr.msk.f32.mxu1 %vm1816_vm1, %v4138_v55  ;;  %v679_v27 = vsel %vm461_vm0, %v6666_v10, -inf  ;;  %8779 = vst [vmem:[#allocation25_spill] sm:$0xff] %v6733_v0  ;;  %v1544_v51 = vmul.f32 %v6728_v49, %v6594_v62  ;;  %v1483_v20 = vadd.s32 %v6645_v38, %v1466_v42  ;;  %v1469_v19 = vadd.s32 88, %v6626_v31 }
 0x2e8   : > { %8773 = vst [vmem:[#allocation9_spill] sm:$0xff] %v6670_v11  ;;  %v5518_v34 = vpop.eup %5517  ;;  %680 = vmax.xlane.f32.xlu1 %v679_v27  ;;  %v676_v54 = vsel %vm461_vm0, %v6670_v11, -inf  ;;  %v1560_v63 = vsel %vm461_vm0, %v1542_v26, 0.0  ;;  %v8781_v27 = vld [vmem:[#allocation4_spill] sm:$0xff]  ;;  %vm1498_vm9 = vcmp.lt.s32.totalorder %v1482_v50, 256  ;;  %v1545_v9 = vmul.f32 %v6733_v0, %v6611_v2 }
 0x2e9   : > { %v6681_v36 = vmul.f32 %v5518_v34, %v8774_v30  ;;  %v6683_v21 = vpop.f32.mrb[10].mxu1  ;;  %677 = vmax.xlane.f32.xlu0 %v676_v54  ;;  %v1561_v52 = vadd.f32 %v1560_v63, %v1559_v35  ;;  %v1467_v34 = vadd.s32 72, %v6626_v31  ;;  %v8782_v54 = vld [vmem:[#allocation3_spill] sm:$0xff]  ;;  %v1564_v30 = vsel %vm461_vm0, %v1544_v51, 0.0 }
 0x2ea   : > { %8776 = vst [vmem:[#allocation6_spill] sm:$0xff] %v6683_v21  ;;  %v6686_v16 = vpop.f32.mrb[11].mxu1  ;;  %vm1499_vm10 = vcmp.lt.s32.totalorder %v1483_v20, 256  ;;  %v1566_v18 = vsel %vm461_vm0, %v1545_v9, 0.0  ;;  %v1485_v37 = vadd.s32 %v6645_v38, %v1468_v24  ;;  %v1470_v61 = vadd.s32 96, %v6626_v31 }
 0x2eb   : > { %8775 = vst [vmem:[#allocation7_spill] sm:$0xff] %v6681_v36  ;;  %8777 = vst [vmem:[#allocation29_spill] sm:$0xff] %v6686_v16  ;;  %v685_v33 = vsel %vm461_vm0, %v6681_v36, -inf  ;;  %v1563_v55 = vadd.f32 %v1562_v29, %v1561_v52  ;;  %v1484_v3 = vadd.s32 %v6645_v38, %v1467_v34  ;;  %v6757_v12 = vsel %vm1499_vm10, 1.0, %v8632_v25 }
 0x2ec   : > { %686 = vmax.xlane.f32.xlu1 %v685_v33  ;;  %v6750_v33 = vsel %vm1498_vm9, 1.0, %v8632_v25  ;;  %8784 = vst [vmem:[#allocation21_spill] sm:$0xff] %v6757_v12  ;;  %v1547_v40 = vmul.f32 %v6757_v12, %v6633_v47  ;;  %vm1501_vm12 = vcmp.lt.s32.totalorder %v1485_v37, 256  ;;  %v1486_v35 = vadd.s32 %v6645_v38, %v1469_v19 }
 0x2ed   : > { %8783 = vst [vmem:[#allocation24_spill] sm:$0xff] %v6750_v33  ;;  %v1565_v7 = vadd.f32 %v1564_v30, %v1563_v55  ;;  %v1546_v41 = vmul.f32 %v6750_v33, %v6608_v15  ;;  %vm1500_vm11 = vcmp.lt.s32.totalorder %v1484_v3, 256  ;;  %v6775_v5 = vsel %vm1501_vm12, 1.0, %v8632_v25 }
 0x2ee   : > { %v6770_v56 = vsel %vm1500_vm11, 1.0, %v8632_v25  ;;  %v1570_v44 = vsel %vm461_vm0, %v1547_v40, 0.0  ;;  %8786 = vst [vmem:[#allocation42_spill] sm:$0xff] %v6775_v5  ;;  %v1487_v63 = vadd.s32 %v6645_v38, %v1470_v61  ;;  %vm1502_vm13 = vcmp.lt.s32.totalorder %v1486_v35, 256 }
 0x2ef   : > { %v1567_v57 = vadd.f32 %v1566_v18, %v1565_v7  ;;  %v1568_v43 = vsel %vm461_vm0, %v1546_v41, 0.0  ;;  %8785 = vst [vmem:[#allocation37_spill] sm:$0xff] %v6770_v56  ;;  %v1548_v60 = vmul.f32 %v6770_v56, %v6629_v39  ;;  %v1549_v52 = vmul.f32 %v6775_v5, %v6652_v53 }
 0x2f0   : > { %v1471_v29 = vadd.s32 104, %v6626_v31  ;;  %vm1503_vm14 = vcmp.lt.s32.totalorder %v1487_v63, 256  ;;  %v6787_v51 = vsel %vm1502_vm13, 1.0, %v8632_v25  ;;  %v1472_v30 = vadd.s32 112, %v6626_v31 }
 0x2f1   : > { %v1569_v26 = vadd.f32 %v1568_v43, %v1567_v57  ;;  %v1572_v50 = vsel %vm461_vm0, %v1548_v60, 0.0  ;;  %8788 = vst [vmem:[#allocation55_spill] sm:$0xff] %v6787_v51  ;;  %v1574_v9 = vsel %vm461_vm0, %v1549_v52, 0.0  ;;  %v6796_v24 = vsel %vm1503_vm14, 1.0, %v8632_v25 }
 0x2f2   : > { %v1488_v34 = vadd.s32 %v6645_v38, %v1471_v29  ;;  %8790 = vst [vmem:[#allocation44_spill] sm:$0xff] %v6796_v24  ;;  %v1550_v7 = vmul.f32 %v6787_v51, %v6648_v32  ;;  %v1551_v3 = vmul.f32 %v6796_v24, %v6670_v11  ;;  %v1489_v37 = vadd.s32 %v6645_v38, %v1472_v30 }
 0x2f3   : > { %v1571_v42 = vadd.f32 %v1570_v44, %v1569_v26  ;;  %vm8653_vm4 = vcmask 57344  }
 0x2f4   : > { %vm1504_vm15 = vcmp.lt.s32.totalorder %v1488_v34, 256  ;;  %v1576_v57 = vsel %vm461_vm0, %v1550_v7, 0.0  ;;  %v1578_v43 = vsel %vm461_vm0, %v1551_v3, 0.0  ;;  %vm1505_vm3 = vcmp.lt.s32.totalorder %v1489_v37, 256 }
 0x2f5   : > { %v1573_v20 = vadd.f32 %v1572_v50, %v1571_v42  ;;  %v6806_v40 = vsel %vm1504_vm15, 1.0, %v8632_v25  ;;  %v6819_v63 = vsel %vm1505_vm3, 1.0, %v8632_v25 }
 0x2f6   : > { %8791 = vst [vmem:[#allocation50_spill] sm:$0xff] %v6806_v40  ;;  %v1552_v26 = vmul.f32 %v6806_v40, %v6666_v10  ;;  %8795 = vst [vmem:[#allocation47_spill] sm:$0xff] %v6819_v63 }
 0x2f7   : > { %v1575_v18 = vadd.f32 %v1574_v9, %v1573_v20 }
 0x2f8   : > { %v1580_v29 = vsel %vm461_vm0, %v1552_v26, 0.0 }
 0x2f9   : > { %v1577_v19 = vadd.f32 %v1576_v57, %v1575_v18 }
 0x2fd   : > { %4139 = vrot.lane.b32.xlu1 %v8780_v23, %s5568_s13 }
 0x2ff   : > { %3813 = vrot.lane.b32.xlu0 %v8781_v27, %s5567_s12 }
 0x301   : > { %3815 = vrot.lane.b32.xlu1 %v8782_v54, %s5567_s12 }
 0x303   : > { %4141 = vrot.lane.b32.xlu0 %v8781_v27, %s5568_s13 }
 0x305   : > { %4143 = vrot.lane.b32.xlu1 %v8782_v54, %s5568_s13  ;;  %v1473_v54 = vadd.s32 120, %v6626_v31 }
 0x307   : > { %v1490_v41 = vadd.s32 %v6645_v38, %v1473_v54  ;;  %v1579_v38 = vadd.f32 %v1578_v43, %v1577_v19 }
 0x309   : > { %vm1506_vm2 = vcmp.lt.s32.totalorder %v1490_v41, 256 }
 0x30a   : > { %v6816_v60 = vsel %vm1506_vm2, 1.0, %v8632_v25 }
 0x30b   : > { %8794 = vst [vmem:[#allocation10_spill] sm:$0xff] %v6816_v60  ;;  %v1554_v50 = vmul.f32 %v6816_v60, %v6681_v36 }
 0x30d   : > { %v1584_v54 = vsel %vm461_vm0, %v1554_v50, 0.0 }
 0x312   : > { %v6784_v23 = vpop.f32.mrb[40].mxu0 }
 0x313   : > { %8787 = vst [vmem:[#allocation35_spill] sm:$0xff] %v6784_v23  ;;  %v6789_v55 = vpop.f32.mrb[41].mxu0  ;;  %v602_v27 = vpop.xlane.xlu0 %601 }
 0x314   : > { %8789 = vst [vmem:[#allocation43_spill] sm:$0xff] %v6789_v55  ;;  %5519 = vrcp.f32 %v602_v27  ;;  %v1581_v27 = vadd.f32 %v1580_v29, %v1579_v38 }
 0x31d   : > { %v6809_v61 = vpop.f32.mrb[12].mxu1 }
 0x31e   : > { %8792 = vst [vmem:[#allocation45_spill] sm:$0xff] %v6809_v61  ;;  %v5520_v44 = vpop.eup %5519  ;;  %v6813_v35 = vpop.f32.mrb[13].mxu1 }
 0x31f   : > { %8793 = vst [vmem:[#allocation46_spill] sm:$0xff] %v6813_v35  ;;  %v6822_v42 = vmul.f32 %v5520_v44, %v6428_v28 }
 0x321   : > { %8796 = vst [vmem:[#allocation48_spill] sm:$0xff] %v6822_v42  ;;  %v682_v52 = vsel %vm461_vm0, %v6822_v42, -inf  ;;  %v1553_v20 = vmul.f32 %v6819_v63, %v6822_v42 }
 0x322   : > { %683 = vmax.xlane.f32.xlu0 %v682_v52 }
 0x323   : > { %v1582_v9 = vsel %vm461_vm0, %v1553_v20, 0.0 }
 0x324   : > { %v1583_v34 = vadd.f32 %v1582_v9, %v1581_v27 }
 0x326   : > { %v1585_v28 = vadd.f32 %v1584_v54, %v1583_v34 }
 0x328   : > { %v1586_v30 = vrot.slane %v1585_v28, 4 }
 0x32a   : > { %v1587_v7 = vadd.f32 %v1586_v30, %v1585_v28 }
 0x32c   : > { %v1588_v18 = vrot.slane %v1587_v7, 2 }
 0x32e   : > { %v1589_v3 = vadd.f32 %v1588_v18, %v1587_v7 }
 0x330   : > { %v1590_v41 = vrot.slane %v1589_v3, 1 }
 0x332   : > { %v1591_v37 = vadd.f32 %v1590_v41, %v1589_v3  ;;  %v6879_v3 = vand.u32 127, %v638_v8 }
 0x334   : > { %1593 = vst.msk [vmem:[%s295_s14] sm:$0x1] %vm8653_vm4, %v1591_v37 }
 0x342   : > { %v6842_v57 = vpop.f32.mrb[42].mxu0 }
 0x343   : > { %8797 = vst [vmem:[#allocation8_spill] sm:$0xff] %v6842_v57  ;;  %v6844_v19 = vpop.f32.mrb[43].mxu0 }
 0x344   : > { %8798 = vst [vmem:[#allocation30_spill] sm:$0xff] %v6844_v19 }
 0x346   : > { %v6846_v43 = vpop.f32.mrb[44].mxu0 }
 0x347   : > { %8799 = vst [vmem:[#allocation49_spill] sm:$0xff] %v6846_v43  ;;  %v6848_v26 = vpop.f32.mrb[45].mxu0 }
 0x348   : > { %8800 = vst [vmem:[#allocation51_spill] sm:$0xff] %v6848_v26 }
 0x34a   : > { %v6850_v44 = vpop.f32.mrb[46].mxu0 }
 0x34b   : > { %8801 = vst [vmem:[#allocation28_spill] sm:$0xff] %v6850_v44  ;;  %v6852_v38 = vpop.f32.mrb[47].mxu0 }
 0x34c   : > { %8802 = vst [vmem:[#allocation41_spill] sm:$0xff] %v6852_v38 }
 0x34d   : > { %v6854_v52 = vpop.f32.mrb[14].mxu1 }
 0x34e   : > { %8803 = vst [vmem:[#allocation52_spill] sm:$0xff] %v6854_v52  ;;  %v6856_v29 = vpop.f32.mrb[15].mxu1  ;;  %v6858_v50 = vpop.f32.mrb[48].mxu0 }
 0x34f   : > { %8804 = vst [vmem:[#allocation53_spill] sm:$0xff] %v6856_v29  ;;  %8805 = vst [vmem:[#allocation54_spill] sm:$0xff] %v6858_v50  ;;  %v6860_v20 = vpop.f32.mrb[49].mxu0 }
 0x350   : > { %8806 = vst [vmem:[#allocation2_spill] sm:$0xff] %v6860_v20 }
 0x351   : > { %v6862_v27 = vpop.f32.mrb[16].mxu1 }
 0x352   : > { %8807 = vst [vmem:[#allocation4_spill] sm:$0xff] %v6862_v27  ;;  %v6864_v9 = vpop.f32.mrb[17].mxu1  ;;  %v6866_v34 = vpop.f32.mrb[50].mxu0 }
 0x353   : > { %8808 = vst [vmem:[#allocation3_spill] sm:$0xff] %v6864_v9  ;;  %8809 = vst [vmem:[#allocation58_spill] sm:$0xff] %v6866_v34  ;;  %v6868_v54 = vpop.f32.mrb[51].mxu0 }
 0x354   : > { %8810 = vst [vmem:[#allocation59_spill] sm:$0xff] %v6868_v54 }
 0x355   : > { %v6870_v28 = vpop.f32.mrb[18].mxu1 }
 0x356   : > { %8811 = vst [vmem:[#allocation60_spill] sm:$0xff] %v6870_v28  ;;  %v6872_v30 = vpop.f32.mrb[19].mxu1 }
 0x357   : > { %8812 = vst [vmem:[#allocation61_spill] sm:$0xff] %v6872_v30 }
 0x359   : > { %v6874_v7 = vpop.f32.mrb[20].mxu1 }
 0x35a   : > { %8813 = vst [vmem:[#allocation62_spill] sm:$0xff] %v6874_v7  ;;  %v6876_v18 = vpop.f32.mrb[21].mxu1 }
 0x35b   : > { %8814 = vst [vmem:[#allocation63_spill] sm:$0xff] %v6876_v18 }
 0x35d   : > { %v645_v41 = vpop.xlane.xlu1 %644  ;;  %v6881_v37 = vpop.f32.mrb[22].mxu1 }
 0x35e   : > { %8815 = vst [vmem:[#allocation64_spill] sm:$0xff] %v6881_v37  ;;  %vm689_vm5 = vcmp.ge.f32.partialorder %v6566_v1, %v645_v41  ;;  %v6884_v25 = vpop.f32.mrb[23].mxu1  ;;  %v6886_v34 = vpop.f32.mrb[52].mxu0 }
 0x35f   : > { %8816 = vst [vmem:[#allocation65_spill] sm:$0xff] %v6884_v25  ;;  %8817 = vst [vmem:[#allocation66_spill] sm:$0xff] %v6886_v34  ;;  %v705_v54 = vsel %vm689_vm5, %v6879_v3, 8  ;;  %v642_v20 = vpop.xlane.xlu0 %641  ;;  %v6889_v50 = vpop.f32.mrb[53].mxu0 }
 0x360   : > { %8818 = vst [vmem:[#allocation67_spill] sm:$0xff] %v6889_v50  ;;  %v6892_v7 = vsel %vm461_vm0, %v705_v54, 2147483647  ;;  %vm688_vm6 = vcmp.ge.f32.partialorder %v6569_v45, %v642_v20  ;;  %v3127_v50 = vsub.s32 4, %v6626_v31 }
 0x361   : > { %v704_v8 = vsel %vm688_vm6, %v6879_v3, 8  ;;  %v651_v18 = vpop.xlane.xlu1 %650  ;;  %v6896_v37 = vpop.f32.mrb[24].mxu1  ;;  %v737_v41 = vshra.s32 %v6892_v7, 16 }
 0x362   : > { %8819 = vst [vmem:[#allocation68_spill] sm:$0xff] %v6896_v37  ;;  %v6900_v25 = vsel %vm461_vm0, %v704_v8, 2147483647  ;;  %vm691_vm7 = vcmp.ge.f32.partialorder %v6580_v48, %v651_v18  ;;  %v6903_v34 = vpop.f32.mrb[25].mxu1  ;;  %v6906_v54 = vpop.f32.mrb[54].mxu0  ;;  %v6917_v8 = vld [vmem:[%s8611_s4] sm:$0xff] }
 0x363   : > { %8820 = vst [vmem:[#allocation69_spill] sm:$0xff] %v6903_v34  ;;  %8821 = vst [vmem:[#allocation70_spill] sm:$0xff] %v6906_v54  ;;  %v707_v20 = vsel %vm691_vm7, %v6879_v3, 8  ;;  %v648_v38 = vpop.xlane.xlu0 %647  ;;  %v6909_v30 = vpop.f32.mrb[55].mxu0  ;;  %v6911_v44 = vcvt.s32.f32 %v737_v41  ;;  %v2799_v34 = vsub.s32 3, %v6626_v31  ;;  %v722_v28 = vshra.s32 %v6900_v25, 16 }
 0x364   : > { %8822 = vst [vmem:[#allocation71_spill] sm:$0xff] %v6909_v30  ;;  %vm690_vm8 = vcmp.ge.f32.partialorder %v6583_v46, %v648_v38  ;;  %v6925_v26 = vsel %vm461_vm0, %v707_v20, 2147483647  ;;  %v6928_v41 = vrot.slane %v6917_v8, %v3127_v50 }
 0x365   : > { %v657_v18 = vpop.xlane.xlu1 %656  ;;  %v6920_v37 = vpop.f32.mrb[26].mxu1  ;;  %740 = vmin.xlane.f32.xlu0 %v6911_v44  ;;  %v706_v43 = vsel %vm690_vm8, %v6879_v3, 8  ;;  %v6936_v29 = vcvt.s32.f32 %v722_v28  ;;  %v6942_v20 = vrot.slane %v6917_v8, %v2799_v34  ;;  %v767_v55 = vshra.s32 %v6925_v26, 16 }
 0x366   : > { %8823 = vst [vmem:[#allocation72_spill] sm:$0xff] %v6920_v37  ;;  %8824 = vst [vmem:[#allocation73_spill] sm:$0xff] %v6928_v41  ;;  %v6930_v38 = vpop.f32.mrb[27].mxu1  ;;  %v6932_v9 = vpop.f32.mrb[56].mxu0  ;;  %vm693_vm9 = vcmp.ge.f32.partialorder %v6594_v62, %v657_v18  ;;  %v6949_v35 = vsel %vm461_vm0, %v706_v43, 2147483647 }
 0x367   : > { %8825 = vst [vmem:[#allocation74_spill] sm:$0xff] %v6930_v38  ;;  %8826 = vst [vmem:[#allocation75_spill] sm:$0xff] %v6932_v9  ;;  %v654_v27 = vpop.xlane.xlu0 %653  ;;  %v3269_v19 = vpop.f32.mrb[57].mxu0  ;;  %v709_v18 = vsel %vm693_vm9, %v6879_v3, 8  ;;  %v6959_v23 = vcvt.s32.f32 %v767_v55  ;;  %v752_v38 = vshra.s32 %v6949_v35, 16 }
 0x368   : > { %v6939_v57 = vadd.f32 %v3269_v19, %v6928_v41  ;;  %8828 = vst [vmem:[#allocation77_spill] sm:$0xff] %v6942_v20  ;;  %vm692_vm10 = vcmp.ge.f32.partialorder %v6597_v14, %v654_v27  ;;  %v6967_v27 = vsel %vm461_vm0, %v709_v18, 2147483647 }
 0x369   : > { %v663_v50 = vpop.xlane.xlu1 %662  ;;  %v6944_v52 = vpop.f32.mrb[28].mxu1  ;;  %725 = vmin.xlane.f32.xlu0 %v6936_v29  ;;  %v6980_v16 = vcvt.s32.f32 %v752_v38 }
 0x36a   : > { %8827 = vst [vmem:[#allocation76_spill] sm:$0xff] %v6939_v57  ;;  %8829 = vst [vmem:[#allocation78_spill] sm:$0xff] %v6944_v52  ;;  %v2941_v28 = vpop.f32.mrb[29].mxu1  ;;  %v5125_v9 = vpop.f32.mrb[58].mxu0  ;;  %vm695_vm11 = vcmp.ge.f32.partialorder %v6608_v15, %v663_v50  ;;  %v797_v50 = vshra.s32 %v6967_v27, 16 }
 0x36b   : > { %v6954_v19 = vadd.f32 %v2941_v28, %v6942_v20  ;;  %v6957_v34 = vadd.f32 %v5125_v9, %v6928_v41  ;;  %v660_v57 = vpop.xlane.xlu0 %659  ;;  %v3279_v52 = vpop.f32.mrb[59].mxu0  ;;  %v708_v28 = vsel %vm692_vm10, %v6879_v3, 8 }
 0x36c   : > { %v6962_v61 = vadd.f32 %v3279_v52, %v6928_v41  ;;  %vm694_vm12 = vcmp.ge.f32.partialorder %v6611_v2, %v660_v57 }
 0x36d   : > { %8830 = vst [vmem:[#allocation79_spill] sm:$0xff] %v6954_v19  ;;  %8831 = vst [vmem:[#allocation80_spill] sm:$0xff] %v6957_v34  ;;  %v669_v43 = vpop.xlane.xlu1 %668  ;;  %v5097_v30 = vpop.f32.mrb[30].mxu1  ;;  %770 = vmin.xlane.f32.xlu0 %v6959_v23 }
 0x36e   : > { %8832 = vst [vmem:[#allocation81_spill] sm:$0xff] %v6962_v61  ;;  %v6971_v9 = vadd.f32 %v5097_v30, %v6942_v20  ;;  %v2951_v34 = vpop.f32.mrb[31].mxu1  ;;  %v5128_v55 = vpop.f32.mrb[60].mxu0  ;;  %vm697_vm13 = vcmp.ge.f32.partialorder %v6629_v39, %v669_v43 }
 0x36f   : > { %v6975_v52 = vadd.f32 %v2951_v34, %v6942_v20  ;;  %v6978_v61 = vadd.f32 %v5128_v55, %v6928_v41  ;;  %v666_v19 = vpop.xlane.xlu0 %665  ;;  %v3289_v59 = vpop.f32.mrb[61].mxu0  ;;  %v6990_v34 = vsel %vm461_vm0, %v708_v28, 2147483647  ;;  %v711_v55 = vsel %vm695_vm11, %v6879_v3, 8 }
 0x370   : > { %8833 = vst [vmem:[#allocation82_spill] sm:$0xff] %v6971_v9  ;;  %v6983_v18 = vadd.f32 %v3289_v59, %v6928_v41  ;;  %v7005_v28 = vcvt.s32.f32 %v797_v50  ;;  %v782_v57 = vshra.s32 %v6990_v34, 16  ;;  %vm696_vm14 = vcmp.ge.f32.partialorder %v6633_v47, %v666_v19 }
 0x371   : > { %8834 = vst [vmem:[#allocation83_spill] sm:$0xff] %v6975_v52  ;;  %8835 = vst [vmem:[#allocation84_spill] sm:$0xff] %v6978_v61  ;;  %v6985_v54 = vpop.xlane.xlu1 %674  ;;  %v5100_v30 = vpop.f32.mrb[32].mxu1  ;;  %755 = vmin.xlane.f32.xlu0 %v6980_v16 }
 0x372   : > { %8836 = vst [vmem:[#allocation85_spill] sm:$0xff] %v6983_v18  ;;  %v6994_v61 = vadd.f32 %v5100_v30, %v6942_v20  ;;  %v2961_v38 = vpop.f32.mrb[33].mxu1  ;;  %v5131_v52 = vpop.f32.mrb[62].mxu0  ;;  %vm699_vm15 = vcmp.ge.f32.partialorder %v6648_v32, %v6985_v54 }
 0x373   : > { %v6998_v59 = vadd.f32 %v2961_v38, %v6942_v20  ;;  %v7001_v18 = vadd.f32 %v5131_v52, %v6928_v41  ;;  %v7003_v9 = vpop.xlane.xlu0 %671  ;;  %v3299_v37 = vpop.f32.mrb[63].mxu0  ;;  %v7015_v38 = vsel %vm461_vm0, %v711_v55, 2147483647  ;;  %v710_v52 = vsel %vm694_vm12, %v6879_v3, 8 }
 0x374   : > { %8837 = vst [vmem:[#allocation86_spill] sm:$0xff] %v6994_v61  ;;  %v7008_v22 = vadd.f32 %v3299_v37, %v6928_v41  ;;  %v7030_v55 = vcvt.s32.f32 %v782_v57  ;;  %v7036_v43 = vsel %vm461_vm0, %v710_v52, 2147483647  ;;  %vm698_vm2 = vcmp.ge.f32.partialorder %v6652_v53, %v7003_v9 }
 0x375   : > { %8838 = vst [vmem:[#allocation87_spill] sm:$0xff] %v6998_v59  ;;  %8839 = vst [vmem:[#allocation88_spill] sm:$0xff] %v7001_v18  ;;  %v7010_v30 = vpop.xlane.xlu1 %680  ;;  %v5103_v61 = vpop.f32.mrb[34].mxu1  ;;  %800 = vmin.xlane.f32.xlu0 %v7005_v28  ;;  %v714_v9 = vsel %vm698_vm2, %v6879_v3, 8 }
 0x376   : > { %8840 = vst [vmem:[#allocation89_spill] sm:$0xff] %v7008_v22  ;;  %v7020_v50 = vadd.f32 %v5103_v61, %v6942_v20  ;;  %v2971_v18 = vpop.f32.mrb[35].mxu1  ;;  %v5134_v37 = vpop.f32.mrb[64].mxu0  ;;  %v713_v61 = vsel %vm697_vm13, %v6879_v3, 8  ;;  %vm701_vm3 = vcmp.ge.f32.partialorder %v6666_v10, %v7010_v30 }
 0x377   : > { %v7023_v22 = vadd.f32 %v2971_v18, %v6942_v20  ;;  %v7026_v59 = vadd.f32 %v5134_v37, %v6928_v41  ;;  %v7028_v21 = vpop.xlane.xlu0 %677  ;;  %v3309_v63 = vpop.f32.mrb[65].mxu0  ;;  %v827_v37 = vshra.s32 %v7015_v38, 16  ;;  %v7056_v5 = vsel %vm461_vm0, %v713_v61, 2147483647 }
 0x378   : > { %8841 = vst [vmem:[#allocation90_spill] sm:$0xff] %v7020_v50  ;;  %v7033_v60 = vadd.f32 %v3309_v63, %v6928_v41  ;;  %v857_v12 = vshra.s32 %v7056_v5, 16 }
 0x379   : > { %8842 = vst [vmem:[#allocation91_spill] sm:$0xff] %v7023_v22  ;;  %8843 = vst [vmem:[#allocation92_spill] sm:$0xff] %v7026_v59  ;;  %v7039_v50 = vpop.xlane.xlu1 %686  ;;  %v5106_v18 = vpop.f32.mrb[36].mxu1  ;;  %785 = vmin.xlane.f32.xlu0 %v7030_v55  ;;  %v7053_v40 = vcvt.s32.f32 %v827_v37 }
 0x37a   : > { %8844 = vst [vmem:[#allocation93_spill] sm:$0xff] %v7033_v60  ;;  %v7045_v57 = vadd.f32 %v5106_v18, %v6942_v20  ;;  %v2981_v59 = vpop.f32.mrb[37].mxu1  ;;  %v5137_v63 = vpop.f32.mrb[66].mxu0  ;;  %v812_v18 = vshra.s32 %v7036_v43, 16  ;;  %vm703_vm5 = vcmp.ge.f32.partialorder %v6681_v36, %v7039_v50 }
 0x37b   : > { %v7048_v60 = vadd.f32 %v2981_v59, %v6942_v20  ;;  %v7051_v52 = vadd.f32 %v5137_v63, %v6928_v41  ;;  %v3814_v22 = vpop.permute.xlu0 %3813  ;;  %v3319_v24 = vpop.f32.mrb[67].mxu0  ;;  %v712_v59 = vsel %vm696_vm14, %v6879_v3, 8  ;;  %v719_v50 = vsel %vm703_vm5, %v6879_v3, 8 }
 0x37c   : > { %8845 = vst [vmem:[#allocation94_spill] sm:$0xff] %v7045_v57  ;;  %v7059_v19 = vadd.f32 %v3319_v24, %v6928_v41  ;;  %5194 = vmatprep.mubr.msk.f32.mxu0 %vm1816_vm1, %v3814_v22  ;;  %v7077_v51 = vcvt.s32.f32 %v812_v18  ;;  %v7081_v54 = vsel %vm461_vm0, %v712_v59, 2147483647 }
 0x37d   : > { %8846 = vst [vmem:[#allocation95_spill] sm:$0xff] %v7048_v60  ;;  %8847 = vst [vmem:[#allocation96_spill] sm:$0xff] %v7051_v52  ;;  %v4140_v60 = vpop.permute.xlu1 %4139  ;;  %v5109_v57 = vpop.f32.mrb[38].mxu1  ;;  %830 = vmin.xlane.f32.xlu0 %v7053_v40 }
 0x37e   : > { %8848 = vst [vmem:[#allocation97_spill] sm:$0xff] %v7059_v19  ;;  %v7068_v37 = vadd.f32 %v5109_v57, %v6942_v20  ;;  %v2991_v61 = vpop.f32.mrb[39].mxu1  ;;  %v5140_v63 = vpop.f32.mrb[68].mxu0  ;;  %5220 = vmatmul.mubr.msk.f32.gmra.mrb[70].mxu1 %vm1816_vm1, %v4140_v60  ;;  %v715_v60 = vsel %vm699_vm15, %v6879_v3, 8 }
 0x37f   : > { %v7072_v22 = vadd.f32 %v2991_v61, %v6942_v20  ;;  %v7075_v24 = vadd.f32 %v5140_v63, %v6928_v41  ;;  %v4142_v19 = vpop.permute.xlu0 %4141  ;;  %v3329_v52 = vpop.f32.mrb[69].mxu0 }
 0x380   : > { %8849 = vst [vmem:[#allocation98_spill] sm:$0xff] %v7068_v37  ;;  %v7084_v57 = vadd.f32 %v3329_v52, %v6928_v41  ;;  %5222 = vmatprep.mubr.msk.f32.mxu1 %vm1816_vm1, %v4142_v19  ;;  %v7106_v37 = vsel %vm461_vm0, %v715_v60, 2147483647 }
 0x381   : > { %8850 = vst [vmem:[#allocation99_spill] sm:$0xff] %v7072_v22  ;;  %8851 = vst [vmem:[#allocation100_spill] sm:$0xff] %v7075_v24  ;;  %v3816_v61 = vpop.permute.xlu1 %3815  ;;  %v5112_v22 = vpop.f32.mrb[40].mxu1  ;;  %815 = vmin.xlane.f32.xlu0 %v7077_v51  ;;  %v842_v24 = vshra.s32 %v7081_v54, 16 }
 0x382   : > { %8852 = vst [vmem:[#allocation101_spill] sm:$0xff] %v7084_v57  ;;  %v7092_v18 = vadd.f32 %v5112_v22, %v6942_v20  ;;  %v3001_v63 = vpop.f32.mrb[41].mxu1  ;;  %v7094_v59 = vpop.f32.mrb[70].mxu0  ;;  %5195 = vmatmul.mubr.msk.f32.gmra.mrb[84].mxu0 %vm1816_vm1, %v3816_v61  ;;  %v7102_v57 = vcvt.s32.f32 %v857_v12 }
 0x383   : > { %8854 = vst [vmem:[#allocation103_spill] sm:$0xff] %v7094_v59  ;;  %v7098_v52 = vadd.f32 %v3001_v63, %v6942_v20  ;;  %v7100_v19 = vpop.f32.mrb[71].mxu0  ;;  %v7122_v63 = vcvt.s32.f32 %v842_v24 }
 0x384   : > { %8853 = vst [vmem:[#allocation102_spill] sm:$0xff] %v7092_v18  ;;  %8856 = vst [vmem:[#allocation105_spill] sm:$0xff] %v7100_v19  ;;  %v3455_v18 = vsub.s32 5, %v6626_v31  ;;  %v7126_v19 = vsel %vm461_vm0, %v714_v9, 2147483647 }
 0x385   : > { %8855 = vst [vmem:[#allocation104_spill] sm:$0xff] %v7098_v52  ;;  %v4144_v22 = vpop.permute.xlu1 %4143  ;;  %v7110_v59 = vpop.f32.mrb[42].mxu1  ;;  %860 = vmin.xlane.f32.xlu0 %v7102_v57  ;;  %v887_v52 = vshra.s32 %v7106_v37, 16 }
 0x386   : > { %8857 = vst [vmem:[#allocation106_spill] sm:$0xff] %v7110_v59  ;;  %v7115_v61 = vpop.f32.mrb[43].mxu1  ;;  %v7117_v12 = vpop.f32.mrb[72].mxu0  ;;  %5223 = vmatmul.mubr.msk.f32.gmra.mrb[72].mxu1 %vm1816_vm1, %v4144_v22  ;;  %v717_v59 = vsel %vm701_vm3, %v6879_v3, 8  ;;  %v7130_v41 = vrot.slane %v6917_v8, %v3455_v18  ;;  %vm700_vm1 = vcmp.ge.f32.partialorder %v6670_v11, %v7028_v21  ;;  %v872_v8 = vshra.s32 %v7126_v19, 16 }
 0x387   : > { %8858 = vst [vmem:[#allocation107_spill] sm:$0xff] %v7115_v61  ;;  %8859 = vst [vmem:[#allocation108_spill] sm:$0xff] %v7117_v12  ;;  %v7120_v60 = vpop.f32.mrb[73].mxu0  ;;  %v7144_v12 = vcvt.s32.f32 %v887_v52  ;;  %v7148_v18 = vsel %vm461_vm0, %v717_v59, 2147483647 }
 0x388   : > { %8860 = vst [vmem:[#allocation109_spill] sm:$0xff] %v7120_v60  ;;  %8861 = vst [vmem:[#allocation110_spill] sm:$0xff] %v7130_v41  ;;  %v7164_v59 = vcvt.s32.f32 %v872_v8 }
 0x389   : > { %v7132_v30 = vpop.f32.mrb[44].mxu1  ;;  %845 = vmin.xlane.f32.xlu0 %v7122_v63 }
 0x38a   : > { %8862 = vst [vmem:[#allocation111_spill] sm:$0xff] %v7132_v30  ;;  %v3597_v22 = vpop.f32.mrb[45].mxu1  ;;  %v7137_v24 = vpop.f32.mrb[74].mxu0  ;;  %v716_v30 = vsel %vm700_vm1, %v6879_v3, 8 }
 0x38b   : > { %8863 = vst [vmem:[#allocation112_spill] sm:$0xff] %v7137_v24  ;;  %v7140_v60 = vadd.f32 %v3597_v22, %v7130_v41  ;;  %v7142_v9 = vpop.f32.mrb[75].mxu0  ;;  %v7168_v20 = vsel %vm461_vm0, %v716_v30, 2147483647 }
 0x38c   : > { %8865 = vst [vmem:[#allocation114_spill] sm:$0xff] %v7142_v9  ;;  %v902_v30 = vshra.s32 %v7168_v20, 16 }
 0x38d   : > { %8864 = vst [vmem:[#allocation113_spill] sm:$0xff] %v7140_v60  ;;  %v5153_v61 = vpop.f32.mrb[46].mxu1  ;;  %890 = vmin.xlane.f32.xlu0 %v7144_v12  ;;  %v917_v60 = vshra.s32 %v7148_v18, 16 }
 0x38e   : > { %v7155_v21 = vadd.f32 %v5153_v61, %v7130_v41  ;;  %v3607_v22 = vpop.f32.mrb[47].mxu1  ;;  %v7157_v9 = vpop.f32.mrb[76].mxu0 }
 0x38f   : > { %8867 = vst [vmem:[#allocation116_spill] sm:$0xff] %v7157_v9  ;;  %v7160_v52 = vadd.f32 %v3607_v22, %v7130_v41  ;;  %v7162_v24 = vpop.f32.mrb[77].mxu0 }
 0x390   : > { %8866 = vst [vmem:[#allocation115_spill] sm:$0xff] %v7155_v21  ;;  %8869 = vst [vmem:[#allocation118_spill] sm:$0xff] %v7162_v24  ;;  %v7186_v21 = vsel %vm461_vm0, %v719_v50, 2147483647 }
 0x391   : > { %8868 = vst [vmem:[#allocation117_spill] sm:$0xff] %v7160_v52  ;;  %v5156_v31 = vpop.f32.mrb[48].mxu1  ;;  %875 = vmin.xlane.f32.xlu0 %v7164_v59  ;;  %v7182_v52 = vcvt.s32.f32 %v917_v60  ;;  %v7199_v60 = vcvt.s32.f32 %v902_v30 }
 0x392   : > { %v7173_v61 = vadd.f32 %v5156_v31, %v7130_v41  ;;  %v3617_v9 = vpop.f32.mrb[49].mxu1  ;;  %v7175_v22 = vpop.f32.mrb[78].mxu0 }
 0x393   : > { %8871 = vst [vmem:[#allocation120_spill] sm:$0xff] %v7175_v22  ;;  %v7178_v24 = vadd.f32 %v3617_v9, %v7130_v41  ;;  %v7180_v8 = vpop.f32.mrb[79].mxu0 }
 0x394   : > { %8870 = vst [vmem:[#allocation119_spill] sm:$0xff] %v7173_v61  ;;  %8873 = vst [vmem:[#allocation122_spill] sm:$0xff] %v7180_v8 }
 0x395   : > { %8872 = vst [vmem:[#allocation121_spill] sm:$0xff] %v7178_v24  ;;  %v5159_v56 = vpop.f32.mrb[50].mxu1  ;;  %920 = vmin.xlane.f32.xlu0 %v7182_v52  ;;  %v947_v24 = vshra.s32 %v7186_v21, 16 }
 0x396   : > { %v7190_v31 = vadd.f32 %v5159_v56, %v7130_v41  ;;  %v3627_v61 = vpop.f32.mrb[51].mxu1  ;;  %v7192_v22 = vpop.f32.mrb[80].mxu0 }
 0x397   : > { %8875 = vst [vmem:[#allocation124_spill] sm:$0xff] %v7192_v22  ;;  %v7195_v9 = vadd.f32 %v3627_v61, %v7130_v41  ;;  %v7197_v8 = vpop.f32.mrb[81].mxu0  ;;  %v7209_v22 = vcvt.s32.f32 %v947_v24 }
 0x398   : > { %8874 = vst [vmem:[#allocation123_spill] sm:$0xff] %v7190_v31  ;;  %8877 = vst [vmem:[#allocation126_spill] sm:$0xff] %v7197_v8 }
 0x399   : > { %8876 = vst [vmem:[#allocation125_spill] sm:$0xff] %v7195_v9  ;;  %v5162_v50 = vpop.f32.mrb[52].mxu1  ;;  %905 = vmin.xlane.f32.xlu0 %v7199_v60 }
 0x39a   : > { %v7204_v0 = vadd.f32 %v5162_v50, %v7130_v41  ;;  %v3637_v56 = vpop.f32.mrb[53].mxu1 }
 0x39b   : > { %v7207_v31 = vadd.f32 %v3637_v56, %v7130_v41 }
 0x39c   : > { %8878 = vst [vmem:[#allocation127_spill] sm:$0xff] %v7204_v0 }
 0x39d   : > { %8879 = vst [vmem:[#allocation128_spill] sm:$0xff] %v7207_v31  ;;  %v5165_v61 = vpop.f32.mrb[54].mxu1  ;;  %950 = vmin.xlane.f32.xlu0 %v7209_v22 }
 0x39e   : > { %v7213_v30 = vadd.f32 %v5165_v61, %v7130_v41  ;;  %v3647_v8 = vpop.f32.mrb[55].mxu1 }
 0x39f   : > { %v7216_v9 = vadd.f32 %v3647_v8, %v7130_v41 }
 0x3a0   : > { %8880 = vst [vmem:[#allocation129_spill] sm:$0xff] %v7213_v30 }
 0x3a1   : > { %8881 = vst [vmem:[#allocation130_spill] sm:$0xff] %v7216_v9  ;;  %v5168_v33 = vpop.f32.mrb[56].mxu1 }
 0x3a2   : > { %v7219_v50 = vadd.f32 %v5168_v33, %v7130_v41  ;;  %v3657_v0 = vpop.f32.mrb[57].mxu1 }
 0x3a3   : > { %v7222_v56 = vadd.f32 %v3657_v0, %v7130_v41 }
 0x3a4   : > { %8882 = vst [vmem:[#allocation131_spill] sm:$0xff] %v7219_v50 }
 0x3a5   : > { %8883 = vst [vmem:[#allocation132_spill] sm:$0xff] %v7222_v56  ;;  %v7224_v24 = vpop.f32.mrb[58].mxu1 }
 0x3a6   : > { %8884 = vst [vmem:[#allocation133_spill] sm:$0xff] %v7224_v24  ;;  %v7226_v31 = vpop.f32.mrb[59].mxu1 }
 0x3a7   : > { %8885 = vst [vmem:[#allocation134_spill] sm:$0xff] %v7226_v31 }
 0x3a9   : > { %v7228_v17 = vpop.f32.mrb[60].mxu1 }
 0x3aa   : > { %8886 = vst [vmem:[#allocation135_spill] sm:$0xff] %v7228_v17  ;;  %v7230_v61 = vpop.f32.mrb[61].mxu1 }
 0x3ab   : > { %8887 = vst [vmem:[#allocation136_spill] sm:$0xff] %v7230_v61 }
 0x3ad   : > { %v7232_v30 = vpop.f32.mrb[62].mxu1 }
 0x3ae   : > { %8888 = vst [vmem:[#allocation137_spill] sm:$0xff] %v7232_v30  ;;  %v7234_v8 = vpop.f32.mrb[63].mxu1 }
 0x3af   : > { %8889 = vst [vmem:[#allocation138_spill] sm:$0xff] %v7234_v8  ;;  %v684_v9 = vpop.xlane.xlu0 %683 }
 0x3b0   : > { %vm702_vm6 = vcmp.ge.f32.partialorder %v6822_v42, %v684_v9 }
 0x3b1   : > { %v718_v33 = vsel %vm702_vm6, %v6879_v3, 8  ;;  %v7238_v50 = vpop.f32.mrb[64].mxu1 }
 0x3b2   : > { %8890 = vst [vmem:[#allocation139_spill] sm:$0xff] %v7238_v50  ;;  %v7241_v0 = vsel %vm461_vm0, %v718_v33, 2147483647  ;;  %v7243_v56 = vpop.f32.mrb[65].mxu1 }
 0x3b3   : > { %8891 = vst [vmem:[#allocation140_spill] sm:$0xff] %v7243_v56  ;;  %v932_v17 = vshra.s32 %v7241_v0, 16  ;;  %v736_v56 = vand.u32 65535, %v6892_v7 }
 0x3b5   : > { %v7246_v31 = vpop.f32.mrb[66].mxu1  ;;  %v7248_v61 = vcvt.s32.f32 %v932_v17  ;;  %v738_v41 = vcvt.s32.f32 %v736_v56  ;;  %v721_v17 = vand.u32 65535, %v6900_v25  ;;  %v751_v25 = vand.u32 65535, %v6949_v35 }
 0x3b6   : > { %8892 = vst [vmem:[#allocation141_spill] sm:$0xff] %v7246_v31  ;;  %v7250_v30 = vpop.f32.mrb[67].mxu1  ;;  %v781_v35 = vand.u32 65535, %v6990_v34  ;;  %v811_v34 = vand.u32 65535, %v7036_v43  ;;  %v841_v43 = vand.u32 65535, %v7081_v54  ;;  %v871_v54 = vand.u32 65535, %v7126_v19 }
 0x3b7   : > { %8893 = vst [vmem:[#allocation142_spill] sm:$0xff] %v7250_v30  ;;  %935 = vmin.xlane.f32.xlu0 %v7248_v61  ;;  %v901_v19 = vand.u32 65535, %v7168_v20 }
 0x3b9   : > { %v7253_v9 = vpop.f32.mrb[82].mxu0  ;;  %v7255_v8 = vpop.f32.mrb[68].mxu1 }
 0x3ba   : > { %8894 = vst [vmem:[#allocation143_spill] sm:$0xff] %v7253_v9  ;;  %8895 = vst [vmem:[#allocation144_spill] sm:$0xff] %v7255_v8  ;;  %v7257_v50 = vpop.f32.mrb[83].mxu0  ;;  %v7259_v33 = vpop.f32.mrb[69].mxu1  ;;  %v723_v9 = vcvt.s32.f32 %v721_v17  ;;  %v766_v8 = vand.u32 65535, %v6925_v26  ;;  %v796_v26 = vand.u32 65535, %v6967_v27  ;;  %v783_v17 = vcvt.s32.f32 %v781_v35 }
 0x3bb   : > { %8896 = vst [vmem:[#allocation145_spill] sm:$0xff] %v7257_v50  ;;  %8897 = vst [vmem:[#allocation146_spill] sm:$0xff] %v7259_v33  ;;  %v826_v27 = vand.u32 65535, %v7015_v38  ;;  %v856_v38 = vand.u32 65535, %v7056_v5  ;;  %v843_v35 = vcvt.s32.f32 %v841_v43  ;;  %v886_v5 = vand.u32 65535, %v7106_v37 }
 0x3bc   : > { %v768_v56 = vcvt.s32.f32 %v766_v8  ;;  %v798_v8 = vcvt.s32.f32 %v796_v26  ;;  %v916_v37 = vand.u32 65535, %v7148_v18  ;;  %v946_v18 = vand.u32 65535, %v7186_v21 }
 0x3f2   : > { %v7262_v24 = vpop.xlane.xlu0 %740 }
 0x3f3   : > { %vm742_vm7 = vcmp.eq.f32.partialorder %v6911_v44, %v7262_v24 }
 0x3f4   : > { %v743_v30 = vsel %vm742_vm7, %v738_v41, inf }
 0x3f5   : > { %744 = vmin.xlane.f32.xlu1 %v743_v30  ;;  %v753_v30 = vcvt.s32.f32 %v751_v25  ;;  %v828_v25 = vcvt.s32.f32 %v826_v27 }
 0x3f6   : > { %v7267_v31 = vpop.xlane.xlu0 %725 }
 0x3f7   : > { %vm727_vm8 = vcmp.eq.f32.partialorder %v6936_v29, %v7267_v31 }
 0x3f8   : > { %v728_v50 = vsel %vm727_vm8, %v723_v9, inf }
 0x3f9   : > { %729 = vmin.xlane.f32.xlu1 %v728_v50 }
 0x3fa   : > { %v7272_v7 = vpop.xlane.xlu0 %770 }
 0x3fb   : > { %vm772_vm9 = vcmp.eq.f32.partialorder %v6959_v23, %v7272_v7 }
 0x3fc   : > { %v773_v44 = vsel %vm772_vm9, %v768_v56, inf }
 0x3fd   : > { %774 = vmin.xlane.f32.xlu1 %v773_v44 }
 0x3fe   : > { %v7277_v41 = vpop.xlane.xlu0 %755 }
 0x3ff   : > { %vm757_vm10 = vcmp.eq.f32.partialorder %v6980_v16, %v7277_v41 }
 0x400   : > { %v758_v29 = vsel %vm757_vm10, %v753_v30, inf  ;;  %v813_v30 = vcvt.s32.f32 %v811_v34  ;;  %v918_v34 = vcvt.s32.f32 %v916_v37 }
 0x401   : > { %759 = vmin.xlane.f32.xlu1 %v758_v29  ;;  %v858_v29 = vcvt.s32.f32 %v856_v38 }
 0x402   : > { %v7282_v50 = vpop.xlane.xlu0 %800 }
 0x403   : > { %vm802_vm11 = vcmp.eq.f32.partialorder %v7005_v28, %v7282_v50 }
 0x404   : > { %v803_v23 = vsel %vm802_vm11, %v798_v8, inf }
 0x405   : > { %804 = vmin.xlane.f32.xlu1 %v803_v23 }
 0x406   : > { %v7287_v9 = vpop.xlane.xlu0 %785 }
 0x407   : > { %vm787_vm12 = vcmp.eq.f32.partialorder %v7030_v55, %v7287_v9 }
 0x408   : > { %v788_v16 = vsel %vm787_vm12, %v783_v17, inf  ;;  %v888_v17 = vcvt.s32.f32 %v886_v5 }
 0x409   : > { %789 = vmin.xlane.f32.xlu1 %v788_v16  ;;  %v873_v16 = vcvt.s32.f32 %v871_v54 }
 0x40a   : > { %v7292_v56 = vpop.xlane.xlu0 %830 }
 0x40b   : > { %vm832_vm13 = vcmp.eq.f32.partialorder %v7053_v40, %v7292_v56 }
 0x40c   : > { %v833_v28 = vsel %vm832_vm13, %v828_v25, inf }
 0x40d   : > { %834 = vmin.xlane.f32.xlu1 %v833_v28 }
 0x40e   : > { %v7297_v44 = vpop.xlane.xlu0 %815 }
 0x40f   : > { %vm817_vm14 = vcmp.eq.f32.partialorder %v7077_v51, %v7297_v44 }
 0x410   : > { %v818_v55 = vsel %vm817_vm14, %v813_v30, inf  ;;  %v903_v30 = vcvt.s32.f32 %v901_v19 }
 0x411   : > { %819 = vmin.xlane.f32.xlu1 %v818_v55  ;;  %v948_v55 = vcvt.s32.f32 %v946_v18 }
 0x412   : > { %v7302_v26 = vpop.xlane.xlu0 %860 }
 0x413   : > { %vm862_vm15 = vcmp.eq.f32.partialorder %v7102_v57, %v7302_v26 }
 0x414   : > { %v863_v40 = vsel %vm862_vm15, %v858_v29, inf }
 0x415   : > { %864 = vmin.xlane.f32.xlu1 %v863_v40 }
 0x416   : > { %v7307_v8 = vpop.xlane.xlu0 %845 }
 0x417   : > { %vm847_vm2 = vcmp.eq.f32.partialorder %v7122_v63, %v7307_v8 }
 0x418   : > { %v848_v51 = vsel %vm847_vm2, %v843_v35, inf }
 0x419   : > { %849 = vmin.xlane.f32.xlu1 %v848_v51 }
 0x41a   : > { %v7312_v23 = vpop.xlane.xlu0 %890 }
 0x41b   : > { %vm892_vm3 = vcmp.eq.f32.partialorder %v7144_v12, %v7312_v23 }
 0x41c   : > { %v893_v57 = vsel %vm892_vm3, %v888_v17, inf }
 0x41d   : > { %894 = vmin.xlane.f32.xlu1 %v893_v57 }
 0x41e   : > { %v7317_v27 = vpop.xlane.xlu0 %875 }
 0x41f   : > { %vm877_vm1 = vcmp.eq.f32.partialorder %v7164_v59, %v7317_v27 }
 0x420   : > { %v878_v63 = vsel %vm877_vm1, %v873_v16, inf }
 0x421   : > { %879 = vmin.xlane.f32.xlu1 %v878_v63 }
 0x422   : > { %v7322_v25 = vpop.xlane.xlu0 %920 }
 0x423   : > { %vm922_vm5 = vcmp.eq.f32.partialorder %v7182_v52, %v7322_v25  ;;  %v931_v52 = vand.u32 65535, %v7241_v0  ;;  %v747_v0 = vcvt.f32.s32 %v7262_v24 }
 0x424   : > { %v923_v12 = vsel %vm922_vm5, %v918_v34, inf  ;;  %v777_v34 = vcvt.f32.s32 %v7272_v7  ;;  %v762_v7 = vcvt.f32.s32 %v7277_v41  ;;  %v807_v41 = vcvt.f32.s32 %v7282_v50 }
 0x425   : > { %924 = vmin.xlane.f32.xlu1 %v923_v12  ;;  %v933_v43 = vcvt.s32.f32 %v931_v52  ;;  %v748_v54 = vshll.u32 %v747_v0, 16  ;;  %v792_v50 = vcvt.f32.s32 %v7287_v9  ;;  %v837_v9 = vcvt.f32.s32 %v7292_v56 }
 0x426   : > { %v7327_v28 = vpop.xlane.xlu0 %905  ;;  %v778_v18 = vshll.u32 %v777_v34, 16  ;;  %v822_v56 = vcvt.f32.s32 %v7297_v44  ;;  %v867_v44 = vcvt.f32.s32 %v7302_v26  ;;  %v852_v26 = vcvt.f32.s32 %v7307_v8 }
 0x427   : > { %vm907_vm6 = vcmp.eq.f32.partialorder %v7199_v60, %v7327_v28  ;;  %v897_v8 = vcvt.f32.s32 %v7312_v23  ;;  %v882_v23 = vcvt.f32.s32 %v7317_v27  ;;  %v927_v27 = vcvt.f32.s32 %v7322_v25 }
 0x428   : > { %v908_v59 = vsel %vm907_vm6, %v903_v30, inf  ;;  %v912_v25 = vcvt.f32.s32 %v7327_v28 }
 0x429   : > { %909 = vmin.xlane.f32.xlu1 %v908_v59 }
 0x42a   : > { %v7332_v38 = vpop.xlane.xlu0 %950 }
 0x42b   : > { %vm952_vm7 = vcmp.eq.f32.partialorder %v7209_v22, %v7332_v38  ;;  %v957_v28 = vcvt.f32.s32 %v7332_v38 }
 0x42c   : > { %v953_v20 = vsel %vm952_vm7, %v948_v55, inf }
 0x42d   : > { %954 = vmin.xlane.f32.xlu1 %v953_v20 }
 0x444   : > { %v7337_v29 = vpop.xlane.xlu0 %935 }
 0x445   : > { %vm937_vm8 = vcmp.eq.f32.partialorder %v7248_v61, %v7337_v29  ;;  %v732_v61 = vcvt.f32.s32 %v7267_v31 }
 0x446   : > { %v938_v21 = vsel %vm937_vm8, %v933_v43, inf }
 0x447   : > { %939 = vmin.xlane.f32.xlu1 %v938_v21  ;;  %v733_v63 = vshll.u32 %v732_v61, 16  ;;  %v763_v21 = vshll.u32 %v762_v7, 16 }
 0x451   : > { %v7341_v60 = vpop.f32.mrb[70].mxu1 }
 0x452   : > { %8898 = vst [vmem:[#allocation147_spill] sm:$0xff] %v7341_v60  ;;  %v7343_v40 = vpop.f32.mrb[71].mxu1 }
 0x453   : > { %8899 = vst [vmem:[#allocation148_spill] sm:$0xff] %v7343_v40 }
 0x455   : > { %v7345_v35 = vpop.f32.mrb[84].mxu0 }
 0x456   : > { %8900 = vst [vmem:[#allocation149_spill] sm:$0xff] %v7345_v35  ;;  %v7347_v5 = vpop.f32.mrb[85].mxu0 }
 0x457   : > { %8901 = vst [vmem:[#allocation150_spill] sm:$0xff] %v7347_v5 }
 0x459   : > { %v7349_v22 = vpop.f32.mrb[72].mxu1 }
 0x45a   : > { %8902 = vst [vmem:[#allocation151_spill] sm:$0xff] %v7349_v22  ;;  %v7351_v51 = vpop.f32.mrb[73].mxu1 }
 0x45b   : > { %8903 = vst [vmem:[#allocation152_spill] sm:$0xff] %v7351_v51 }
 0x482   : > { %v745_v17 = vpop.xlane.xlu1 %744 }
 0x483   : > { %v746_v57 = vcvt.f32.s32 %v745_v17 }
 0x485   : > { %v7355_v16 = vadd.s32 %v748_v54, %v746_v57 }
 0x486   : > { %v730_v37 = vpop.xlane.xlu1 %729 }
 0x487   : > { %v731_v19 = vcvt.f32.s32 %v730_v37  ;;  %vm961_vm9 = vcmp.eq.s32.totalorder %v6879_v3, %v7355_v16  ;;  %v808_v37 = vshll.u32 %v807_v41, 16  ;;  %v838_v41 = vshll.u32 %v837_v9, 16 }
 0x488   : > { %v7364_v24 = vsel %vm961_vm9, -1.0, %v6566_v1 }
 0x489   : > { %v7366_v12 = vadd.s32 %v733_v63, %v731_v19  ;;  %v1011_v31 = vsel %vm461_vm0, %v7364_v24, -inf }
 0x48a   : > { %v775_v30 = vpop.xlane.xlu1 %774  ;;  %1012 = vmax.xlane.f32.xlu1 %v1011_v31 }
 0x48b   : > { %v776_v59 = vcvt.f32.s32 %v775_v30  ;;  %vm960_vm10 = vcmp.eq.s32.totalorder %v6879_v3, %v7366_v12 }
 0x48c   : > { %v7377_v55 = vsel %vm960_vm10, -1.0, %v6569_v45 }
 0x48d   : > { %v7379_v20 = vadd.s32 %v778_v18, %v776_v59  ;;  %v1008_v52 = vsel %vm461_vm0, %v7377_v55, -inf  ;;  %v793_v18 = vshll.u32 %v792_v50, 16 }
 0x48e   : > { %1009 = vmax.xlane.f32.xlu0 %v1008_v52  ;;  %v760_v43 = vpop.xlane.xlu1 %759 }
 0x48f   : > { %v761_v0 = vcvt.f32.s32 %v760_v43  ;;  %vm963_vm11 = vcmp.eq.s32.totalorder %v6879_v3, %v7379_v20 }
 0x490   : > { %v7390_v17 = vsel %vm963_vm11, -1.0, %v6580_v48 }
 0x491   : > { %v7392_v54 = vadd.s32 %v763_v21, %v761_v0  ;;  %v1017_v61 = vsel %vm461_vm0, %v7390_v17, -inf }
 0x492   : > { %v805_v57 = vpop.xlane.xlu1 %804  ;;  %1018 = vmax.xlane.f32.xlu1 %v1017_v61 }
 0x493   : > { %v806_v63 = vcvt.f32.s32 %v805_v57  ;;  %vm962_vm12 = vcmp.eq.s32.totalorder %v6879_v3, %v7392_v54 }
 0x494   : > { %v7403_v34 = vsel %vm962_vm12, -1.0, %v6583_v46 }
 0x495   : > { %v7405_v19 = vadd.s32 %v808_v37, %v806_v63  ;;  %v1014_v31 = vsel %vm461_vm0, %v7403_v34, -inf  ;;  %v823_v63 = vshll.u32 %v822_v56, 16 }
 0x496   : > { %1015 = vmax.xlane.f32.xlu0 %v1014_v31  ;;  %v790_v30 = vpop.xlane.xlu1 %789 }
 0x497   : > { %v791_v7 = vcvt.f32.s32 %v790_v30  ;;  %vm965_vm13 = vcmp.eq.s32.totalorder %v6879_v3, %v7405_v19 }
 0x498   : > { %v7416_v59 = vsel %vm965_vm13, -1.0, %v6594_v62 }
 0x499   : > { %v7418_v52 = vadd.s32 %v793_v18, %v791_v7  ;;  %v1023_v43 = vsel %vm461_vm0, %v7416_v59, -inf }
 0x49a   : > { %v835_v21 = vpop.xlane.xlu1 %834  ;;  %1024 = vmax.xlane.f32.xlu1 %v1023_v43  ;;  %v868_v43 = vshll.u32 %v867_v44, 16 }
 0x49b   : > { %v836_v0 = vcvt.f32.s32 %v835_v21  ;;  %vm964_vm14 = vcmp.eq.s32.totalorder %v6879_v3, %v7418_v52  ;;  %v8912_v52 = vld [vmem:[#allocation5_spill] sm:$0xff] }
 0x49c   : > { %v7429_v61 = vsel %vm964_vm14, -1.0, %v6597_v14 }
 0x49d   : > { %v7431_v57 = vadd.s32 %v838_v41, %v836_v0  ;;  %v1020_v37 = vsel %vm461_vm0, %v7429_v61, -inf }
 0x49e   : > { %1021 = vmax.xlane.f32.xlu0 %v1020_v37  ;;  %v820_v50 = vpop.xlane.xlu1 %819 }
 0x49f   : > { %v821_v31 = vcvt.f32.s32 %v820_v50  ;;  %vm967_vm15 = vcmp.eq.s32.totalorder %v6879_v3, %v7431_v57  ;;  %v853_v50 = vshll.u32 %v852_v26, 16 }
 0x4a0   : > { %v7442_v30 = vsel %vm967_vm15, -1.0, %v6608_v15 }
 0x4a1   : > { %v7444_v18 = vadd.s32 %v823_v63, %v821_v31  ;;  %v1029_v9 = vsel %vm461_vm0, %v7442_v30, -inf }
 0x4a2   : > { %v865_v7 = vpop.xlane.xlu1 %864  ;;  %1030 = vmax.xlane.f32.xlu1 %v1029_v9 }
 0x4a3   : > { %v866_v21 = vcvt.f32.s32 %v865_v7  ;;  %vm966_vm2 = vcmp.eq.s32.totalorder %v6879_v3, %v7444_v18  ;;  %v8914_v18 = vld [vmem:[#allocation25_spill] sm:$0xff] }
 0x4a4   : > { %v7455_v41 = vsel %vm966_vm2, -1.0, %v6611_v2 }
 0x4a5   : > { %v7457_v56 = vadd.s32 %v868_v43, %v866_v21  ;;  %v1026_v0 = vsel %vm461_vm0, %v7455_v41, -inf  ;;  %v898_v43 = vshll.u32 %v897_v8, 16  ;;  %v883_v8 = vshll.u32 %v882_v23, 16 }
 0x4a6   : > { %1027 = vmax.xlane.f32.xlu0 %v1026_v0  ;;  %v850_v37 = vpop.xlane.xlu1 %849  ;;  %v928_v23 = vshll.u32 %v927_v27, 16  ;;  %v913_v27 = vshll.u32 %v912_v25, 16  ;;  %v958_v25 = vshll.u32 %v957_v28, 16 }
 0x4a7   : > { %v851_v63 = vcvt.f32.s32 %v850_v37  ;;  %vm969_vm3 = vcmp.eq.s32.totalorder %v6879_v3, %v7457_v56  ;;  %v8915_v56 = vld [vmem:[#allocation38_spill] sm:$0xff] }
 0x4a8   : > { %v7468_v44 = vsel %vm969_vm3, -1.0, %v6629_v39 }
 0x4a9   : > { %v7470_v31 = vadd.s32 %v853_v50, %v851_v63  ;;  %v1035_v9 = vsel %vm461_vm0, %v7468_v44, -inf }
 0x4aa   : > { %v895_v7 = vpop.xlane.xlu1 %894  ;;  %1036 = vmax.xlane.f32.xlu1 %v1035_v9 }
 0x4ab   : > { %8904 = vst [vmem:[#allocation153_spill] sm:$0xff] %v7470_v31  ;;  %v896_v26 = vcvt.f32.s32 %v895_v7  ;;  %vm968_vm1 = vcmp.eq.s32.totalorder %v6879_v3, %v7470_v31 }
 0x4ac   : > { %v7481_v21 = vsel %vm968_vm1, -1.0, %v6633_v47 }
 0x4ad   : > { %v7483_v0 = vadd.s32 %v898_v43, %v896_v26  ;;  %v1032_v37 = vsel %vm461_vm0, %v7481_v21, -inf }
 0x4ae   : > { %1033 = vmax.xlane.f32.xlu0 %v1032_v37  ;;  %v880_v50 = vpop.xlane.xlu1 %879 }
 0x4af   : > { %8905 = vst [vmem:[#allocation154_spill] sm:$0xff] %v7483_v0  ;;  %v881_v63 = vcvt.f32.s32 %v880_v50  ;;  %vm971_vm5 = vcmp.eq.s32.totalorder %v6879_v3, %v7483_v0 }
 0x4b0   : > { %v7494_v9 = vsel %vm971_vm5, -1.0, %v6648_v32 }
 0x4b1   : > { %v7496_v7 = vadd.s32 %v883_v8, %v881_v63  ;;  %v1041_v43 = vsel %vm461_vm0, %v7494_v9, -inf }
 0x4b2   : > { %v925_v26 = vpop.xlane.xlu1 %924  ;;  %1042 = vmax.xlane.f32.xlu1 %v1041_v43 }
 0x4b3   : > { %8906 = vst [vmem:[#allocation155_spill] sm:$0xff] %v7496_v7  ;;  %v926_v37 = vcvt.f32.s32 %v925_v26  ;;  %vm970_vm6 = vcmp.eq.s32.totalorder %v6879_v3, %v7496_v7 }
 0x4b4   : > { %v7507_v50 = vsel %vm970_vm6, -1.0, %v6652_v53 }
 0x4b5   : > { %v7509_v8 = vadd.s32 %v928_v23, %v926_v37  ;;  %v1038_v63 = vsel %vm461_vm0, %v7507_v50, -inf }
 0x4b6   : > { %1039 = vmax.xlane.f32.xlu0 %v1038_v63  ;;  %v910_v43 = vpop.xlane.xlu1 %909 }
 0x4b7   : > { %8907 = vst [vmem:[#allocation156_spill] sm:$0xff] %v7509_v8  ;;  %v911_v26 = vcvt.f32.s32 %v910_v43  ;;  %vm8656_vm7 = vcmp.eq.s32.totalorder %v6879_v3, %v7509_v8 }
 0x4b8   : > { %v7520_v22 = vsel %vm8656_vm7, -1.0, %v6666_v10 }
 0x4b9   : > { %v7522_v23 = vadd.s32 %v913_v27, %v911_v26  ;;  %v1047_v37 = vsel %vm461_vm0, %v7520_v22, -inf }
 0x4ba   : > { %v955_v63 = vpop.xlane.xlu1 %954  ;;  %1048 = vmax.xlane.f32.xlu1 %v1047_v37 }
 0x4bb   : > { %8908 = vst [vmem:[#allocation157_spill] sm:$0xff] %v7522_v23  ;;  %v956_v51 = vcvt.f32.s32 %v955_v63  ;;  %vm8654_vm8 = vcmp.eq.s32.totalorder %v6879_v3, %v7522_v23 }
 0x4bc   : > { %v7532_v38 = vsel %vm8654_vm8, -1.0, %v6670_v11 }
 0x4bd   : > { %v7534_v43 = vadd.s32 %v958_v25, %v956_v51  ;;  %v1044_v27 = vsel %vm461_vm0, %v7532_v38, -inf  ;;  %v942_v51 = vcvt.f32.s32 %v7337_v29 }
 0x4be   : > { %1045 = vmax.xlane.f32.xlu0 %v1044_v27 }
 0x4bf   : > { %8909 = vst [vmem:[#allocation158_spill] sm:$0xff] %v7534_v43  ;;  %vm8655_vm4 = vcmp.eq.s32.totalorder %v6879_v3, %v7534_v43  ;;  %v943_v63 = vshll.u32 %v942_v51, 16 }
 0x4c0   : > { %v7544_v28 = vsel %vm8655_vm4, -1.0, %v6681_v36 }
 0x4c1   : > { %v1053_v26 = vsel %vm461_vm0, %v7544_v28, -inf }
 0x4c2   : > { %1054 = vmax.xlane.f32.xlu1 %v1053_v26 }
 0x4d4   : > { %v940_v37 = vpop.xlane.xlu1 %939 }
 0x4d5   : > { %v941_v25 = vcvt.f32.s32 %v940_v37 }
 0x4d7   : > { %v7549_v5 = vadd.s32 %v943_v63, %v941_v25 }
 0x4d9   : > { %8910 = vst [vmem:[#allocation159_spill] sm:$0xff] %v7549_v5  ;;  %vm8672_vm8 = vcmp.eq.s32.totalorder %v6879_v3, %v7549_v5 }
 0x4da   : > { %v7557_v27 = vsel %vm8672_vm8, -1.0, %v6822_v42 }
 0x4db   : > { %v1050_v35 = vsel %vm461_vm0, %v7557_v27, -inf }
 0x4dc   : > { %1051 = vmax.xlane.f32.xlu0 %v1050_v35 }
 0x517   : > { %v1013_v26 = vpop.xlane.xlu1 %1012 }
 0x518   : > { %vm1057_vm4 = vcmp.ge.f32.partialorder %v7364_v24, %v1013_v26 }
 0x519   : > { %v1073_v29 = vsel %vm1057_vm4, %v6879_v3, 8 }
 0x51a   : > { %v7564_v51 = vsel %vm461_vm0, %v1073_v29, 2147483647 }
 0x51b   : > { %v1010_v37 = vpop.xlane.xlu0 %1009  ;;  %v1105_v63 = vshra.s32 %v7564_v51, 16  ;;  %v1104_v0 = vand.u32 65535, %v7564_v51 }
 0x51c   : > { %vm1056_vm7 = vcmp.ge.f32.partialorder %v7377_v55, %v1010_v37 }
 0x51d   : > { %v1072_v25 = vsel %vm1056_vm7, %v6879_v3, 8  ;;  %v7569_v40 = vcvt.s32.f32 %v1105_v63  ;;  %v1106_v47 = vcvt.s32.f32 %v1104_v0 }
 0x51e   : > { %v7572_v60 = vsel %vm461_vm0, %v1072_v25, 2147483647 }
 0x51f   : > { %1108 = vmin.xlane.f32.xlu0 %v7569_v40  ;;  %v1019_v35 = vpop.xlane.xlu1 %1018  ;;  %v1090_v24 = vshra.s32 %v7572_v60, 16  ;;  %v1089_v31 = vand.u32 65535, %v7572_v60 }
 0x520   : > { %vm1059_vm4 = vcmp.ge.f32.partialorder %v7390_v17, %v1019_v35 }
 0x521   : > { %v1075_v26 = vsel %vm1059_vm4, %v6879_v3, 8  ;;  %v7578_v29 = vcvt.s32.f32 %v1090_v24 }
 0x522   : > { %v7581_v55 = vsel %vm461_vm0, %v1075_v26, 2147483647 }
 0x523   : > { %1093 = vmin.xlane.f32.xlu0 %v7578_v29  ;;  %v1016_v37 = vpop.xlane.xlu0 %1015  ;;  %v1135_v63 = vshra.s32 %v7581_v55, 16 }
 0x524   : > { %vm1058_vm7 = vcmp.ge.f32.partialorder %v7403_v34, %v1016_v37 }
 0x525   : > { %v1074_v25 = vsel %vm1058_vm7, %v6879_v3, 8  ;;  %v7587_v33 = vcvt.s32.f32 %v1135_v63 }
 0x526   : > { %v7590_v17 = vsel %vm461_vm0, %v1074_v25, 2147483647 }
 0x527   : > { %v1025_v35 = vpop.xlane.xlu1 %1024  ;;  %1138 = vmin.xlane.f32.xlu0 %v7587_v33  ;;  %v1120_v24 = vshra.s32 %v7590_v17, 16  ;;  %v1119_v60 = vand.u32 65535, %v7590_v17 }
 0x528   : > { %vm1061_vm4 = vcmp.ge.f32.partialorder %v7416_v59, %v1025_v35 }
 0x529   : > { %v1077_v26 = vsel %vm1061_vm4, %v6879_v3, 8  ;;  %v7596_v42 = vcvt.s32.f32 %v1120_v24 }
 0x52a   : > { %v7599_v34 = vsel %vm461_vm0, %v1077_v26, 2147483647 }
 0x52b   : > { %1123 = vmin.xlane.f32.xlu0 %v7596_v42  ;;  %v1022_v37 = vpop.xlane.xlu0 %1021  ;;  %v1165_v63 = vshra.s32 %v7599_v34, 16 }
 0x52c   : > { %vm1060_vm7 = vcmp.ge.f32.partialorder %v7429_v61, %v1022_v37 }
 0x52d   : > { %v1076_v25 = vsel %vm1060_vm7, %v6879_v3, 8  ;;  %v7605_v5 = vcvt.s32.f32 %v1165_v63 }
 0x52e   : > { %v7608_v59 = vsel %vm461_vm0, %v1076_v25, 2147483647 }
 0x52f   : > { %v1031_v35 = vpop.xlane.xlu1 %1030  ;;  %1168 = vmin.xlane.f32.xlu0 %v7605_v5  ;;  %v1150_v24 = vshra.s32 %v7608_v59, 16  ;;  %v1149_v17 = vand.u32 65535, %v7608_v59 }
 0x530   : > { %vm1063_vm4 = vcmp.ge.f32.partialorder %v7442_v30, %v1031_v35 }
 0x531   : > { %v1079_v26 = vsel %vm1063_vm4, %v6879_v3, 8  ;;  %v7614_v36 = vcvt.s32.f32 %v1150_v24 }
 0x532   : > { %v7617_v61 = vsel %vm461_vm0, %v1079_v26, 2147483647 }
 0x533   : > { %1153 = vmin.xlane.f32.xlu0 %v7614_v36  ;;  %v1028_v37 = vpop.xlane.xlu0 %1027  ;;  %v1195_v63 = vshra.s32 %v7617_v61, 16 }
 0x534   : > { %vm1062_vm7 = vcmp.ge.f32.partialorder %v7455_v41, %v1028_v37 }
 0x535   : > { %v1078_v25 = vsel %vm1062_vm7, %v6879_v3, 8  ;;  %v7623_v43 = vcvt.s32.f32 %v1195_v63 }
 0x536   : > { %v7626_v30 = vsel %vm461_vm0, %v1078_v25, 2147483647 }
 0x537   : > { %v1037_v35 = vpop.xlane.xlu1 %1036  ;;  %1198 = vmin.xlane.f32.xlu0 %v7623_v43  ;;  %v1180_v24 = vshra.s32 %v7626_v30, 16  ;;  %v1179_v59 = vand.u32 65535, %v7626_v30 }
 0x538   : > { %vm1065_vm4 = vcmp.ge.f32.partialorder %v7468_v44, %v1037_v35 }
 0x539   : > { %v1081_v26 = vsel %vm1065_vm4, %v6879_v3, 8  ;;  %v7632_v11 = vcvt.s32.f32 %v1180_v24 }
 0x53a   : > { %v7635_v41 = vsel %vm461_vm0, %v1081_v26, 2147483647 }
 0x53b   : > { %1183 = vmin.xlane.f32.xlu0 %v7632_v11  ;;  %v1034_v37 = vpop.xlane.xlu0 %1033  ;;  %v1225_v63 = vshra.s32 %v7635_v41, 16 }
 0x53c   : > { %vm1064_vm7 = vcmp.ge.f32.partialorder %v7481_v21, %v1034_v37 }
 0x53d   : > { %v1080_v25 = vsel %vm1064_vm7, %v6879_v3, 8  ;;  %v7641_v23 = vcvt.s32.f32 %v1225_v63 }
 0x53e   : > { %v7644_v44 = vsel %vm461_vm0, %v1080_v25, 2147483647 }
 0x53f   : > { %v1043_v35 = vpop.xlane.xlu1 %1042  ;;  %1228 = vmin.xlane.f32.xlu0 %v7641_v23  ;;  %v1210_v24 = vshra.s32 %v7644_v44, 16  ;;  %v1209_v30 = vand.u32 65535, %v7644_v44 }
 0x540   : > { %vm1067_vm4 = vcmp.ge.f32.partialorder %v7494_v9, %v1043_v35 }
 0x541   : > { %v1083_v26 = vsel %vm1067_vm4, %v6879_v3, 8  ;;  %v7650_v10 = vcvt.s32.f32 %v1210_v24 }
 0x542   : > { %v7653_v21 = vsel %vm461_vm0, %v1083_v26, 2147483647 }
 0x543   : > { %1213 = vmin.xlane.f32.xlu0 %v7650_v10  ;;  %v1040_v37 = vpop.xlane.xlu0 %1039  ;;  %v1255_v63 = vshra.s32 %v7653_v21, 16 }
 0x544   : > { %vm1066_vm7 = vcmp.ge.f32.partialorder %v7507_v50, %v1040_v37 }
 0x545   : > { %v1082_v25 = vsel %vm1066_vm7, %v6879_v3, 8  ;;  %v7659_v8 = vcvt.s32.f32 %v1255_v63 }
 0x546   : > { %v7662_v9 = vsel %vm461_vm0, %v1082_v25, 2147483647 }
 0x547   : > { %v1049_v35 = vpop.xlane.xlu1 %1048  ;;  %1258 = vmin.xlane.f32.xlu0 %v7659_v8  ;;  %v1240_v24 = vshra.s32 %v7662_v9, 16  ;;  %v1239_v44 = vand.u32 65535, %v7662_v9 }
 0x548   : > { %vm1069_vm4 = vcmp.ge.f32.partialorder %v7520_v22, %v1049_v35 }
 0x549   : > { %v1085_v26 = vsel %vm1069_vm4, %v6879_v3, 8  ;;  %v7668_v53 = vcvt.s32.f32 %v1240_v24 }
 0x54a   : > { %v7671_v50 = vsel %vm461_vm0, %v1085_v26, 2147483647 }
 0x54b   : > { %1243 = vmin.xlane.f32.xlu0 %v7668_v53  ;;  %v1046_v37 = vpop.xlane.xlu0 %1045  ;;  %v1285_v63 = vshra.s32 %v7671_v50, 16 }
 0x54c   : > { %vm1068_vm7 = vcmp.ge.f32.partialorder %v7532_v38, %v1046_v37 }
 0x54d   : > { %v1084_v25 = vsel %vm1068_vm7, %v6879_v3, 8  ;;  %v7677_v7 = vcvt.s32.f32 %v1285_v63 }
 0x54e   : > { %v7680_v22 = vsel %vm461_vm0, %v1084_v25, 2147483647 }
 0x54f   : > { %v1055_v35 = vpop.xlane.xlu1 %1054  ;;  %1288 = vmin.xlane.f32.xlu0 %v7677_v7  ;;  %v1270_v24 = vshra.s32 %v7680_v22, 16  ;;  %v1269_v9 = vand.u32 65535, %v7680_v22 }
 0x550   : > { %vm1071_vm4 = vcmp.ge.f32.partialorder %v7544_v28, %v1055_v35 }
 0x551   : > { %v1087_v26 = vsel %vm1071_vm4, %v6879_v3, 8  ;;  %v7686_v32 = vcvt.s32.f32 %v1270_v24 }
 0x552   : > { %v7689_v38 = vsel %vm461_vm0, %v1087_v26, 2147483647 }
 0x553   : > { %1273 = vmin.xlane.f32.xlu0 %v7686_v32  ;;  %v1315_v37 = vshra.s32 %v7689_v38, 16 }
 0x555   : > { %v7693_v63 = vcvt.s32.f32 %v1315_v37 }
 0x557   : > { %1318 = vmin.xlane.f32.xlu0 %v7693_v63 }
 0x569   : > { %v1052_v25 = vpop.xlane.xlu0 %1051 }
 0x56a   : > { %vm1070_vm7 = vcmp.ge.f32.partialorder %v7557_v27, %v1052_v25 }
 0x56b   : > { %v1086_v28 = vsel %vm1070_vm7, %v6879_v3, 8 }
 0x56c   : > { %v7699_v35 = vsel %vm461_vm0, %v1086_v28, 2147483647  ;;  %v1091_v28 = vcvt.s32.f32 %v1089_v31  ;;  %v1121_v31 = vcvt.s32.f32 %v1119_v60 }
 0x56d   : > { %v1300_v24 = vshra.s32 %v7699_v35, 16 }
 0x56f   : > { %v7702_v26 = vcvt.s32.f32 %v1300_v24  ;;  %v1134_v24 = vand.u32 65535, %v7581_v55  ;;  %v1164_v55 = vand.u32 65535, %v7599_v34  ;;  %v1194_v34 = vand.u32 65535, %v7617_v61 }
 0x570   : > { %v1224_v61 = vand.u32 65535, %v7635_v41  ;;  %v1254_v41 = vand.u32 65535, %v7653_v21  ;;  %v1284_v21 = vand.u32 65535, %v7671_v50  ;;  %v1314_v50 = vand.u32 65535, %v7689_v38 }
 0x571   : > { %1303 = vmin.xlane.f32.xlu0 %v7702_v26  ;;  %v1136_v0 = vcvt.s32.f32 %v1134_v24  ;;  %v1151_v24 = vcvt.s32.f32 %v1149_v17  ;;  %v1196_v60 = vcvt.s32.f32 %v1194_v34  ;;  %v1211_v17 = vcvt.s32.f32 %v1209_v30 }
 0x5ac   : > { %v7706_v37 = vpop.xlane.xlu0 %1108 }
 0x5ad   : > { %vm1110_vm4 = vcmp.eq.f32.partialorder %v7569_v40, %v7706_v37 }
 0x5ae   : > { %v1111_v27 = vsel %vm1110_vm4, %v1106_v47, inf }
 0x5af   : > { %1112 = vmin.xlane.f32.xlu1 %v1111_v27  ;;  %v1166_v27 = vcvt.s32.f32 %v1164_v55 }
 0x5b0   : > { %v7711_v25 = vpop.xlane.xlu0 %1093 }
 0x5b1   : > { %vm1095_vm7 = vcmp.eq.f32.partialorder %v7578_v29, %v7711_v25 }
 0x5b2   : > { %v1096_v39 = vsel %vm1095_vm7, %v1091_v28, inf }
 0x5b3   : > { %1097 = vmin.xlane.f32.xlu1 %v1096_v39 }
 0x5b4   : > { %v7716_v51 = vpop.xlane.xlu0 %1138 }
 0x5b5   : > { %vm1140_vm8 = vcmp.eq.f32.partialorder %v7587_v33, %v7716_v51 }
 0x5b6   : > { %v1141_v47 = vsel %vm1140_vm8, %v1136_v0, inf }
 0x5b7   : > { %1142 = vmin.xlane.f32.xlu1 %v1141_v47 }
 0x5b8   : > { %v7721_v40 = vpop.xlane.xlu0 %1123 }
 0x5b9   : > { %vm1125_vm4 = vcmp.eq.f32.partialorder %v7596_v42, %v7721_v40  ;;  %v1130_v16 = vcvt.f32.s32 %v7721_v40 }
 0x5ba   : > { %v1126_v29 = vsel %vm1125_vm4, %v1121_v31, inf  ;;  %v1181_v31 = vcvt.s32.f32 %v1179_v59  ;;  %v1286_v59 = vcvt.s32.f32 %v1284_v21 }
 0x5bb   : > { %1127 = vmin.xlane.f32.xlu1 %v1126_v29  ;;  %v1226_v29 = vcvt.s32.f32 %v1224_v61  ;;  %v1131_v40 = vshll.u32 %v1130_v16, 16 }
 0x5bc   : > { %v7726_v39 = vpop.xlane.xlu0 %1168 }
 0x5bd   : > { %vm1170_vm7 = vcmp.eq.f32.partialorder %v7605_v5, %v7726_v39 }
 0x5be   : > { %v1171_v33 = vsel %vm1170_vm7, %v1166_v27, inf }
 0x5bf   : > { %1172 = vmin.xlane.f32.xlu1 %v1171_v33 }
 0x5c0   : > { %v7731_v28 = vpop.xlane.xlu0 %1153 }
 0x5c1   : > { %vm1155_vm8 = vcmp.eq.f32.partialorder %v7614_v36, %v7731_v28 }
 0x5c2   : > { %v1156_v42 = vsel %vm1155_vm8, %v1151_v24, inf  ;;  %v1256_v24 = vcvt.s32.f32 %v1254_v41  ;;  %v1100_v41 = vcvt.f32.s32 %v7711_v25 }
 0x5c3   : > { %1157 = vmin.xlane.f32.xlu1 %v1156_v42  ;;  %v1241_v42 = vcvt.s32.f32 %v1239_v44 }
 0x5c4   : > { %v7736_v0 = vpop.xlane.xlu0 %1198 }
 0x5c5   : > { %vm1200_vm4 = vcmp.eq.f32.partialorder %v7623_v43, %v7736_v0 }
 0x5c6   : > { %v1201_v5 = vsel %vm1200_vm4, %v1196_v60, inf }
 0x5c7   : > { %1202 = vmin.xlane.f32.xlu1 %v1201_v5 }
 0x5c8   : > { %v7741_v47 = vpop.xlane.xlu0 %1183 }
 0x5c9   : > { %vm1185_vm7 = vcmp.eq.f32.partialorder %v7632_v11, %v7741_v47 }
 0x5ca   : > { %v1186_v36 = vsel %vm1185_vm7, %v1181_v31, inf  ;;  %v1271_v31 = vcvt.s32.f32 %v1269_v9 }
 0x5cb   : > { %1187 = vmin.xlane.f32.xlu1 %v1186_v36  ;;  %v1316_v36 = vcvt.s32.f32 %v1314_v50 }
 0x5cc   : > { %v7746_v55 = vpop.xlane.xlu0 %1228 }
 0x5cd   : > { %vm1230_vm8 = vcmp.eq.f32.partialorder %v7641_v23, %v7746_v55 }
 0x5ce   : > { %v1231_v43 = vsel %vm1230_vm8, %v1226_v29, inf }
 0x5cf   : > { %1232 = vmin.xlane.f32.xlu1 %v1231_v43 }
 0x5d0   : > { %v7751_v27 = vpop.xlane.xlu0 %1213 }
 0x5d1   : > { %vm1215_vm4 = vcmp.eq.f32.partialorder %v7650_v10, %v7751_v27 }
 0x5d2   : > { %v1216_v11 = vsel %vm1215_vm4, %v1211_v17, inf }
 0x5d3   : > { %1217 = vmin.xlane.f32.xlu1 %v1216_v11 }
 0x5d4   : > { %v7756_v33 = vpop.xlane.xlu0 %1258 }
 0x5d5   : > { %vm1260_vm7 = vcmp.eq.f32.partialorder %v7659_v8, %v7756_v33 }
 0x5d6   : > { %v1261_v23 = vsel %vm1260_vm7, %v1256_v24, inf  ;;  %v8911_v24 = vmov 0.0  }
 0x5d7   : > { %1262 = vmin.xlane.f32.xlu1 %v1261_v23  ;;  %v1101_v23 = vshll.u32 %v1100_v41, 16  ;;  %v976_v25 = vsel %vm960_vm10, 1.0, %v8911_v24 }
 0x5d8   : > { %v7761_v34 = vpop.xlane.xlu0 %1243 }
 0x5d9   : > { %vm1245_vm8 = vcmp.eq.f32.partialorder %v7668_v53, %v7761_v34 }
 0x5da   : > { %v1246_v10 = vsel %vm1245_vm8, %v1241_v42, inf  ;;  %v1145_v42 = vcvt.f32.s32 %v7716_v51 }
 0x5db   : > { %1247 = vmin.xlane.f32.xlu1 %v1246_v10 }
 0x5dc   : > { %v7766_v60 = vpop.xlane.xlu0 %1288 }
 0x5dd   : > { %vm1290_vm4 = vcmp.eq.f32.partialorder %v7677_v7, %v7766_v60  ;;  %v1299_v7 = vand.u32 65535, %v7699_v35  ;;  %v977_v35 = vsel %vm961_vm9, 1.0, %v8911_v24 }
 0x5de   : > { %v1291_v8 = vsel %vm1290_vm4, %v1286_v59, inf }
 0x5df   : > { %1292 = vmin.xlane.f32.xlu1 %v1291_v8  ;;  %v1301_v30 = vcvt.s32.f32 %v1299_v7  ;;  %v1146_v8 = vshll.u32 %v1145_v42, 16 }
 0x5e0   : > { %v7771_v5 = vpop.xlane.xlu0 %1273 }
 0x5e1   : > { %vm1275_vm7 = vcmp.eq.f32.partialorder %v7686_v32, %v7771_v5  ;;  %v1115_v32 = vcvt.f32.s32 %v7706_v37 }
 0x5e2   : > { %v1276_v53 = vsel %vm1275_vm7, %v1271_v31, inf }
 0x5e3   : > { %1277 = vmin.xlane.f32.xlu1 %v1276_v53  ;;  %v1116_v17 = vshll.u32 %v1115_v32, 16 }
 0x5e4   : > { %v7776_v61 = vpop.xlane.xlu0 %1318 }
 0x5e5   : > { %vm1320_vm8 = vcmp.eq.f32.partialorder %v7693_v63, %v7776_v61 }
 0x5e6   : > { %v1321_v22 = vsel %vm1320_vm8, %v1316_v36, inf  ;;  %v1175_v36 = vcvt.f32.s32 %v7726_v39  ;;  %v978_v39 = vsel %vm962_vm12, 1.0, %v8911_v24 }
 0x5e7   : > { %1322 = vmin.xlane.f32.xlu1 %v1321_v22 }
 0x5fe   : > { %v7781_v29 = vpop.xlane.xlu0 %1303 }
 0x5ff   : > { %vm1305_vm4 = vcmp.eq.f32.partialorder %v7702_v26, %v7781_v29 }
 0x600   : > { %v1306_v38 = vsel %vm1305_vm4, %v1301_v30, inf }
 0x601   : > { %1307 = vmin.xlane.f32.xlu1 %v1306_v38 }
 0x63c   : > { %v1113_v43 = vpop.xlane.xlu1 %1112 }
 0x63d   : > { %v1114_v11 = vcvt.f32.s32 %v1113_v43 }
 0x63f   : > { %v1117_v63 = vadd.s32 %v1116_v17, %v1114_v11  ;;  %v1160_v17 = vcvt.f32.s32 %v7731_v28  ;;  %v1176_v11 = vshll.u32 %v1175_v36, 16  ;;  %v981_v28 = vsel %vm965_vm13, 1.0, %v8911_v24 }
 0x640   : > { %v1098_v44 = vpop.xlane.xlu1 %1097 }
 0x641   : > { %v1099_v26 = vcvt.f32.s32 %v1098_v44  ;;  %vm1329_vm7 = vcmp.eq.s32.totalorder %v6879_v3, %v1117_v63 }
 0x642   : > { %v1345_v21 = vsel %vm1329_vm7, 1.0, %v977_v35 }
 0x643   : > { %v1102_v37 = vadd.s32 %v1101_v23, %v1099_v26  ;;  %v7794_v10 = vmul.f32 %v1345_v21, %v6566_v1  ;;  %v1595_v9 = vmul.f32 %v6689_v58, %v1345_v21  ;;  %v979_v58 = vsel %vm963_vm11, 1.0, %v8911_v24 }
 0x644   : > { %v1143_v59 = vpop.xlane.xlu1 %1142  ;;  %v1161_v26 = vshll.u32 %v1160_v17, 16  ;;  %v1205_v21 = vcvt.f32.s32 %v7736_v0  ;;  %v980_v0 = vsel %vm964_vm14, 1.0, %v8911_v24  ;;  %v1220_v17 = vcvt.f32.s32 %v7751_v27 }
 0x645   : > { %v1144_v51 = vcvt.f32.s32 %v1143_v59  ;;  %v1379_v31 = vsel %vm461_vm0, %v7794_v10, 0.0  ;;  %vm1328_vm9 = vcmp.eq.s32.totalorder %v6879_v3, %v1102_v37  ;;  %v1611_v22 = vsel %vm461_vm0, %v1595_v9, 0.0 }
 0x646   : > { %1380 = vadd.xlane.f32.xlu1 %v1379_v31  ;;  %v1344_v1 = vsel %vm1328_vm9, 1.0, %v976_v25  ;;  %v985_v27 = vsel %vm969_vm3, 1.0, %v8911_v24 }
 0x647   : > { %v1147_v50 = vadd.s32 %v1146_v8, %v1144_v51  ;;  %v7806_v53 = vmul.f32 %v1344_v1, %v6569_v45  ;;  %v1594_v12 = vmul.f32 %v6692_v13, %v1344_v1  ;;  %v1190_v8 = vcvt.f32.s32 %v7741_v47 }
 0x648   : > { %v1128_v7 = vpop.xlane.xlu1 %1127  ;;  %v1206_v1 = vshll.u32 %v1205_v21, 16  ;;  %v983_v47 = vsel %vm967_vm15, 1.0, %v8911_v24  ;;  %v1221_v21 = vshll.u32 %v1220_v17, 16 }
 0x649   : > { %v1129_v30 = vcvt.f32.s32 %v1128_v7  ;;  %v1376_v38 = vsel %vm461_vm0, %v7806_v53, 0.0  ;;  %v1610_v45 = vsel %vm461_vm0, %v1594_v12, 0.0  ;;  %vm1331_vm10 = vcmp.eq.s32.totalorder %v6879_v3, %v1147_v50 }
 0x64a   : > { %v1612_v13 = vadd.f32 %v1611_v22, %v1610_v45  ;;  %1377 = vadd.xlane.f32.xlu0 %v1376_v38  ;;  %v1347_v32 = vsel %vm1331_vm10, 1.0, %v979_v58  ;;  %v1191_v7 = vshll.u32 %v1190_v8, 16  ;;  %v984_v8 = vsel %vm968_vm1, 1.0, %v8911_v24 }
 0x64b   : > { %v1132_v43 = vadd.s32 %v1131_v40, %v1129_v30  ;;  %v7820_v20 = vmul.f32 %v1347_v32, %v6580_v48  ;;  %v1597_v48 = vmul.f32 %v6712_v4, %v1347_v32  ;;  %v1235_v30 = vcvt.f32.s32 %v7746_v55 }
 0x64c   : > { %v1173_v41 = vpop.xlane.xlu1 %1172  ;;  %v982_v55 = vsel %vm966_vm2, 1.0, %v8911_v24 }
 0x64d   : > { %v1174_v63 = vcvt.f32.s32 %v1173_v41  ;;  %v1385_v35 = vsel %vm461_vm0, %v7820_v20, 0.0  ;;  %vm1330_vm11 = vcmp.eq.s32.totalorder %v6879_v3, %v1132_v43  ;;  %v1615_v59 = vsel %vm461_vm0, %v1597_v48, 0.0  ;;  %v8913_v48 = vld [vmem:[#allocation24_spill] sm:$0xff] }
 0x64e   : > { %1386 = vadd.xlane.f32.xlu1 %v1385_v35  ;;  %v1346_v44 = vsel %vm1330_vm11, 1.0, %v978_v39 }
 0x64f   : > { %v1177_v23 = vadd.s32 %v1176_v11, %v1174_v63  ;;  %v7832_v42 = vmul.f32 %v1346_v44, %v6583_v46  ;;  %v1596_v54 = vmul.f32 %v6698_v6, %v1346_v44  ;;  %v1236_v63 = vshll.u32 %v1235_v30, 16  ;;  %v8919_v30 = vld [vmem:[#allocation21_spill] sm:$0xff] }
 0x650   : > { %v1158_v37 = vpop.xlane.xlu1 %1157 }
 0x651   : > { %v1159_v25 = vcvt.f32.s32 %v1158_v37  ;;  %v1382_v16 = vsel %vm461_vm0, %v7832_v42, 0.0  ;;  %v1613_v4 = vsel %vm461_vm0, %v1596_v54, 0.0  ;;  %vm1333_vm12 = vcmp.eq.s32.totalorder %v6879_v3, %v1177_v23 }
 0x652   : > { %v1614_v46 = vadd.f32 %v1613_v4, %v1612_v13  ;;  %1383 = vadd.xlane.f32.xlu0 %v1382_v16  ;;  %v1349_v6 = vsel %vm1333_vm12, 1.0, %v981_v28  ;;  %v1265_v37 = vcvt.f32.s32 %v7756_v33  ;;  %v1325_v33 = vcvt.f32.s32 %v7776_v61  ;;  %v8929_v61 = vld [vmem:[#allocation157_spill] sm:$0xff] }
 0x653   : > { %v1162_v9 = vadd.s32 %v1161_v26, %v1159_v25  ;;  %v7846_v19 = vmul.f32 %v1349_v6, %v6594_v62  ;;  %v1599_v40 = vmul.f32 %v6728_v49, %v1349_v6  ;;  %vm8930_vm4 = vcmp.eq.s32.totalorder %v6879_v3, %v8929_v61 }
 0x654   : > { %v1203_v51 = vpop.xlane.xlu1 %1202  ;;  %v1616_v31 = vadd.f32 %v1615_v59, %v1614_v46 }
 0x655   : > { %v1204_v50 = vcvt.f32.s32 %v1203_v51  ;;  %v1391_v12 = vsel %vm461_vm0, %v7846_v19, 0.0  ;;  %vm1332_vm13 = vcmp.eq.s32.totalorder %v6879_v3, %v1162_v9  ;;  %v1619_v43 = vsel %vm461_vm0, %v1599_v40, 0.0 }
 0x656   : > { %1392 = vadd.xlane.f32.xlu1 %v1391_v12  ;;  %v1348_v58 = vsel %vm1332_vm13, 1.0, %v980_v0  ;;  %v1250_v51 = vcvt.f32.s32 %v7761_v34  ;;  %vm8942_vm13 = vcmask 57344  }
 0x657   : > { %v1207_v62 = vadd.s32 %v1206_v1, %v1204_v50  ;;  %v7858_v36 = vmul.f32 %v1348_v58, %v6597_v14  ;;  %v1598_v22 = vmul.f32 %v8912_v52, %v1348_v58  ;;  %v1266_v50 = vshll.u32 %v1265_v37, 16  ;;  %v8917_v52 = vld [vmem:[#allocation37_spill] sm:$0xff] }
 0x658   : > { %v1188_v38 = vpop.xlane.xlu1 %1187 }
 0x659   : > { %v1189_v45 = vcvt.f32.s32 %v1188_v38  ;;  %v1388_v13 = vsel %vm461_vm0, %v7858_v36, 0.0  ;;  %v1617_v49 = vsel %vm461_vm0, %v1598_v22, 0.0  ;;  %vm1335_vm14 = vcmp.eq.s32.totalorder %v6879_v3, %v1207_v62 }
 0x65a   : > { %v1618_v14 = vadd.f32 %v1617_v49, %v1616_v31  ;;  %1389 = vadd.xlane.f32.xlu0 %v1388_v13  ;;  %v1351_v32 = vsel %vm1335_vm14, 1.0, %v983_v47  ;;  %v8918_v47 = vld [vmem:[#allocation36_spill] sm:$0xff]  ;;  %v1251_v13 = vshll.u32 %v1250_v51, 16  ;;  %v1295_v49 = vcvt.f32.s32 %v7766_v60 }
 0x65b   : > { %v1192_v39 = vadd.s32 %v1191_v7, %v1189_v45  ;;  %v7872_v57 = vmul.f32 %v1351_v32, %v6608_v15  ;;  %v1601_v54 = vmul.f32 %v8913_v48, %v1351_v32  ;;  %v987_v45 = vsel %vm971_vm5, 1.0, %v8911_v24 }
 0x65c   : > { %v1233_v41 = vpop.xlane.xlu1 %1232  ;;  %v1620_v11 = vadd.f32 %v1619_v43, %v1618_v14 }
 0x65d   : > { %v1234_v35 = vcvt.f32.s32 %v1233_v41  ;;  %v1397_v44 = vsel %vm461_vm0, %v7872_v57, 0.0  ;;  %vm1334_vm15 = vcmp.eq.s32.totalorder %v6879_v3, %v1192_v39  ;;  %v1623_v59 = vsel %vm461_vm0, %v1601_v54, 0.0 }
 0x65e   : > { %1398 = vadd.xlane.f32.xlu1 %v1397_v44  ;;  %v1350_v23 = vsel %vm1334_vm15, 1.0, %v982_v55  ;;  %v986_v44 = vsel %vm970_vm6, 1.0, %v8911_v24  ;;  %v5570_v54 = vmov 1  }
 0x65f   : > { %v1237_v15 = vadd.s32 %v1236_v63, %v1234_v35  ;;  %v7884_v28 = vmul.f32 %v1350_v23, %v6611_v2  ;;  %v1600_v26 = vmul.f32 %v8914_v18, %v1350_v23  ;;  %v8921_v63 = vld [vmem:[#allocation34_spill] sm:$0xff]  ;;  %v1280_v23 = vcvt.f32.s32 %v7771_v5  ;;  %5330 = vset.pattern.permute.xlu0 %v5570_v54 }
 0x660   : > { %v1218_v25 = vpop.xlane.xlu1 %1217  ;;  %v1296_v18 = vshll.u32 %v1295_v49, 16 }
 0x661   : > { %v1219_v16 = vcvt.f32.s32 %v1218_v25  ;;  %v1394_v4 = vsel %vm461_vm0, %v7884_v28, 0.0  ;;  %v1621_v46 = vsel %vm461_vm0, %v1600_v26, 0.0  ;;  %vm1337_vm2 = vcmp.eq.s32.totalorder %v6879_v3, %v1237_v15 }
 0x662   : > { %v1622_v2 = vadd.f32 %v1621_v46, %v1620_v11  ;;  %1395 = vadd.xlane.f32.xlu0 %v1394_v4  ;;  %v1353_v6 = vsel %vm1337_vm2, 1.0, %v985_v27  ;;  %v8924_v4 = vld [vmem:[#allocation33_spill] sm:$0xff] }
 0x663   : > { %v1222_v9 = vadd.s32 %v1221_v21, %v1219_v16  ;;  %v7898_v0 = vmul.f32 %v1353_v6, %v8915_v56  ;;  %v1603_v22 = vmul.f32 %v8917_v52, %v1353_v6  ;;  %v5571_v21 = vmov 0   ;;  %v8923_v16 = vld [vmem:[#allocation55_spill] sm:$0xff] }
 0x664   : > { %v1263_v31 = vpop.xlane.xlu1 %1262  ;;  %v1624_v1 = vadd.f32 %v1623_v59, %v1622_v2  ;;  %5329 = vset.pattern.permute.xlu1 %v5571_v21  ;;  %v8925_v2 = vld [vmem:[#allocation42_spill] sm:$0xff]  ;;  %v8926_v59 = vld [vmem:[#allocation156_spill] sm:$0xff]  ;;  %v1281_v56 = vshll.u32 %v1280_v23, 16 }
 0x665   : > { %v1264_v12 = vcvt.f32.s32 %v1263_v31  ;;  %v1403_v58 = vsel %vm461_vm0, %v7898_v0, 0.0  ;;  %vm1336_vm3 = vcmp.eq.s32.totalorder %v6879_v3, %v1222_v9  ;;  %v1627_v41 = vsel %vm461_vm0, %v1603_v22, 0.0 }
 0x666   : > { %1404 = vadd.xlane.f32.xlu1 %v1403_v58  ;;  %v1352_v62 = vsel %vm1336_vm3, 1.0, %v984_v8  ;;  %vm8927_vm6 = vcmp.eq.s32.totalorder %v6879_v3, %v8926_v59  ;;  %v988_v22 = vsel %vm8930_vm4, 1.0, %v8911_v24 }
 0x667   : > { %v1267_v40 = vadd.s32 %v1266_v50, %v1264_v12  ;;  %v7910_v7 = vmul.f32 %v1352_v62, %v8918_v47  ;;  %v1602_v38 = vmul.f32 %v8919_v30, %v1352_v62  ;;  %v989_v9 = vsel %vm8927_vm6, 1.0, %v8911_v24 }
 0x668   : > { %v1248_v14 = vpop.xlane.xlu1 %1247 }
 0x669   : > { %v1249_v32 = vcvt.f32.s32 %v1248_v14  ;;  %v1400_v43 = vsel %vm461_vm0, %v7910_v7, 0.0  ;;  %v1625_v39 = vsel %vm461_vm0, %v1602_v38, 0.0  ;;  %vm1339_vm1 = vcmp.eq.s32.totalorder %v6879_v3, %v1267_v40  ;;  %v8928_v40 = vld [vmem:[#allocation32_spill] sm:$0xff]  ;;  %v8931_v14 = vld [vmem:[#allocation50_spill] sm:$0xff] }
 0x66a   : > { %v1626_v55 = vadd.f32 %v1625_v39, %v1624_v1  ;;  %1401 = vadd.xlane.f32.xlu0 %v1400_v43  ;;  %v1355_v17 = vsel %vm1339_vm1, 1.0, %v987_v45  ;;  %v1326_v38 = vshll.u32 %v1325_v33, 16  ;;  %v8932_v43 = vld [vmem:[#allocation9_spill] sm:$0xff]  ;;  %v8940_v33 = vld [vmem:[#allocation48_spill] sm:$0xff] }
 0x66b   : > { %v1252_v11 = vadd.s32 %v1251_v13, %v1249_v32  ;;  %v7924_v35 = vmul.f32 %v1355_v17, %v8921_v63  ;;  %v1605_v5 = vmul.f32 %v8923_v16, %v1355_v17 }
 0x66c   : > { %v1293_v15 = vpop.xlane.xlu1 %1292  ;;  %v1628_v48 = vadd.f32 %v1627_v41, %v1626_v55  ;;  %v8933_v55 = vld [vmem:[#allocation44_spill] sm:$0xff]  ;;  %v8934_v41 = vld [vmem:[#allocation158_spill] sm:$0xff] }
 0x66d   : > { %v1294_v26 = vcvt.f32.s32 %v1293_v15  ;;  %v1409_v27 = vsel %vm461_vm0, %v7924_v35, 0.0  ;;  %vm1338_vm5 = vcmp.eq.s32.totalorder %v6879_v3, %v1252_v11  ;;  %v1631_v58 = vsel %vm461_vm0, %v1605_v5, 0.0 }
 0x66e   : > { %1410 = vadd.xlane.f32.xlu1 %v1409_v27  ;;  %v1354_v37 = vsel %vm1338_vm5, 1.0, %v986_v44  ;;  %vm8935_vm9 = vcmp.eq.s32.totalorder %v6879_v3, %v8934_v41 }
 0x66f   : > { %v1297_v25 = vadd.s32 %v1296_v18, %v1294_v26  ;;  %v7938_v46 = vmul.f32 %v1354_v37, %v8924_v4  ;;  %v1604_v6 = vmul.f32 %v8925_v2, %v1354_v37  ;;  %v991_v11 = vsel %vm8935_vm9, 1.0, %v8911_v24  ;;  %v8937_v2 = vld [vmem:[#allocation159_spill] sm:$0xff] }
 0x670   : > { %v1278_v8 = vpop.xlane.xlu1 %1277  ;;  %v1310_v37 = vcvt.f32.s32 %v7781_v29  ;;  %vm8938_vm11 = vcmp.eq.s32.totalorder %v6879_v3, %v8937_v2 }
 0x671   : > { %v1279_v51 = vcvt.f32.s32 %v1278_v8  ;;  %v1406_v31 = vsel %vm461_vm0, %v7938_v46, 0.0  ;;  %v1629_v1 = vsel %vm461_vm0, %v1604_v6, 0.0  ;;  %vm1341_vm8 = vcmp.eq.s32.totalorder %v6879_v3, %v1297_v25 }
 0x672   : > { %v1630_v50 = vadd.f32 %v1629_v1, %v1628_v48  ;;  %1407 = vadd.xlane.f32.xlu0 %v1406_v31  ;;  %v1357_v12 = vsel %vm1341_vm8, 1.0, %v989_v9  ;;  %v8936_v48 = vld [vmem:[#allocation7_spill] sm:$0xff]  ;;  %v1311_v16 = vshll.u32 %v1310_v37, 16  ;;  %v990_v6 = vsel %vm8938_vm11, 1.0, %v8911_v24  ;;  %v8939_v9 = vld [vmem:[#allocation10_spill] sm:$0xff] }
 0x673   : > { %v1282_v62 = vadd.s32 %v1281_v56, %v1279_v51  ;;  %v7952_v52 = vmul.f32 %v1357_v12, %v8928_v40  ;;  %v1607_v32 = vmul.f32 %v8931_v14, %v1357_v12  ;;  %v8941_v51 = vld [vmem:[#allocation47_spill] sm:$0xff]  ;;  %v5575_v14 = vmov 4  }
 0x674   : > { %v1323_v47 = vpop.xlane.xlu1 %1322  ;;  %v1632_v30 = vadd.f32 %v1631_v58, %v1630_v50 }
 0x675   : > { %v1324_v34 = vcvt.f32.s32 %v1323_v47  ;;  %v1415_v45 = vsel %vm461_vm0, %v7952_v52, 0.0  ;;  %vm1340_vm7 = vcmp.eq.s32.totalorder %v6879_v3, %v1282_v62  ;;  %v1635_v15 = vsel %vm461_vm0, %v1607_v32, 0.0 }
 0x676   : > { %1416 = vadd.xlane.f32.xlu1 %v1415_v45  ;;  %v1356_v13 = vsel %vm1340_vm7, 1.0, %v988_v22  ;;  %v5572_v45 = vmov 3   ;;  %v5577_v32 = vmov 6  }
 0x677   : > { %v1327_v49 = vadd.s32 %v1326_v38, %v1324_v34  ;;  %v7963_v39 = vmul.f32 %v1356_v13, %v8932_v43  ;;  %v1606_v17 = vmul.f32 %v8933_v55, %v1356_v13  ;;  %v5573_v13 = vmov 2  }
 0x679   : > { %v1412_v63 = vsel %vm461_vm0, %v7963_v39, 0.0  ;;  %v1633_v60 = vsel %vm461_vm0, %v1606_v17, 0.0  ;;  %vm1343_vm10 = vcmp.eq.s32.totalorder %v6879_v3, %v1327_v49  ;;  %v5574_v49 = vmov 5  }
 0x67a   : > { %v1634_v44 = vadd.f32 %v1633_v60, %v1632_v30  ;;  %1413 = vadd.xlane.f32.xlu0 %v1412_v63  ;;  %v1359_v23 = vsel %vm1343_vm10, 1.0, %v991_v11 }
 0x67b   : > { %v7976_v18 = vmul.f32 %v1359_v23, %v8936_v48  ;;  %v1609_v56 = vmul.f32 %v8939_v9, %v1359_v23 }
 0x67c   : > { %v1636_v26 = vadd.f32 %v1635_v15, %v1634_v44 }
 0x67d   : > { %v1421_v27 = vsel %vm461_vm0, %v7976_v18, 0.0  ;;  %v1639_v24 = vsel %vm461_vm0, %v1609_v56, 0.0 }
 0x67e   : > { %1422 = vadd.xlane.f32.xlu1 %v1421_v27 }
 0x68e   : > { %v1308_v25 = vpop.xlane.xlu1 %1307 }
 0x68f   : > { %v1309_v5 = vcvt.f32.s32 %v1308_v25 }
 0x691   : > { %v1312_v4 = vadd.s32 %v1311_v16, %v1309_v5  ;;  %v8943_v16 = vld [vmem:[#allocation15_spill] sm:$0xff] }
 0x692   : > { %v2143_v5 = vsub.s32 1, %v8943_v16  ;;  %v2471_v56 = vsub.s32 2, %v8943_v16 }
 0x693   : > { %vm1342_vm12 = vcmp.eq.s32.totalorder %v6879_v3, %v1312_v4 }
 0x694   : > { %v1358_v59 = vsel %vm1342_vm12, 1.0, %v990_v6  ;;  %v1814_v6 = vsub.s32 0, %v8943_v16 }
 0x695   : > { %v7988_v8 = vmul.f32 %v1358_v59, %v8940_v33  ;;  %v1608_v29 = vmul.f32 %v8941_v51, %v1358_v59  ;;  %v5553_v59 = vld [vmem:[%s8611_s4] sm:$0xff] }
 0x696   : > { %v8087_v9 = vrot.slane %v5553_v59, %v2143_v5 }
 0x697   : > { %v1418_v31 = vsel %vm461_vm0, %v7988_v8, 0.0  ;;  %v1637_v1 = vsel %vm461_vm0, %v1608_v29, 0.0 }
 0x698   : > { %v1638_v50 = vadd.f32 %v1637_v1, %v1636_v26  ;;  %1419 = vadd.xlane.f32.xlu0 %v1418_v31  ;;  %v8096_v31 = vrot.slane %v5553_v59, %v1814_v6  ;;  %v8944_v1 = vld [vmem:[#allocation11_spill] sm:$0xff] }
 0x69a   : > { %v1640_v12 = vadd.f32 %v1639_v24, %v1638_v50  ;;  %v1937_v50 = vadd.f32 %v8944_v1, %v8096_v31  ;;  %v8945_v24 = vld [vmem:[#allocation6_spill] sm:$0xff] }
 0x69c   : > { %v1641_v3 = vrot.slane %v1640_v12, 4 }
 0x69e   : > { %v1642_v58 = vadd.f32 %v1641_v3, %v1640_v12  ;;  %v2281_v12 = vadd.f32 %v8945_v24, %v8087_v9  ;;  %v8104_v3 = vrot.slane %v5553_v59, %v2471_v56 }
 0x6a0   : > { %v1643_v62 = vrot.slane %v1642_v58, 2 }
 0x6a2   : > { %v1644_v40 = vadd.f32 %v1643_v62, %v1642_v58 }
 0x6a4   : > { %v1645_v61 = vrot.slane %v1644_v40, 1 }
 0x6a6   : > { %v1646_v22 = vadd.f32 %v1645_v61, %v1644_v40  ;;  %v2011_v61 = vmax.f32 %v1937_v50, 0.0 }
 0x6a8   : > { %1647 = vst.msk [vmem:[%s298_s8] sm:$0x1] %vm8942_vm13, %v1646_v22  ;;  %v2355_v22 = vmax.f32 %v2281_v12, 0.0 }
 0x6d3   : > { %v1381_v47 = vpop.xlane.xlu1 %1380 }
 0x6d4   : > { %5521 = vrcp.f32 %v1381_v47  ;;  %v8946_v47 = vld [vmem:[#allocation31_spill] sm:$0xff] }
 0x6d7   : > { %v1378_v34 = vpop.xlane.xlu0 %1377 }
 0x6d8   : > { %5523 = vrcp.f32 %v1378_v34 }
 0x6db   : > { %v1387_v17 = vpop.xlane.xlu1 %1386 }
 0x6dc   : > { %5525 = vrcp.f32 %v1387_v17  ;;  %v8948_v17 = vld [vmem:[#allocation72_spill] sm:$0xff] }
 0x6de   : > { %v5522_v30 = vpop.eup %5521 }
 0x6df   : > { %v1441_v38 = vmul.f32 %v5522_v30, %v7794_v10  ;;  %v5576_v10 = vmov 7   ;;  %v1384_v63 = vpop.xlane.xlu0 %1383  ;;  %v2609_v30 = vadd.f32 %v8946_v47, %v8104_v3  ;;  %v8954_v47 = vld [vmem:[#allocation133_spill] sm:$0xff] }
 0x6e1   : > { %2375 = vperm.xlu0 %5330, %v1441_v38   ;;  %2033 = vperm.xlu1 %5329, %v1441_v38  }
 0x6e2   : > { %v5524_v43 = vpop.eup %5523 }
 0x6e3   : > { %v1440_v55 = vmul.f32 %v5524_v43, %v7806_v53  ;;  %v1393_v41 = vpop.xlane.xlu1 %1392 }
 0x6e4   : > { %5527 = vrcp.f32 %v1393_v41  ;;  %v3783_v41 = vsub.s32 6, %v8943_v16 }
 0x6e5   : > { %5332 = vset.pattern.permute.xlu0 %v5572_v45  ;;  %5331 = vset.pattern.permute.xlu1 %v5573_v13  ;;  %5529 = vrcp.f32 %v1384_v63  ;;  %v2683_v63 = vmax.f32 %v2609_v30, 0.0 }
 0x6e6   : > { %3031 = vperm.xlu0 %5332, %v1441_v38   ;;  %2703 = vperm.xlu1 %5331, %v1441_v38   ;;  %v5526_v53 = vpop.eup %5525 }
 0x6e7   : > { %v1443_v11 = vmul.f32 %v5526_v53, %v7820_v20  ;;  %v1390_v20 = vpop.xlane.xlu0 %1389 }
 0x6e8   : > { %5531 = vrcp.f32 %v1390_v20  ;;  %v8949_v20 = vld [vmem:[#allocation73_spill] sm:$0xff] }
 0x6ea   : > { %5334 = vset.pattern.permute.xlu0 %v5574_v49  ;;  %5333 = vset.pattern.permute.xlu1 %v5575_v14 }
 0x6eb   : > { %3687 = vperm.xlu0 %5334, %v1441_v38   ;;  %3359 = vperm.xlu1 %5333, %v1441_v38   ;;  %v1399_v26 = vpop.xlane.xlu1 %1398 }
 0x6ec   : > { %5533 = vrcp.f32 %v1399_v26 }
 0x6ee   : > { %v5528_v60 = vpop.eup %5527 }
 0x6ef   : > { %5336 = vset.pattern.permute.xlu0 %v5576_v10  ;;  %5335 = vset.pattern.permute.xlu1 %v5577_v32  ;;  %v8024_v44 = vmul.f32 %v5528_v60, %v7846_v19  ;;  %v5530_v23 = vpop.eup %5529  ;;  %v4111_v60 = vsub.s32 7, %v8943_v16 }
 0x6f0   : > { %4343 = vperm.xlu0 %5336, %v1441_v38   ;;  %4015 = vperm.xlu1 %5335, %v1441_v38   ;;  %v1442_v15 = vmul.f32 %v5530_v23, %v7832_v42 }
 0x6f1   : > { %v8135_v5 = vrot.slane %v5553_v59, %v4111_v60 }
 0x6f2   : > { %v5532_v19 = vpop.eup %5531 }
 0x6f3   : > { %v8037_v48 = vmul.f32 %v5532_v19, %v7858_v36  ;;  %v1396_v36 = vpop.xlane.xlu0 %1395  ;;  %v1405_v25 = vpop.xlane.xlu1 %1404  ;;  %v4249_v30 = vadd.f32 %v8954_v47, %v8135_v5 }
 0x6f4   : > { %5337 = vset.pattern.permute.xlu0 %v5571_v21  ;;  %5338 = vset.pattern.permute.xlu1 %v5570_v54  ;;  %5535 = vrcp.f32 %v1396_v36 }
 0x6f5   : > { %2371 = vperm.xlu1 %5338, %v1440_v55   ;;  %2028 = vperm.xlu0 %5337, %v1440_v55   ;;  %5537 = vrcp.f32 %v1405_v25  ;;  %v8952_v25 = vld [vmem:[#allocation106_spill] sm:$0xff] }
 0x6f6   : > { %v5534_v42 = vpop.eup %5533 }
 0x6f7   : > { %v8052_v27 = vmul.f32 %v5534_v42, %v7872_v57  ;;  %v8129_v42 = vrot.slane %v5553_v59, %v3783_v41 }
 0x6f9   : > { %5340 = vset.pattern.permute.xlu1 %v5572_v45  ;;  %5339 = vset.pattern.permute.xlu0 %v5573_v13 }
 0x6fa   : > { %3027 = vperm.xlu1 %5340, %v1440_v55   ;;  %2699 = vperm.xlu0 %5339, %v1440_v55  }
 0x6fb   : > { %v8077_v4 = vpop.xlane.xlu1 %1410 }
 0x6fe   : > { %5342 = vset.pattern.permute.xlu1 %v5574_v49  ;;  %5341 = vset.pattern.permute.xlu0 %v5575_v14  ;;  %v5536_v57 = vpop.eup %5535 }
 0x6ff   : > { %3683 = vperm.xlu1 %5342, %v1440_v55   ;;  %3355 = vperm.xlu0 %5341, %v1440_v55   ;;  %v8064_v37 = vmul.f32 %v5536_v57, %v7884_v28  ;;  %v1402_v28 = vpop.xlane.xlu0 %1401  ;;  %v5538_v29 = vpop.eup %5537  ;;  %v8951_v57 = vld [vmem:[#allocation110_spill] sm:$0xff] }
 0x700   : > { %v8107_v58 = vmul.f32 %v5538_v29, %v7898_v0  ;;  %5539 = vrcp.f32 %v1402_v28  ;;  %v3593_v28 = vadd.f32 %v8952_v25, %v8951_v57  ;;  %v8953_v29 = vld [vmem:[#allocation103_spill] sm:$0xff]  ;;  %v8957_v25 = vld [vmem:[#allocation18_spill] sm:$0xff] }
 0x701   : > { %v3921_v1 = vadd.f32 %v8953_v29, %v8129_v42  ;;  %5541 = vrcp.f32 %v8077_v4 }
 0x703   : > { %5344 = vset.pattern.permute.xlu1 %v5576_v10  ;;  %5343 = vset.pattern.permute.xlu0 %v5577_v32  ;;  %v8079_v2 = vpop.xlane.xlu0 %1407  ;;  %v8090_v33 = vpop.xlane.xlu1 %1416 }
 0x704   : > { %4339 = vperm.xlu1 %5344, %v1440_v55   ;;  %4011 = vperm.xlu0 %5343, %v1440_v55   ;;  %v8947_v55 = vld [vmem:[#allocation77_spill] sm:$0xff]  ;;  %5543 = vrcp.f32 %v8079_v2 }
 0x705   : > { %v2937_v53 = vadd.f32 %v8948_v17, %v8947_v55  ;;  %5545 = vrcp.f32 %v8090_v33 }
 0x707   : > { %v8092_v51 = vpop.xlane.xlu0 %1413  ;;  %v3011_v26 = vmax.f32 %v2937_v53, 0.0  ;;  %v8956_v53 = vld [vmem:[#allocation29_spill] sm:$0xff] }
 0x708   : > { %5345 = vset.pattern.permute.xlu1 %v5571_v21  ;;  %5347 = vset.pattern.permute.xlu0 %v5573_v13  ;;  %v2276_v41 = vadd.f32 %v8956_v53, %v8087_v9  ;;  %v8961_v53 = vld [vmem:[#allocation105_spill] sm:$0xff]  ;;  %5547 = vrcp.f32 %v8092_v51 }
 0x709   : > { %2043 = vperm.xlu1 %5345, %v1443_v11   ;;  %2711 = vperm.xlu0 %5347, %v1443_v11   ;;  %v8976_v51 = vld [vmem:[#allocation113_spill] sm:$0xff] }
 0x70a   : > { %v5540_v59 = vpop.eup %5539 }
 0x70b   : > { %v8109_v62 = vpop.xlane.xlu1 %1422 }
 0x70c   : > { %5549 = vrcp.f32 %v8109_v62 }
 0x70d   : > { %5346 = vset.pattern.permute.xlu1 %v5570_v54  ;;  %5349 = vset.pattern.permute.xlu0 %v5575_v14 }
 0x70e   : > { %2383 = vperm.xlu1 %5346, %v1443_v11   ;;  %3367 = vperm.xlu0 %5349, %v1443_v11  }
 0x712   : > { %5348 = vset.pattern.permute.xlu1 %v5572_v45  ;;  %5351 = vset.pattern.permute.xlu0 %v5577_v32 }
 0x713   : > { %3039 = vperm.xlu1 %5348, %v1443_v11   ;;  %4023 = vperm.xlu0 %5351, %v1443_v11  }
 0x717   : > { %5350 = vset.pattern.permute.xlu1 %v5574_v49  ;;  %5363 = vset.pattern.permute.xlu0 %v5573_v13 }
 0x718   : > { %3695 = vperm.xlu1 %5350, %v1443_v11   ;;  %2719 = vperm.xlu0 %5363, %v8024_v44  }
 0x71c   : > { %5352 = vset.pattern.permute.xlu1 %v5576_v10  ;;  %5365 = vset.pattern.permute.xlu0 %v5575_v14 }
 0x71d   : > { %4351 = vperm.xlu1 %5352, %v1443_v11   ;;  %3375 = vperm.xlu0 %5365, %v8024_v44  }
 0x721   : > { %5353 = vset.pattern.permute.xlu1 %v5571_v21  ;;  %5367 = vset.pattern.permute.xlu0 %v5577_v32 }
 0x722   : > { %4031 = vperm.xlu0 %5367, %v8024_v44   ;;  %2038 = vperm.xlu1 %5353, %v1442_v15  }
 0x725   : > { %v8111_v40 = vpop.xlane.xlu0 %1419 }
 0x726   : > { %5370 = vset.pattern.permute.xlu0 %v5570_v54  ;;  %5354 = vset.pattern.permute.xlu1 %v5570_v54  ;;  %5551 = vrcp.f32 %v8111_v40 }
 0x727   : > { %2379 = vperm.xlu1 %5354, %v1442_v15   ;;  %2387 = vperm.xlu0 %5370, %v8037_v48  }
 0x72b   : > { %5355 = vset.pattern.permute.xlu1 %v5573_v13  ;;  %5372 = vset.pattern.permute.xlu0 %v5572_v45 }
 0x72c   : > { %2707 = vperm.xlu1 %5355, %v1442_v15   ;;  %3043 = vperm.xlu0 %5372, %v8037_v48  }
 0x730   : > { %5356 = vset.pattern.permute.xlu1 %v5572_v45  ;;  %5374 = vset.pattern.permute.xlu0 %v5574_v49 }
 0x731   : > { %3035 = vperm.xlu1 %5356, %v1442_v15   ;;  %3699 = vperm.xlu0 %5374, %v8037_v48  }
 0x735   : > { %5357 = vset.pattern.permute.xlu1 %v5575_v14  ;;  %5376 = vset.pattern.permute.xlu0 %v5576_v10 }
 0x736   : > { %3363 = vperm.xlu1 %5357, %v1442_v15   ;;  %4355 = vperm.xlu0 %5376, %v8037_v48  }
 0x73a   : > { %5358 = vset.pattern.permute.xlu1 %v5574_v49  ;;  %5379 = vset.pattern.permute.xlu0 %v5573_v13 }
 0x73b   : > { %3691 = vperm.xlu1 %5358, %v1442_v15   ;;  %2727 = vperm.xlu0 %5379, %v8052_v27  }
 0x73f   : > { %5359 = vset.pattern.permute.xlu1 %v5577_v32  ;;  %5381 = vset.pattern.permute.xlu0 %v5575_v14 }
 0x740   : > { %4019 = vperm.xlu1 %5359, %v1442_v15   ;;  %3383 = vperm.xlu0 %5381, %v8052_v27  }
 0x744   : > { %5360 = vset.pattern.permute.xlu1 %v5576_v10  ;;  %5383 = vset.pattern.permute.xlu0 %v5577_v32 }
 0x745   : > { %4347 = vperm.xlu1 %5360, %v1442_v15   ;;  %4039 = vperm.xlu0 %5383, %v8052_v27  }
 0x749   : > { %5361 = vset.pattern.permute.xlu1 %v5571_v21  ;;  %5386 = vset.pattern.permute.xlu0 %v5570_v54 }
 0x74a   : > { %2053 = vperm.xlu1 %5361, %v8024_v44   ;;  %2395 = vperm.xlu0 %5386, %v8064_v37  }
 0x74e   : > { %5362 = vset.pattern.permute.xlu1 %v5570_v54  ;;  %5388 = vset.pattern.permute.xlu0 %v5572_v45 }
 0x74f   : > { %2391 = vperm.xlu1 %5362, %v8024_v44   ;;  %3051 = vperm.xlu0 %5388, %v8064_v37  }
 0x753   : > { %5364 = vset.pattern.permute.xlu1 %v5572_v45  ;;  %5390 = vset.pattern.permute.xlu0 %v5574_v49 }
 0x754   : > { %3047 = vperm.xlu1 %5364, %v8024_v44   ;;  %3707 = vperm.xlu0 %5390, %v8064_v37  }
 0x758   : > { %5366 = vset.pattern.permute.xlu1 %v5574_v49  ;;  %5392 = vset.pattern.permute.xlu0 %v5576_v10 }
 0x759   : > { %3703 = vperm.xlu1 %5366, %v8024_v44   ;;  %4363 = vperm.xlu0 %5392, %v8064_v37  }
 0x75d   : > { %5368 = vset.pattern.permute.xlu1 %v5576_v10  ;;  %5393 = vset.pattern.permute.xlu0 %v5571_v21 }
 0x75e   : > { %4359 = vperm.xlu1 %5368, %v8024_v44   ;;  %2073 = vperm.xlu0 %5393, %v8107_v58   ;;  %v8950_v44 = vld [vmem:[#allocation70_spill] sm:$0xff] }
 0x75f   : > { %v3265_v23 = vadd.f32 %v8950_v44, %v8949_v20  ;;  %v4323_v44 = vmax.f32 %v4249_v30, 0.0 }
 0x760   : > { %v2034_v38 = vpop.permute.xlu1 %2033  ;;  %v2376_v0 = vpop.permute.xlu0 %2375 }
 0x761   : > { %v2107_v34 = vmul.f32 %v2034_v38, %v2011_v61  ;;  %v2435_v43 = vmul.f32 %v2376_v0, %v2355_v22  ;;  %v3339_v56 = vmax.f32 %v3265_v23, 0.0  ;;  %v3667_v61 = vmax.f32 %v3593_v28, 0.0 }
 0x762   : > { %5369 = vset.pattern.permute.xlu1 %v5571_v21  ;;  %5395 = vset.pattern.permute.xlu0 %v5573_v13  ;;  %v8152_v23 = vmul.f32 %v5540_v59, %v7910_v7  ;;  %v2604_v28 = vadd.f32 %v8957_v25, %v8104_v3 }
 0x763   : > { %v2451_v11 = vadd.f32 %v2435_v43, %v2107_v34  ;;  %2048 = vperm.xlu1 %5369, %v8037_v48   ;;  %2735 = vperm.xlu0 %5395, %v8107_v58   ;;  %v3995_v34 = vmax.f32 %v3921_v1, 0.0  ;;  %v8955_v43 = vld [vmem:[#allocation12_spill] sm:$0xff] }
 0x764   : > { %v1932_v17 = vadd.f32 %v8955_v43, %v8096_v31 }
 0x765   : > { %v2704_v15 = vpop.permute.xlu1 %2703  ;;  %v3032_v19 = vpop.permute.xlu0 %3031 }
 0x766   : > { %v2763_v36 = vmul.f32 %v2704_v15, %v2683_v63  ;;  %v3091_v16 = vmul.f32 %v3032_v19, %v3011_v26  ;;  %v2010_v7 = vmax.f32 %v1932_v17, 0.0 }
 0x767   : > { %5371 = vset.pattern.permute.xlu1 %v5573_v13  ;;  %5397 = vset.pattern.permute.xlu0 %v5575_v14 }
 0x768   : > { %v2779_v6 = vadd.f32 %v2763_v36, %v2451_v11  ;;  %2715 = vperm.xlu1 %5371, %v8037_v48   ;;  %3391 = vperm.xlu0 %5397, %v8107_v58   ;;  %v2354_v36 = vmax.f32 %v2276_v41, 0.0  ;;  %v3916_v41 = vadd.f32 %v8961_v53, %v8129_v42 }
 0x76a   : > { %v3107_v50 = vadd.f32 %v3091_v16, %v2779_v6  ;;  %v3360_v24 = vpop.permute.xlu1 %3359  ;;  %v3688_v12 = vpop.permute.xlu0 %3687 }
 0x76b   : > { %v3419_v22 = vmul.f32 %v3360_v24, %v3339_v56  ;;  %v3747_v0 = vmul.f32 %v3688_v12, %v3667_v61  ;;  %v2682_v12 = vmax.f32 %v2604_v28, 0.0  ;;  %v8959_v61 = vld [vmem:[#allocation71_spill] sm:$0xff]  ;;  %v3994_v28 = vmax.f32 %v3916_v41, 0.0 }
 0x76c   : > { %5373 = vset.pattern.permute.xlu1 %v5575_v14  ;;  %5399 = vset.pattern.permute.xlu0 %v5577_v32 }
 0x76d   : > { %v3435_v38 = vadd.f32 %v3419_v22, %v3107_v50  ;;  %3371 = vperm.xlu1 %5373, %v8037_v48   ;;  %4047 = vperm.xlu0 %5399, %v8107_v58   ;;  %v3260_v22 = vadd.f32 %v8959_v61, %v8949_v20 }
 0x76f   : > { %v3763_v11 = vadd.f32 %v3747_v0, %v3435_v38  ;;  %v4016_v63 = vpop.permute.xlu1 %4015  ;;  %v4344_v60 = vpop.permute.xlu0 %4343  ;;  %v8960_v0 = vld [vmem:[#allocation107_spill] sm:$0xff]  ;;  %v3338_v17 = vmax.f32 %v3260_v22, 0.0  ;;  %v8964_v22 = vld [vmem:[#allocation45_spill] sm:$0xff] }
 0x770   : > { %v4075_v15 = vmul.f32 %v4016_v63, %v3995_v34  ;;  %v4403_v26 = vmul.f32 %v4344_v60, %v4323_v44  ;;  %v3588_v34 = vadd.f32 %v8960_v0, %v8951_v57 }
 0x771   : > { %5375 = vset.pattern.permute.xlu1 %v5577_v32  ;;  %5402 = vset.pattern.permute.xlu0 %v5570_v54 }
 0x772   : > { %v4091_v19 = vadd.f32 %v4075_v15, %v3763_v11  ;;  %4027 = vperm.xlu1 %5375, %v8037_v48   ;;  %2403 = vperm.xlu0 %5402, %v8152_v23   ;;  %v8958_v48 = vld [vmem:[#allocation74_spill] sm:$0xff]  ;;  %v3666_v44 = vmax.f32 %v3588_v34, 0.0 }
 0x773   : > { %v2932_v50 = vadd.f32 %v8958_v48, %v8947_v55 }
 0x774   : > { %v4419_v6 = vadd.f32 %v4403_v26, %v4091_v19  ;;  %v2372_v16 = vpop.permute.xlu1 %2371  ;;  %v2029_v56 = vpop.permute.xlu0 %2028  ;;  %v8962_v19 = vld [vmem:[#allocation134_spill] sm:$0xff] }
 0x775   : > { %v2434_v29 = vmul.f32 %v2372_v16, %v2354_v36  ;;  %v2106_v1 = vmul.f32 %v2029_v56, %v2010_v7  ;;  %v3010_v59 = vmax.f32 %v2932_v50, 0.0  ;;  %v4244_v26 = vadd.f32 %v8962_v19, %v8135_v5  ;;  %v5542_v7 = vpop.eup %5541 }
 0x776   : > { %4435 = vst [vmem:[%s8163_s19 + $0x8] sm:$0xff] %v4419_v6  ;;  %5377 = vset.pattern.permute.xlu1 %v5571_v21  ;;  %5404 = vset.pattern.permute.xlu0 %v5572_v45 }
 0x777   : > { %v2450_v24 = vadd.f32 %v2434_v29, %v2106_v1  ;;  %2063 = vperm.xlu1 %5377, %v8052_v27   ;;  %3059 = vperm.xlu0 %5404, %v8152_v23   ;;  %v4322_v29 = vmax.f32 %v4244_v26, 0.0  ;;  %v8192_v1 = vmul.f32 %v5542_v7, %v7924_v35 }
 0x779   : > { %v3028_v47 = vpop.permute.xlu1 %3027  ;;  %v2700_v30 = vpop.permute.xlu0 %2699 }
 0x77a   : > { %v2762_v38 = vmul.f32 %v2700_v30, %v2682_v12  ;;  %v3090_v4 = vmul.f32 %v3028_v47, %v3010_v59  ;;  %v8963_v12 = vld [vmem:[#allocation13_spill] sm:$0xff]  ;;  %v2291_v47 = vadd.f32 %v8964_v22, %v8087_v9  ;;  %v8965_v59 = vld [vmem:[#allocation35_spill] sm:$0xff] }
 0x77b   : > { %5378 = vset.pattern.permute.xlu1 %v5570_v54  ;;  %5406 = vset.pattern.permute.xlu0 %v5574_v49  ;;  %v1947_v61 = vadd.f32 %v8963_v12, %v8096_v31 }
 0x77c   : > { %v2778_v43 = vadd.f32 %v2762_v38, %v2450_v24  ;;  %2399 = vperm.xlu1 %5378, %v8052_v27   ;;  %3715 = vperm.xlu0 %5406, %v8152_v23   ;;  %v2619_v38 = vadd.f32 %v8965_v59, %v8104_v3 }
 0x77d   : > { %v2013_v34 = vmax.f32 %v1947_v61, 0.0 }
 0x77e   : > { %v3684_v11 = vpop.permute.xlu1 %3683  ;;  %v3106_v63 = vadd.f32 %v3090_v4, %v2778_v43  ;;  %v3356_v60 = vpop.permute.xlu0 %3355  ;;  %v2357_v4 = vmax.f32 %v2291_v47, 0.0  ;;  %v8966_v43 = vld [vmem:[#allocation78_spill] sm:$0xff]  ;;  %v2685_v41 = vmax.f32 %v2619_v38, 0.0 }
 0x77f   : > { %v3418_v15 = vmul.f32 %v3356_v60, %v3338_v17  ;;  %v3746_v36 = vmul.f32 %v3684_v11, %v3666_v44  ;;  %v2947_v17 = vadd.f32 %v8966_v43, %v8947_v55  ;;  %v8967_v60 = vld [vmem:[#allocation75_spill] sm:$0xff]  ;;  %v8971_v43 = vld [vmem:[#allocation14_spill] sm:$0xff] }
 0x780   : > { %5380 = vset.pattern.permute.xlu1 %v5572_v45  ;;  %5408 = vset.pattern.permute.xlu0 %v5576_v10  ;;  %v3275_v44 = vadd.f32 %v8967_v60, %v8949_v20  ;;  %v8968_v55 = vld [vmem:[#allocation111_spill] sm:$0xff]  ;;  %v8969_v20 = vld [vmem:[#allocation108_spill] sm:$0xff] }
 0x781   : > { %v3434_v25 = vadd.f32 %v3418_v15, %v3106_v63  ;;  %3055 = vperm.xlu1 %5380, %v8052_v27   ;;  %4371 = vperm.xlu0 %5408, %v8152_v23   ;;  %v3013_v15 = vmax.f32 %v2947_v17, 0.0  ;;  %v3603_v26 = vadd.f32 %v8968_v55, %v8951_v57  ;;  %v8970_v57 = vld [vmem:[#allocation135_spill] sm:$0xff]  ;;  %v1942_v17 = vadd.f32 %v8971_v43, %v8096_v31 }
 0x783   : > { %v4340_v6 = vpop.permute.xlu1 %4339  ;;  %v3762_v16 = vadd.f32 %v3746_v36, %v3434_v25  ;;  %v4012_v56 = vpop.permute.xlu0 %4011  ;;  %v3341_v25 = vmax.f32 %v3275_v44, 0.0  ;;  %v2012_v33 = vmax.f32 %v1942_v17, 0.0 }
 0x784   : > { %v4074_v48 = vmul.f32 %v4012_v56, %v3994_v28  ;;  %v4402_v50 = vmul.f32 %v4340_v6, %v4322_v29  ;;  %v3931_v6 = vadd.f32 %v8969_v20, %v8129_v42  ;;  %v8974_v20 = vld [vmem:[#allocation79_spill] sm:$0xff] }
 0x785   : > { %5382 = vset.pattern.permute.xlu1 %v5574_v49  ;;  %5409 = vset.pattern.permute.xlu0 %v5571_v21 }
 0x786   : > { %v4090_v24 = vadd.f32 %v4074_v48, %v3762_v16  ;;  %3711 = vperm.xlu1 %5382, %v8052_v27   ;;  %2083 = vperm.xlu0 %5409, %v8192_v1   ;;  %v5544_v16 = vpop.eup %5543  ;;  %v3669_v48 = vmax.f32 %v3603_v26, 0.0  ;;  %v3997_v22 = vmax.f32 %v3931_v6, 0.0  ;;  %v3012_v6 = vmax.f32 %v8974_v20, 0.0 }
 0x787   : > { %v8229_v47 = vmul.f32 %v5544_v16, %v7938_v46 }
 0x788   : > { %v4418_v30 = vadd.f32 %v4402_v50, %v4090_v24  ;;  %v2044_v35 = vpop.permute.xlu1 %2043  ;;  %v2712_v0 = vpop.permute.xlu0 %2711  ;;  %v4259_v50 = vadd.f32 %v8970_v57, %v8135_v5 }
 0x789   : > { %v2109_v11 = vmul.f32 %v2044_v35, %v2013_v34  ;;  %v2765_v2 = vmul.f32 %v2712_v0, %v2685_v41 }
 0x78a   : > { %4434 = vst [vmem:[%s8163_s19] sm:$0xff] %v4418_v30  ;;  %5384 = vset.pattern.permute.xlu1 %v5576_v10  ;;  %5411 = vset.pattern.permute.xlu0 %v5573_v13  ;;  %v4325_v38 = vmax.f32 %v4259_v50, 0.0 }
 0x78b   : > { %4367 = vperm.xlu1 %5384, %v8052_v27   ;;  %2743 = vperm.xlu0 %5411, %v8192_v1  }
 0x78d   : > { %v2384_v53 = vpop.permute.xlu1 %2383  ;;  %v3368_v19 = vpop.permute.xlu0 %3367 }
 0x78e   : > { %v2437_v63 = vmul.f32 %v2384_v53, %v2357_v4  ;;  %v3421_v56 = vmul.f32 %v3368_v19, %v3341_v25  ;;  %v8972_v53 = vld [vmem:[#allocation46_spill] sm:$0xff] }
 0x78f   : > { %5385 = vset.pattern.permute.xlu1 %v5571_v21  ;;  %5413 = vset.pattern.permute.xlu0 %v5575_v14  ;;  %v2286_v41 = vadd.f32 %v8972_v53, %v8087_v9 }
 0x790   : > { %v2453_v27 = vadd.f32 %v2437_v63, %v2109_v11  ;;  %2058 = vperm.xlu1 %5385, %v8064_v37   ;;  %3399 = vperm.xlu0 %5413, %v8192_v1   ;;  %v8973_v63 = vld [vmem:[#allocation43_spill] sm:$0xff] }
 0x791   : > { %v2614_v60 = vadd.f32 %v8973_v63, %v8104_v3 }
 0x792   : > { %v3040_v7 = vpop.permute.xlu1 %3039  ;;  %v2781_v36 = vadd.f32 %v2765_v2, %v2453_v27  ;;  %v4024_v24 = vpop.permute.xlu0 %4023 }
 0x793   : > { %v3093_v28 = vmul.f32 %v3040_v7, %v3013_v15  ;;  %v4077_v35 = vmul.f32 %v4024_v24, %v3997_v22  ;;  %v5546_v15 = vpop.eup %5545  ;;  %v2684_v55 = vmax.f32 %v2614_v60, 0.0  ;;  %v3668_v22 = vmax.f32 %v8976_v51, 0.0 }
 0x794   : > { %5387 = vset.pattern.permute.xlu1 %v5573_v13  ;;  %5415 = vset.pattern.permute.xlu0 %v5577_v32 }
 0x795   : > { %v3109_v29 = vadd.f32 %v3093_v28, %v2781_v36  ;;  %2723 = vperm.xlu1 %5387, %v8064_v37   ;;  %4055 = vperm.xlu0 %5415, %v8192_v1   ;;  %v8258_v36 = vmul.f32 %v5546_v15, %v7952_v52 }
 0x797   : > { %v3696_v12 = vpop.permute.xlu1 %3695  ;;  %v3437_v61 = vadd.f32 %v3421_v56, %v3109_v29  ;;  %v8255_v26 = vpop.permute.xlu0 %2719 }
 0x798   : > { %v3749_v30 = vmul.f32 %v3696_v12, %v3669_v48  ;;  %v8975_v48 = vld [vmem:[#allocation76_spill] sm:$0xff] }
 0x799   : > { %5389 = vset.pattern.permute.xlu1 %v5575_v14  ;;  %5418 = vset.pattern.permute.xlu0 %v5570_v54  ;;  %v3340_v57 = vmax.f32 %v8975_v48, 0.0 }
 0x79a   : > { %v3765_v59 = vadd.f32 %v3749_v30, %v3437_v61  ;;  %3379 = vperm.xlu1 %5389, %v8064_v37   ;;  %2411 = vperm.xlu0 %5418, %v8229_v47  }
 0x79c   : > { %v4352_v0 = vpop.permute.xlu1 %4351  ;;  %v4093_v34 = vadd.f32 %v4077_v35, %v3765_v59  ;;  %v8265_v56 = vpop.permute.xlu0 %3375 }
 0x79d   : > { %v4405_v4 = vmul.f32 %v4352_v0, %v4325_v38  ;;  %v5548_v38 = vpop.eup %5547 }
 0x79e   : > { %5391 = vset.pattern.permute.xlu1 %v5577_v32  ;;  %5420 = vset.pattern.permute.xlu0 %v5572_v45  ;;  %v8291_v53 = vmul.f32 %v5548_v38, %v7963_v39 }
 0x79f   : > { %v4421_v46 = vadd.f32 %v4405_v4, %v4093_v34  ;;  %4035 = vperm.xlu1 %5391, %v8064_v37   ;;  %3067 = vperm.xlu0 %5420, %v8229_v47   ;;  %v2356_v37 = vmax.f32 %v2286_v41, 0.0 }
 0x7a1   : > { %4437 = vst [vmem:[%s8163_s19 + $0x18] sm:$0xff] %v4421_v46  ;;  %v2039_v11 = vpop.permute.xlu1 %2038  ;;  %v8273_v12 = vpop.permute.xlu0 %4031  ;;  %v8978_v46 = vld [vmem:[#allocation136_spill] sm:$0xff] }
 0x7a2   : > { %v2108_v2 = vmul.f32 %v2039_v11, %v2012_v33  ;;  %v4254_v43 = vadd.f32 %v8978_v46, %v8135_v5  ;;  %v8985_v46 = vld [vmem:[#allocation115_spill] sm:$0xff] }
 0x7a3   : > { %5394 = vset.pattern.permute.xlu1 %v5570_v54  ;;  %5422 = vset.pattern.permute.xlu0 %v5574_v49 }
 0x7a4   : > { %2407 = vperm.xlu1 %5394, %v8107_v58   ;;  %3723 = vperm.xlu0 %5422, %v8229_v47   ;;  %v4324_v33 = vmax.f32 %v4254_v43, 0.0  ;;  %v8986_v43 = vld [vmem:[#allocation137_spill] sm:$0xff] }
 0x7a6   : > { %v2380_v44 = vpop.permute.xlu1 %2379  ;;  %v8284_v0 = vpop.permute.xlu0 %2387 }
 0x7a7   : > { %v2436_v27 = vmul.f32 %v2380_v44, %v2356_v37  ;;  %v8979_v44 = vld [vmem:[#allocation16_spill] sm:$0xff] }
 0x7a8   : > { %5396 = vset.pattern.permute.xlu1 %v5572_v45  ;;  %5424 = vset.pattern.permute.xlu0 %v5576_v10 }
 0x7a9   : > { %v2452_v19 = vadd.f32 %v2436_v27, %v2108_v2  ;;  %3063 = vperm.xlu1 %5396, %v8107_v58   ;;  %4379 = vperm.xlu0 %5424, %v8229_v47   ;;  %v1957_v2 = vadd.f32 %v8979_v44, %v8096_v31  ;;  %v8980_v27 = vld [vmem:[#allocation52_spill] sm:$0xff] }
 0x7aa   : > { %v2301_v15 = vadd.f32 %v8980_v27, %v8087_v9 }
 0x7ab   : > { %v2708_v7 = vpop.permute.xlu1 %2707  ;;  %v8297_v37 = vpop.permute.xlu0 %3043  ;;  %v2015_v62 = vmax.f32 %v1957_v2, 0.0  ;;  %v8987_v2 = vld [vmem:[#allocation17_spill] sm:$0xff] }
 0x7ac   : > { %v2764_v25 = vmul.f32 %v2708_v7, %v2684_v55  ;;  %v8981_v7 = vld [vmem:[#allocation8_spill] sm:$0xff]  ;;  %v1952_v27 = vadd.f32 %v8987_v2, %v8096_v31 }
 0x7ad   : > { %5398 = vset.pattern.permute.xlu1 %v5574_v49  ;;  %5425 = vset.pattern.permute.xlu0 %v5571_v21 }
 0x7ae   : > { %v2780_v28 = vadd.f32 %v2764_v25, %v2452_v19  ;;  %3719 = vperm.xlu1 %5398, %v8107_v58   ;;  %2093 = vperm.xlu0 %5425, %v8258_v36   ;;  %v2629_v25 = vadd.f32 %v8981_v7, %v8104_v3 }
 0x7b0   : > { %v3036_v16 = vpop.permute.xlu1 %3035  ;;  %v8308_v19 = vpop.permute.xlu0 %3699  ;;  %v2687_v20 = vmax.f32 %v2629_v25, 0.0 }
 0x7b1   : > { %v3092_v29 = vmul.f32 %v3036_v16, %v3012_v6 }
 0x7b2   : > { %5400 = vset.pattern.permute.xlu1 %v5576_v10  ;;  %5427 = vset.pattern.permute.xlu0 %v5573_v13  ;;  %v2767_v48 = vmul.f32 %v8255_v26, %v2687_v20 }
 0x7b3   : > { %v3108_v52 = vadd.f32 %v3092_v29, %v2780_v28  ;;  %4375 = vperm.xlu1 %5400, %v8107_v58   ;;  %2751 = vperm.xlu0 %5427, %v8258_v36   ;;  %v8977_v58 = vld [vmem:[#allocation109_spill] sm:$0xff] }
 0x7b4   : > { %v3926_v30 = vadd.f32 %v8977_v58, %v8129_v42 }
 0x7b5   : > { %v3364_v50 = vpop.permute.xlu1 %3363  ;;  %v8317_v6 = vpop.permute.xlu0 %4355 }
 0x7b6   : > { %v3420_v24 = vmul.f32 %v3364_v50, %v3340_v57  ;;  %v3996_v4 = vmax.f32 %v3926_v30, 0.0  ;;  %v8982_v50 = vld [vmem:[#allocation82_spill] sm:$0xff] }
 0x7b7   : > { %5401 = vset.pattern.permute.xlu1 %v5571_v21  ;;  %5429 = vset.pattern.permute.xlu0 %v5575_v14 }
 0x7b8   : > { %v3436_v61 = vadd.f32 %v3420_v24, %v3108_v52  ;;  %2068 = vperm.xlu1 %5401, %v8152_v23   ;;  %3407 = vperm.xlu0 %5429, %v8258_v36   ;;  %v5550_v52 = vpop.eup %5549  ;;  %v3015_v24 = vmax.f32 %v8982_v50, 0.0 }
 0x7b9   : > { %v8327_v30 = vmul.f32 %v5550_v52, %v7976_v18  ;;  %v3671_v18 = vmax.f32 %v8985_v46, 0.0 }
 0x7ba   : > { %v3692_v35 = vpop.permute.xlu1 %3691 }
 0x7bb   : > { %v3748_v59 = vmul.f32 %v3692_v35, %v3668_v22  ;;  %v8983_v22 = vld [vmem:[#allocation80_spill] sm:$0xff] }
 0x7bc   : > { %5403 = vset.pattern.permute.xlu1 %v5573_v13  ;;  %5431 = vset.pattern.permute.xlu0 %v5577_v32  ;;  %v3343_v58 = vmax.f32 %v8983_v22, 0.0 }
 0x7bd   : > { %v3764_v34 = vadd.f32 %v3748_v59, %v3436_v61  ;;  %2731 = vperm.xlu1 %5403, %v8152_v23   ;;  %4063 = vperm.xlu0 %5431, %v8258_v36   ;;  %v8984_v59 = vld [vmem:[#allocation112_spill] sm:$0xff] }
 0x7be   : > { %v3941_v38 = vadd.f32 %v8984_v59, %v8129_v42  ;;  %v3423_v26 = vmul.f32 %v8265_v56, %v3343_v58 }
 0x7bf   : > { %v4020_v17 = vpop.permute.xlu1 %4019 }
 0x7c0   : > { %v4076_v41 = vmul.f32 %v4020_v17, %v3996_v4  ;;  %v4269_v17 = vadd.f32 %v8986_v43, %v8135_v5  ;;  %v8993_v43 = vld [vmem:[#allocation117_spill] sm:$0xff] }
 0x7c1   : > { %5405 = vset.pattern.permute.xlu1 %v5575_v14  ;;  %5434 = vset.pattern.permute.xlu0 %v5570_v54 }
 0x7c2   : > { %v4092_v11 = vadd.f32 %v4076_v41, %v3764_v34  ;;  %3387 = vperm.xlu1 %5405, %v8152_v23   ;;  %2419 = vperm.xlu0 %5434, %v8291_v53   ;;  %v8331_v34 = vpop.permute.xlu0 %2727  ;;  %v4327_v44 = vmax.f32 %v4269_v17, 0.0  ;;  %v3670_v17 = vmax.f32 %v8993_v43, 0.0 }
 0x7c4   : > { %v4348_v63 = vpop.permute.xlu1 %4347 }
 0x7c5   : > { %v4404_v60 = vmul.f32 %v4348_v63, %v4324_v33  ;;  %v3999_v33 = vmax.f32 %v3941_v38, 0.0  ;;  %v8991_v38 = vld [vmem:[#allocation81_spill] sm:$0xff] }
 0x7c6   : > { %5407 = vset.pattern.permute.xlu1 %v5577_v32  ;;  %5436 = vset.pattern.permute.xlu0 %v5572_v45 }
 0x7c7   : > { %v4420_v39 = vadd.f32 %v4404_v60, %v4092_v11  ;;  %4043 = vperm.xlu1 %5407, %v8152_v23   ;;  %3075 = vperm.xlu0 %5436, %v8291_v53   ;;  %v2359_v23 = vmax.f32 %v2301_v15, 0.0  ;;  %v4079_v56 = vmul.f32 %v8273_v12, %v3999_v33  ;;  %v8345_v60 = vpop.permute.xlu0 %3383  ;;  %v8988_v15 = vld [vmem:[#allocation53_spill] sm:$0xff]  ;;  %v8994_v33 = vld [vmem:[#allocation138_spill] sm:$0xff] }
 0x7c9   : > { %4436 = vst [vmem:[%s8163_s19 + $0x10] sm:$0xff] %v4420_v39  ;;  %v2054_v55 = vpop.permute.xlu1 %2053 }
 0x7ca   : > { %v2111_v16 = vmul.f32 %v2054_v55, %v2015_v62  ;;  %v2296_v55 = vadd.f32 %v8988_v15, %v8087_v9 }
 0x7cb   : > { %5410 = vset.pattern.permute.xlu1 %v5570_v54  ;;  %5438 = vset.pattern.permute.xlu0 %v5574_v49 }
 0x7cc   : > { %2415 = vperm.xlu1 %5410, %v8192_v1   ;;  %3731 = vperm.xlu0 %5438, %v8291_v53   ;;  %v2358_v62 = vmax.f32 %v2296_v55, 0.0 }
 0x7ce   : > { %v2392_v28 = vpop.permute.xlu1 %2391 }
 0x7cf   : > { %v2439_v29 = vmul.f32 %v2392_v28, %v2359_v23  ;;  %v8357_v23 = vpop.permute.xlu0 %4039  ;;  %v8989_v28 = vld [vmem:[#allocation30_spill] sm:$0xff] }
 0x7d0   : > { %5412 = vset.pattern.permute.xlu1 %v5572_v45  ;;  %5440 = vset.pattern.permute.xlu0 %v5576_v10  ;;  %v2624_v20 = vadd.f32 %v8989_v28, %v8104_v3  ;;  %v8997_v28 = vld [vmem:[#allocation49_spill] sm:$0xff] }
 0x7d1   : > { %v2455_v57 = vadd.f32 %v2439_v29, %v2111_v16  ;;  %3071 = vperm.xlu1 %5412, %v8192_v1   ;;  %4387 = vperm.xlu0 %5440, %v8291_v53   ;;  %v2438_v29 = vmul.f32 %v8284_v0, %v2358_v62 }
 0x7d2   : > { %v2686_v50 = vmax.f32 %v2624_v20, 0.0  ;;  %v2639_v20 = vadd.f32 %v8997_v28, %v8104_v3 }
 0x7d3   : > { %v3048_v61 = vpop.permute.xlu1 %3047  ;;  %v2783_v51 = vadd.f32 %v2767_v48, %v2455_v57  ;;  %v5552_v48 = vpop.eup %5551 }
 0x7d4   : > { %v3095_v35 = vmul.f32 %v3048_v61, %v3015_v24  ;;  %v8367_v24 = vpop.permute.xlu0 %2395  ;;  %v8371_v58 = vmul.f32 %v5552_v48, %v7988_v8  ;;  %v2689_v48 = vmax.f32 %v2639_v20, 0.0  ;;  %v9005_v20 = vld [vmem:[#allocation51_spill] sm:$0xff] }
 0x7d5   : > { %5414 = vset.pattern.permute.xlu1 %v5574_v49  ;;  %5441 = vset.pattern.permute.xlu0 %v5571_v21 }
 0x7d6   : > { %v3111_v4 = vadd.f32 %v3095_v35, %v2783_v51  ;;  %3727 = vperm.xlu1 %5414, %v8192_v1   ;;  %2103 = vperm.xlu0 %5441, %v8327_v30   ;;  %v8990_v51 = vld [vmem:[#allocation83_spill] sm:$0xff] }
 0x7d7   : > { %v3014_v22 = vmax.f32 %v8990_v51, 0.0 }
 0x7d8   : > { %v3704_v41 = vpop.permute.xlu1 %3703  ;;  %v3439_v11 = vadd.f32 %v3423_v26, %v3111_v4  ;;  %v3342_v26 = vmax.f32 %v8991_v38, 0.0  ;;  %v8992_v4 = vld [vmem:[#allocation114_spill] sm:$0xff] }
 0x7d9   : > { %v3751_v63 = vmul.f32 %v3704_v41, %v3671_v18  ;;  %v3094_v35 = vmul.f32 %v8297_v37, %v3014_v22  ;;  %v3936_v46 = vadd.f32 %v8992_v4, %v8129_v42  ;;  %v8382_v41 = vpop.permute.xlu0 %3051  ;;  %v4264_v37 = vadd.f32 %v8994_v33, %v8135_v5  ;;  %v8998_v22 = vld [vmem:[#allocation86_spill] sm:$0xff]  ;;  %v9002_v33 = vld [vmem:[#allocation139_spill] sm:$0xff] }
 0x7da   : > { %5416 = vset.pattern.permute.xlu1 %v5576_v10  ;;  %5443 = vset.pattern.permute.xlu0 %v5573_v13 }
 0x7db   : > { %v3767_v39 = vadd.f32 %v3751_v63, %v3439_v11  ;;  %4383 = vperm.xlu1 %5416, %v8192_v1   ;;  %2759 = vperm.xlu0 %5443, %v8327_v30   ;;  %v2014_v1 = vmax.f32 %v1952_v27, 0.0  ;;  %v3750_v63 = vmul.f32 %v8308_v19, %v3670_v17  ;;  %v4326_v27 = vmax.f32 %v4264_v37, 0.0  ;;  %v9001_v17 = vld [vmem:[#allocation119_spill] sm:$0xff] }
 0x7dc   : > { %v4279_v37 = vadd.f32 %v9002_v33, %v8135_v5 }
 0x7dd   : > { %v4360_v7 = vpop.permute.xlu1 %4359  ;;  %v4095_v25 = vadd.f32 %v4079_v56, %v3767_v39  ;;  %v3998_v39 = vmax.f32 %v3936_v46, 0.0  ;;  %v8391_v55 = vpop.permute.xlu0 %3707 }
 0x7de   : > { %v4407_v40 = vmul.f32 %v4360_v7, %v4327_v44  ;;  %v4406_v7 = vmul.f32 %v8317_v6, %v4326_v27 }
 0x7df   : > { %5417 = vset.pattern.permute.xlu1 %v5571_v21  ;;  %5445 = vset.pattern.permute.xlu0 %v5575_v14 }
 0x7e0   : > { %v4423_v12 = vadd.f32 %v4407_v40, %v4095_v25  ;;  %2078 = vperm.xlu1 %5417, %v8229_v47   ;;  %3415 = vperm.xlu0 %5445, %v8327_v30   ;;  %v8996_v40 = vld [vmem:[#allocation4_spill] sm:$0xff] }
 0x7e1   : > { %v8407_v6 = vpop.permute.xlu0 %4363 }
 0x7e2   : > { %4439 = vst [vmem:[%s8163_s19 + $0x28] sm:$0xff] %v4423_v12  ;;  %v2049_v16 = vpop.permute.xlu1 %2048  ;;  %v2311_v12 = vadd.f32 %v8996_v40, %v8087_v9 }
 0x7e3   : > { %v2110_v52 = vmul.f32 %v2049_v16, %v2014_v1 }
 0x7e4   : > { %5419 = vset.pattern.permute.xlu1 %v5573_v13  ;;  %5447 = vset.pattern.permute.xlu0 %v5577_v32 }
 0x7e5   : > { %v2454_v57 = vadd.f32 %v2438_v29, %v2110_v52  ;;  %2739 = vperm.xlu1 %5419, %v8229_v47   ;;  %4071 = vperm.xlu0 %5447, %v8327_v30   ;;  %v2361_v29 = vmax.f32 %v2311_v12, 0.0 }
 0x7e7   : > { %v2716_v61 = vpop.permute.xlu1 %2715 }
 0x7e8   : > { %v2766_v0 = vmul.f32 %v2716_v61, %v2686_v50  ;;  %v2769_v61 = vmul.f32 %v8331_v34, %v2689_v48 }
 0x7e9   : > { %5421 = vset.pattern.permute.xlu1 %v5575_v14  ;;  %5449 = vset.pattern.permute.xlu0 %v5570_v54 }
 0x7ea   : > { %v2782_v59 = vadd.f32 %v2766_v0, %v2454_v57  ;;  %3395 = vperm.xlu1 %5421, %v8229_v47   ;;  %2427 = vperm.xlu0 %5449, %v8371_v58   ;;  %v3017_v0 = vmax.f32 %v8998_v22, 0.0  ;;  %v9006_v22 = vld [vmem:[#allocation87_spill] sm:$0xff] }
 0x7ec   : > { %v3372_v18 = vpop.permute.xlu1 %3371  ;;  %v3110_v8 = vadd.f32 %v3094_v35, %v2782_v59  ;;  %v8415_v35 = vpop.permute.xlu0 %2073 }
 0x7ed   : > { %v3422_v11 = vmul.f32 %v3372_v18, %v3342_v26  ;;  %v8999_v26 = vld [vmem:[#allocation84_spill] sm:$0xff] }
 0x7ee   : > { %5423 = vset.pattern.permute.xlu1 %v5577_v32  ;;  %5451 = vset.pattern.permute.xlu0 %v5572_v45  ;;  %v3345_v4 = vmax.f32 %v8999_v26, 0.0  ;;  %v9000_v18 = vld [vmem:[#allocation116_spill] sm:$0xff] }
 0x7ef   : > { %v3438_v56 = vadd.f32 %v3422_v11, %v3110_v8  ;;  %4051 = vperm.xlu1 %5423, %v8229_v47   ;;  %3083 = vperm.xlu0 %5451, %v8371_v58   ;;  %v8995_v47 = vld [vmem:[#allocation19_spill] sm:$0xff]  ;;  %v3951_v8 = vadd.f32 %v9000_v18, %v8129_v42  ;;  %v3673_v11 = vmax.f32 %v9001_v17, 0.0  ;;  %v9008_v18 = vld [vmem:[#allocation118_spill] sm:$0xff]  ;;  %v9009_v17 = vld [vmem:[#allocation121_spill] sm:$0xff] }
 0x7f0   : > { %v1967_v25 = vadd.f32 %v8995_v47, %v8096_v31  ;;  %v3425_v43 = vmul.f32 %v8345_v60, %v3345_v4  ;;  %v9007_v4 = vld [vmem:[#allocation85_spill] sm:$0xff] }
 0x7f1   : > { %v4028_v44 = vpop.permute.xlu1 %4027  ;;  %v3766_v2 = vadd.f32 %v3750_v63, %v3438_v56  ;;  %v8426_v63 = vpop.permute.xlu0 %2735 }
 0x7f2   : > { %v4078_v15 = vmul.f32 %v4028_v44, %v3998_v39  ;;  %v2017_v16 = vmax.f32 %v1967_v25, 0.0  ;;  %v4001_v44 = vmax.f32 %v3951_v8, 0.0  ;;  %v3946_v8 = vadd.f32 %v9008_v18, %v8129_v42  ;;  %v9018_v18 = vld [vmem:[#allocation141_spill] sm:$0xff] }
 0x7f3   : > { %5426 = vset.pattern.permute.xlu1 %v5570_v54  ;;  %5453 = vset.pattern.permute.xlu0 %v5574_v49 }
 0x7f4   : > { %v4094_v19 = vadd.f32 %v4078_v15, %v3766_v2  ;;  %2423 = vperm.xlu1 %5426, %v8258_v36   ;;  %3739 = vperm.xlu0 %5453, %v8371_v58   ;;  %v4081_v27 = vmul.f32 %v8357_v23, %v4001_v44  ;;  %v9003_v15 = vld [vmem:[#allocation20_spill] sm:$0xff] }
 0x7f5   : > { %v8435_v12 = vpop.permute.xlu0 %3391 }
 0x7f6   : > { %v4422_v1 = vadd.f32 %v4406_v7, %v4094_v19  ;;  %v2064_v62 = vpop.permute.xlu1 %2063  ;;  %v1962_v7 = vadd.f32 %v9003_v15, %v8096_v31  ;;  %v9004_v19 = vld [vmem:[#allocation3_spill] sm:$0xff] }
 0x7f7   : > { %v2113_v57 = vmul.f32 %v2064_v62, %v2017_v16  ;;  %v2306_v47 = vadd.f32 %v9004_v19, %v8087_v9  ;;  %v2634_v16 = vadd.f32 %v9005_v20, %v8104_v3 }
 0x7f8   : > { %4438 = vst [vmem:[%s8163_s19 + $0x20] sm:$0xff] %v4422_v1  ;;  %5428 = vset.pattern.permute.xlu1 %v5572_v45  ;;  %5455 = vset.pattern.permute.xlu0 %v5576_v10  ;;  %v2016_v23 = vmax.f32 %v1962_v7, 0.0 }
 0x7f9   : > { %3079 = vperm.xlu1 %5428, %v8258_v36   ;;  %4395 = vperm.xlu0 %5455, %v8371_v58   ;;  %v2360_v28 = vmax.f32 %v2306_v47, 0.0 }
 0x7fb   : > { %v2400_v52 = vpop.permute.xlu1 %2399 }
 0x7fc   : > { %v2441_v50 = vmul.f32 %v2400_v52, %v2361_v29  ;;  %v2440_v52 = vmul.f32 %v8367_v24, %v2360_v28 }
 0x7fd   : > { %5430 = vset.pattern.permute.xlu1 %v5574_v49 }
 0x7fe   : > { %v2457_v51 = vadd.f32 %v2441_v50, %v2113_v57  ;;  %3735 = vperm.xlu1 %5430, %v8258_v36   ;;  %v8443_v57 = vpop.permute.xlu0 %4047 }
 0x800   : > { %v3056_v59 = vpop.permute.xlu1 %3055  ;;  %v2785_v38 = vadd.f32 %v2769_v61, %v2457_v51  ;;  %v2688_v61 = vmax.f32 %v2634_v16, 0.0 }
 0x801   : > { %v3097_v46 = vmul.f32 %v3056_v59, %v3017_v0  ;;  %v3016_v0 = vmax.f32 %v9006_v22, 0.0  ;;  %v9015_v22 = vld [vmem:[#allocation88_spill] sm:$0xff] }
 0x802   : > { %5432 = vset.pattern.permute.xlu1 %v5576_v10  ;;  %v8450_v26 = vpop.permute.xlu0 %2403 }
 0x803   : > { %v3113_v34 = vadd.f32 %v3097_v46, %v2785_v38  ;;  %4391 = vperm.xlu1 %5432, %v8258_v36   ;;  %v4329_v36 = vmax.f32 %v4279_v37, 0.0  ;;  %v3096_v38 = vmul.f32 %v8382_v41, %v3016_v0  ;;  %v3344_v46 = vmax.f32 %v9007_v4, 0.0  ;;  %v9010_v37 = vld [vmem:[#allocation140_spill] sm:$0xff]  ;;  %v9017_v4 = vld [vmem:[#allocation123_spill] sm:$0xff] }
 0x804   : > { %v3347_v0 = vmax.f32 %v9015_v22, 0.0  ;;  %v9026_v22 = vld [vmem:[#allocation142_spill] sm:$0xff] }
 0x805   : > { %v3712_v56 = vpop.permute.xlu1 %3711  ;;  %v3441_v39 = vadd.f32 %v3425_v43, %v3113_v34 }
 0x806   : > { %v3753_v2 = vmul.f32 %v3712_v56, %v3673_v11  ;;  %v3672_v11 = vmax.f32 %v9009_v17, 0.0  ;;  %v4274_v56 = vadd.f32 %v9010_v37, %v8135_v5  ;;  %v8462_v44 = vpop.permute.xlu0 %3059 }
 0x807   : > { %5433 = vset.pattern.permute.xlu1 %v5571_v21 }
 0x808   : > { %v3769_v60 = vadd.f32 %v3753_v2, %v3441_v39  ;;  %2088 = vperm.xlu1 %5433, %v8291_v53   ;;  %v3752_v41 = vmul.f32 %v8391_v55, %v3672_v11  ;;  %v9011_v2 = vld [vmem:[#allocation22_spill] sm:$0xff]  ;;  %v4328_v19 = vmax.f32 %v4274_v56, 0.0  ;;  %v9019_v56 = vld [vmem:[#allocation23_spill] sm:$0xff] }
 0x80a   : > { %v4368_v25 = vpop.permute.xlu1 %4367  ;;  %v4097_v40 = vadd.f32 %v4081_v27, %v3769_v60  ;;  %v1977_v27 = vadd.f32 %v9011_v2, %v8096_v31  ;;  %v9012_v60 = vld [vmem:[#allocation60_spill] sm:$0xff] }
 0x80b   : > { %v4409_v1 = vmul.f32 %v4368_v25, %v4329_v36  ;;  %v2321_v36 = vadd.f32 %v9012_v60, %v8087_v9  ;;  %v4408_v25 = vmul.f32 %v8407_v6, %v4328_v19  ;;  %v9014_v6 = vld [vmem:[#allocation90_spill] sm:$0xff] }
 0x80c   : > { %5435 = vset.pattern.permute.xlu1 %v5573_v13 }
 0x80d   : > { %v4425_v62 = vadd.f32 %v4409_v1, %v4097_v40  ;;  %2747 = vperm.xlu1 %5435, %v8291_v53   ;;  %v2019_v1 = vmax.f32 %v1977_v27, 0.0 }
 0x80f   : > { %4441 = vst [vmem:[%s8163_s19 + $0x38] sm:$0xff] %v4425_v62  ;;  %v2059_v29 = vpop.permute.xlu1 %2058  ;;  %v2363_v62 = vmax.f32 %v2321_v36, 0.0 }
 0x810   : > { %v2112_v48 = vmul.f32 %v2059_v29, %v2016_v23  ;;  %v8473_v23 = vpop.permute.xlu0 %3715  ;;  %v2115_v29 = vmul.f32 %v8415_v35, %v2019_v1  ;;  %v9016_v35 = vld [vmem:[#allocation120_spill] sm:$0xff] }
 0x811   : > { %5437 = vset.pattern.permute.xlu1 %v5575_v14 }
 0x812   : > { %v2456_v50 = vadd.f32 %v2440_v52, %v2112_v48  ;;  %3403 = vperm.xlu1 %5437, %v8291_v53  }
 0x814   : > { %v2724_v51 = vpop.permute.xlu1 %2723 }
 0x815   : > { %v2768_v59 = vmul.f32 %v2724_v51, %v2688_v61 }
 0x816   : > { %5439 = vset.pattern.permute.xlu1 %v5577_v32 }
 0x817   : > { %v2784_v24 = vadd.f32 %v2768_v59, %v2456_v50  ;;  %4059 = vperm.xlu1 %5439, %v8291_v53   ;;  %v4000_v53 = vmax.f32 %v3946_v8, 0.0  ;;  %v3019_v50 = vmax.f32 %v9014_v6, 0.0  ;;  %v8482_v59 = vpop.permute.xlu0 %4371  ;;  %v4289_v8 = vadd.f32 %v9018_v18, %v8135_v5 }
 0x819   : > { %v3380_v43 = vpop.permute.xlu1 %3379  ;;  %v3112_v34 = vadd.f32 %v3096_v38, %v2784_v24  ;;  %v3961_v24 = vadd.f32 %v9016_v35, %v8129_v42 }
 0x81a   : > { %v3424_v33 = vmul.f32 %v3380_v43, %v3344_v46  ;;  %v3675_v46 = vmax.f32 %v9017_v4, 0.0 }
 0x81b   : > { %5442 = vset.pattern.permute.xlu1 %v5570_v54  ;;  %v9013_v54 = vld [vmem:[#allocation28_spill] sm:$0xff]  ;;  %v4003_v17 = vmax.f32 %v3961_v24, 0.0  ;;  %v9028_v24 = vld [vmem:[#allocation62_spill] sm:$0xff] }
 0x81c   : > { %v3440_v39 = vadd.f32 %v3424_v33, %v3112_v34  ;;  %2431 = vperm.xlu1 %5442, %v8327_v30   ;;  %v2649_v55 = vadd.f32 %v9013_v54, %v8104_v3  ;;  %v2084_v33 = vpop.permute.xlu0 %2083 }
 0x81d   : > { %v4083_v37 = vmul.f32 %v8443_v57, %v4003_v17 }
 0x81e   : > { %v4036_v15 = vpop.permute.xlu1 %4035  ;;  %v3768_v7 = vadd.f32 %v3752_v41, %v3440_v39  ;;  %v2691_v16 = vmax.f32 %v2649_v55, 0.0  ;;  %v1972_v41 = vadd.f32 %v9019_v56, %v8096_v31  ;;  %v9020_v39 = vld [vmem:[#allocation61_spill] sm:$0xff] }
 0x81f   : > { %v4080_v47 = vmul.f32 %v4036_v15, %v4000_v53  ;;  %v2316_v53 = vadd.f32 %v9020_v39, %v8087_v9 }
 0x820   : > { %5444 = vset.pattern.permute.xlu1 %v5572_v45  ;;  %v2771_v45 = vmul.f32 %v8426_v63, %v2691_v16  ;;  %v2744_v36 = vpop.permute.xlu0 %2743  ;;  %v2018_v57 = vmax.f32 %v1972_v41, 0.0 }
 0x821   : > { %v4096_v40 = vadd.f32 %v4080_v47, %v3768_v7  ;;  %3087 = vperm.xlu1 %5444, %v8327_v30   ;;  %v2362_v15 = vmax.f32 %v2316_v53, 0.0  ;;  %v9021_v7 = vld [vmem:[#allocation41_spill] sm:$0xff] }
 0x822   : > { %v2644_v19 = vadd.f32 %v9021_v7, %v8104_v3  ;;  %v9031_v7 = vld [vmem:[#allocation92_spill] sm:$0xff] }
 0x823   : > { %v4424_v28 = vadd.f32 %v4408_v25, %v4096_v40  ;;  %v2408_v20 = vpop.permute.xlu1 %2407  ;;  %v2442_v54 = vmul.f32 %v8450_v26, %v2362_v15  ;;  %v9023_v26 = vld [vmem:[#allocation89_spill] sm:$0xff] }
 0x824   : > { %v2443_v52 = vmul.f32 %v2408_v20, %v2363_v62  ;;  %v3400_v40 = vpop.permute.xlu0 %3399  ;;  %v9022_v62 = vld [vmem:[#allocation91_spill] sm:$0xff] }
 0x825   : > { %4440 = vst [vmem:[%s8163_s19 + $0x30] sm:$0xff] %v4424_v28  ;;  %5446 = vset.pattern.permute.xlu1 %v5574_v49  ;;  %v3427_v49 = vmul.f32 %v8435_v12, %v3347_v0  ;;  %v4331_v12 = vmax.f32 %v4289_v8, 0.0  ;;  %v3018_v28 = vmax.f32 %v9022_v62, 0.0  ;;  %v4284_v0 = vadd.f32 %v9026_v22, %v8135_v5  ;;  %v9034_v62 = vld [vmem:[#allocation144_spill] sm:$0xff] }
 0x826   : > { %v2459_v48 = vadd.f32 %v2443_v52, %v2115_v29  ;;  %3743 = vperm.xlu1 %5446, %v8327_v30   ;;  %v3346_v52 = vmax.f32 %v9023_v26, 0.0 }
 0x827   : > { %v3098_v16 = vmul.f32 %v8462_v44, %v3018_v28  ;;  %v4299_v28 = vadd.f32 %v9034_v62, %v8135_v5  ;;  %v9045_v62 = vld [vmem:[#allocation58_spill] sm:$0xff] }
 0x828   : > { %v3064_v61 = vpop.permute.xlu1 %3063  ;;  %v2787_v51 = vadd.f32 %v2771_v45, %v2459_v48  ;;  %v4056_v48 = vpop.permute.xlu0 %4055 }
 0x829   : > { %v3099_v38 = vmul.f32 %v3064_v61, %v3019_v50  ;;  %v9025_v50 = vld [vmem:[#allocation125_spill] sm:$0xff] }
 0x82a   : > { %5448 = vset.pattern.permute.xlu1 %v5571_v21  ;;  %v3674_v61 = vmax.f32 %v9025_v50, 0.0 }
 0x82b   : > { %v3115_v63 = vadd.f32 %v3099_v38, %v2787_v51  ;;  %2098 = vperm.xlu1 %5448, %v8371_v58  }
 0x82c   : > { %v2412_v18 = vpop.permute.xlu0 %2411 }
 0x82d   : > { %v3720_v43 = vpop.permute.xlu1 %3719  ;;  %v3443_v34 = vadd.f32 %v3427_v49, %v3115_v63  ;;  %v2331_v49 = vadd.f32 %v9028_v24, %v8087_v9 }
 0x82e   : > { %v3755_v11 = vmul.f32 %v3720_v43, %v3675_v46  ;;  %v4330_v46 = vmax.f32 %v4284_v0, 0.0  ;;  %v9029_v43 = vld [vmem:[#allocation54_spill] sm:$0xff] }
 0x82f   : > { %5450 = vset.pattern.permute.xlu1 %v5573_v13 }
 0x830   : > { %v3771_v21 = vadd.f32 %v3755_v11, %v3443_v34  ;;  %2755 = vperm.xlu1 %5450, %v8371_v58   ;;  %v2659_v34 = vadd.f32 %v9029_v43, %v8104_v3  ;;  %v4410_v17 = vmul.f32 %v8482_v59, %v4330_v46  ;;  %v3068_v53 = vpop.permute.xlu0 %3067  ;;  %v9032_v59 = vld [vmem:[#allocation124_spill] sm:$0xff] }
 0x832   : > { %v4376_v2 = vpop.permute.xlu1 %4375  ;;  %v4099_v27 = vadd.f32 %v4083_v37, %v3771_v21  ;;  %v2365_v37 = vmax.f32 %v2331_v49, 0.0  ;;  %v2693_v56 = vmax.f32 %v2659_v34, 0.0 }
 0x833   : > { %v4411_v60 = vmul.f32 %v4376_v2, %v4331_v12 }
 0x834   : > { %5452 = vset.pattern.permute.xlu1 %v5575_v14  ;;  %v2690_v14 = vmax.f32 %v2644_v19, 0.0  ;;  %v2773_v2 = vmul.f32 %v2744_v36, %v2693_v56  ;;  %v3349_v19 = vmax.f32 %v9031_v7, 0.0 }
 0x835   : > { %v4427_v13 = vadd.f32 %v4411_v60, %v4099_v27  ;;  %3411 = vperm.xlu1 %5452, %v8371_v58   ;;  %v9030_v60 = vld [vmem:[#allocation94_spill] sm:$0xff] }
 0x837   : > { %4443 = vst [vmem:[%s8163_s19 + $0x48] sm:$0xff] %v4427_v13  ;;  %v2069_v47 = vpop.permute.xlu1 %2068  ;;  %v3021_v13 = vmax.f32 %v9030_v60, 0.0  ;;  %v9042_v60 = vld [vmem:[#allocation146_spill] sm:$0xff] }
 0x838   : > { %v2114_v55 = vmul.f32 %v2069_v47, %v2018_v57 }
 0x839   : > { %5454 = vset.pattern.permute.xlu1 %v5577_v32  ;;  %v9024_v32 = vld [vmem:[#allocation122_spill] sm:$0xff] }
 0x83a   : > { %v2458_v25 = vadd.f32 %v2442_v54, %v2114_v55  ;;  %4067 = vperm.xlu1 %5454, %v8371_v58   ;;  %v3956_v45 = vadd.f32 %v9024_v32, %v8129_v42  ;;  %v3971_v54 = vadd.f32 %v9032_v59, %v8129_v42  ;;  %v3429_v55 = vmul.f32 %v3400_v40, %v3349_v19  ;;  %v9036_v40 = vld [vmem:[#allocation63_spill] sm:$0xff]  ;;  %v9044_v59 = vld [vmem:[#allocation64_spill] sm:$0xff] }
 0x83b   : > { %v4333_v32 = vmax.f32 %v4299_v28, 0.0  ;;  %v2326_v50 = vadd.f32 %v9036_v40, %v8087_v9  ;;  %v2669_v28 = vadd.f32 %v9045_v62, %v8104_v3 }
 0x83c   : > { %v2732_v1 = vpop.permute.xlu1 %2731  ;;  %v4002_v38 = vmax.f32 %v3956_v45, 0.0 }
 0x83d   : > { %v2770_v20 = vmul.f32 %v2732_v1, %v2690_v14  ;;  %v9033_v1 = vld [vmem:[#allocation127_spill] sm:$0xff] }
 0x83e   : > { %5456 = vset.pattern.permute.xlu1 %v5576_v10  ;;  %v3754_v10 = vmul.f32 %v8473_v23, %v3674_v61 }
 0x83f   : > { %v2786_v29 = vadd.f32 %v2770_v20, %v2458_v25  ;;  %4399 = vperm.xlu1 %5456, %v8327_v30   ;;  %v9027_v30 = vld [vmem:[#allocation26_spill] sm:$0xff]  ;;  %v3724_v25 = vpop.permute.xlu0 %3723 }
 0x840   : > { %v1987_v35 = vadd.f32 %v9027_v30, %v8096_v31 }
 0x841   : > { %v3388_v58 = vpop.permute.xlu1 %3387  ;;  %v3114_v6 = vadd.f32 %v3098_v16, %v2786_v29  ;;  %v4005_v16 = vmax.f32 %v3971_v54, 0.0  ;;  %v2341_v54 = vadd.f32 %v9044_v59, %v8087_v9 }
 0x842   : > { %v3426_v51 = vmul.f32 %v3388_v58, %v3346_v52  ;;  %v2021_v11 = vmax.f32 %v1987_v35, 0.0  ;;  %v9035_v58 = vld [vmem:[#allocation27_spill] sm:$0xff] }
 0x843   : > { %v4085_v26 = vmul.f32 %v4056_v48, %v4005_v16  ;;  %v4380_v45 = vpop.permute.xlu0 %4379 }
 0x844   : > { %v3442_v44 = vadd.f32 %v3426_v51, %v3114_v6  ;;  %v2117_v41 = vmul.f32 %v2084_v33, %v2021_v11  ;;  %v3677_v33 = vmax.f32 %v9033_v1, 0.0  ;;  %v1982_v6 = vadd.f32 %v9035_v58, %v8096_v31 }
 0x846   : > { %v4044_v63 = vpop.permute.xlu1 %4043  ;;  %v3770_v4 = vadd.f32 %v3754_v10, %v3442_v44  ;;  %v2020_v10 = vmax.f32 %v1982_v6, 0.0  ;;  %v2364_v44 = vmax.f32 %v2326_v50, 0.0 }
 0x847   : > { %v4082_v8 = vmul.f32 %v4044_v63, %v4002_v38  ;;  %v9037_v38 = vld [vmem:[#allocation2_spill] sm:$0xff]  ;;  %v2094_v35 = vpop.permute.xlu0 %2093 }
 0x848   : > { %v2654_v30 = vadd.f32 %v9037_v38, %v8104_v3  ;;  %v2444_v24 = vmul.f32 %v2412_v18, %v2364_v44  ;;  %v9047_v44 = vld [vmem:[#allocation96_spill] sm:$0xff] }
 0x849   : > { %v4098_v23 = vadd.f32 %v4082_v8, %v3770_v4  ;;  %v9038_v8 = vld [vmem:[#allocation95_spill] sm:$0xff]  ;;  %v3351_v38 = vmax.f32 %v9047_v44, 0.0 }
 0x84a   : > { %v2692_v4 = vmax.f32 %v2654_v30, 0.0  ;;  %v3020_v43 = vmax.f32 %v9038_v8, 0.0  ;;  %v9048_v30 = vld [vmem:[#allocation143_spill] sm:$0xff] }
 0x84b   : > { %v4426_v21 = vadd.f32 %v4410_v17, %v4098_v23  ;;  %v2416_v12 = vpop.permute.xlu1 %2415  ;;  %v2752_v34 = vpop.permute.xlu0 %2751 }
 0x84c   : > { %v2445_v39 = vmul.f32 %v2416_v12, %v2365_v37  ;;  %v3100_v23 = vmul.f32 %v3068_v53, %v3020_v43  ;;  %v9039_v37 = vld [vmem:[#allocation93_spill] sm:$0xff]  ;;  %v9040_v12 = vld [vmem:[#allocation126_spill] sm:$0xff]  ;;  %v9043_v53 = vld [vmem:[#allocation39_spill] sm:$0xff] }
 0x84d   : > { %4442 = vst [vmem:[%s8163_s19 + $0x40] sm:$0xff] %v4426_v21  ;;  %v3348_v21 = vmax.f32 %v9039_v37, 0.0  ;;  %v3966_v56 = vadd.f32 %v9040_v12, %v8129_v42  ;;  %v9051_v12 = vld [vmem:[#allocation40_spill] sm:$0xff] }
 0x84e   : > { %v2461_v27 = vadd.f32 %v2445_v39, %v2117_v41 }
 0x84f   : > { %v4004_v19 = vmax.f32 %v3966_v56, 0.0  ;;  %v1992_v56 = vadd.f32 %v9051_v12, %v8096_v31 }
 0x850   : > { %v3072_v57 = vpop.permute.xlu1 %3071  ;;  %v2789_v15 = vadd.f32 %v2773_v2, %v2461_v27  ;;  %v9041_v2 = vld [vmem:[#allocation128_spill] sm:$0xff] }
 0x851   : > { %v3101_v47 = vmul.f32 %v3072_v57, %v3021_v13  ;;  %v3676_v27 = vmax.f32 %v9041_v2, 0.0  ;;  %v4294_v13 = vadd.f32 %v9042_v60, %v8135_v5  ;;  %v3408_v57 = vpop.permute.xlu0 %3407 }
 0x853   : > { %v3117_v14 = vadd.f32 %v3101_v47, %v2789_v15  ;;  %v3756_v15 = vmul.f32 %v3724_v25, %v3676_v27  ;;  %v1997_v47 = vadd.f32 %v9043_v53, %v8096_v31  ;;  %v4332_v1 = vmax.f32 %v4294_v13, 0.0 }
 0x855   : > { %v3728_v36 = vpop.permute.xlu1 %3727  ;;  %v3445_v20 = vadd.f32 %v3429_v55, %v3117_v14  ;;  %v2023_v25 = vmax.f32 %v1997_v47, 0.0 }
 0x856   : > { %v3757_v29 = vmul.f32 %v3728_v36, %v3677_v33  ;;  %v4412_v36 = vmul.f32 %v4380_v45, %v4332_v1 }
 0x857   : > { %v2119_v58 = vmul.f32 %v2094_v35, %v2023_v25  ;;  %v9050_v35 = vld [vmem:[#allocation147_spill] sm:$0xff]  ;;  %v9055_v25 = vld [vmem:[#allocation97_spill] sm:$0xff] }
 0x858   : > { %v3773_v52 = vadd.f32 %v3757_v29, %v3445_v20  ;;  %v4064_v20 = vpop.permute.xlu0 %4063  ;;  %v2367_v29 = vmax.f32 %v2341_v54, 0.0 }
 0x85a   : > { %v4384_v61 = vpop.permute.xlu1 %4383  ;;  %v4101_v51 = vadd.f32 %v4085_v26, %v3773_v52 }
 0x85b   : > { %v4413_v22 = vmul.f32 %v4384_v61, %v4333_v32  ;;  %v2695_v32 = vmax.f32 %v2669_v28, 0.0  ;;  %v9046_v61 = vld [vmem:[#allocation98_spill] sm:$0xff] }
 0x85d   : > { %v4429_v0 = vadd.f32 %v4413_v22, %v4101_v51  ;;  %v2775_v40 = vmul.f32 %v2752_v34, %v2695_v32  ;;  %v3023_v51 = vmax.f32 %v9046_v61, 0.0  ;;  %v2420_v22 = vpop.permute.xlu0 %2419  ;;  %v9058_v61 = vld [vmem:[#allocation148_spill] sm:$0xff] }
 0x85f   : > { %4445 = vst [vmem:[%s8163_s19 + $0x58] sm:$0xff] %v4429_v0  ;;  %v2079_v48 = vpop.permute.xlu1 %2078 }
 0x860   : > { %v2116_v49 = vmul.f32 %v2079_v48, %v2020_v10  ;;  %v3981_v48 = vadd.f32 %v9048_v30, %v8129_v42  ;;  %v9060_v30 = vld [vmem:[#allocation68_spill] sm:$0xff] }
 0x861   : > { %v3076_v8 = vpop.permute.xlu0 %3075 }
 0x862   : > { %v2460_v63 = vadd.f32 %v2444_v24, %v2116_v49  ;;  %v3431_v24 = vmul.f32 %v3408_v57, %v3351_v38  ;;  %v2022_v57 = vmax.f32 %v1992_v56, 0.0  ;;  %v9059_v38 = vld [vmem:[#allocation56_spill] sm:$0xff] }
 0x864   : > { %v2740_v46 = vpop.permute.xlu1 %2739 }
 0x865   : > { %v2772_v17 = vmul.f32 %v2740_v46, %v2692_v4  ;;  %v4309_v46 = vadd.f32 %v9050_v35, %v8135_v5  ;;  %v9061_v35 = vld [vmem:[#allocation66_spill] sm:$0xff] }
 0x867   : > { %v2788_v11 = vadd.f32 %v2772_v17, %v2460_v63  ;;  %v9049_v63 = vld [vmem:[#allocation129_spill] sm:$0xff]  ;;  %v4007_v17 = vmax.f32 %v3981_v48, 0.0  ;;  %v2351_v48 = vadd.f32 %v9060_v30, %v8087_v9 }
 0x868   : > { %v3679_v4 = vmax.f32 %v9049_v63, 0.0 }
 0x869   : > { %v3396_v41 = vpop.permute.xlu1 %3395  ;;  %v3116_v39 = vadd.f32 %v3100_v23, %v2788_v11  ;;  %v4087_v11 = vmul.f32 %v4064_v20, %v4007_v17  ;;  %v2369_v17 = vmax.f32 %v2351_v48, 0.0  ;;  %v9070_v48 = vld [vmem:[#allocation101_spill] sm:$0xff] }
 0x86a   : > { %v3428_v18 = vmul.f32 %v3396_v41, %v3348_v21  ;;  %v4335_v21 = vmax.f32 %v4309_v46, 0.0  ;;  %v9052_v41 = vld [vmem:[#allocation65_spill] sm:$0xff]  ;;  %v2679_v46 = vadd.f32 %v9061_v35, %v8104_v3 }
 0x86c   : > { %v3444_v7 = vadd.f32 %v3428_v18, %v3116_v39  ;;  %v2336_v39 = vadd.f32 %v9052_v41, %v8087_v9  ;;  %v3732_v18 = vpop.permute.xlu0 %3731 }
 0x86e   : > { %v4052_v55 = vpop.permute.xlu1 %4051  ;;  %v3772_v14 = vadd.f32 %v3756_v15, %v3444_v7  ;;  %v2366_v15 = vmax.f32 %v2336_v39, 0.0  ;;  %v9053_v7 = vld [vmem:[#allocation59_spill] sm:$0xff] }
 0x86f   : > { %v4084_v33 = vmul.f32 %v4052_v55, %v4004_v19  ;;  %v2664_v19 = vadd.f32 %v9053_v7, %v8104_v3 }
 0x870   : > { %v2446_v47 = vmul.f32 %v2420_v22, %v2366_v15  ;;  %v4388_v54 = vpop.permute.xlu0 %4387 }
 0x871   : > { %v4100_v16 = vadd.f32 %v4084_v33, %v3772_v14  ;;  %v2694_v14 = vmax.f32 %v2664_v19, 0.0  ;;  %v9054_v33 = vld [vmem:[#allocation99_spill] sm:$0xff]  ;;  %v9064_v19 = vld [vmem:[#allocation149_spill] sm:$0xff] }
 0x872   : > { %v3022_v62 = vmax.f32 %v9054_v33, 0.0  ;;  %v9067_v33 = vld [vmem:[#allocation69_spill] sm:$0xff] }
 0x873   : > { %v4428_v26 = vadd.f32 %v4412_v36, %v4100_v16  ;;  %v2424_v52 = vpop.permute.xlu1 %2423 }
 0x874   : > { %v2447_v6 = vmul.f32 %v2424_v52, %v2367_v29  ;;  %v3102_v36 = vmul.f32 %v3076_v8, %v3022_v62  ;;  %v2104_v20 = vpop.permute.xlu0 %2103  ;;  %v3350_v29 = vmax.f32 %v9055_v25, 0.0  ;;  %v2346_v62 = vadd.f32 %v9067_v33, %v8087_v9 }
 0x875   : > { %4444 = vst [vmem:[%s8163_s19 + $0x50] sm:$0xff] %v4428_v26  ;;  %v9056_v26 = vld [vmem:[#allocation145_spill] sm:$0xff] }
 0x876   : > { %v2463_v50 = vadd.f32 %v2447_v6, %v2119_v58  ;;  %v3976_v52 = vadd.f32 %v9056_v26, %v8129_v42  ;;  %v9057_v6 = vld [vmem:[#allocation130_spill] sm:$0xff] }
 0x878   : > { %v3080_v0 = vpop.permute.xlu1 %3079  ;;  %v2791_v10 = vadd.f32 %v2775_v40, %v2463_v50  ;;  %v3678_v40 = vmax.f32 %v9057_v6, 0.0  ;;  %v2760_v44 = vpop.permute.xlu0 %2759 }
 0x879   : > { %v3103_v45 = vmul.f32 %v3080_v0, %v3023_v51  ;;  %v4304_v51 = vadd.f32 %v9058_v61, %v8135_v5 }
 0x87a   : > { %v3758_v22 = vmul.f32 %v3732_v18, %v3678_v40 }
 0x87b   : > { %v3119_v49 = vadd.f32 %v3103_v45, %v2791_v10  ;;  %v4006_v10 = vmax.f32 %v3976_v52, 0.0  ;;  %v2007_v45 = vadd.f32 %v9059_v38, %v8096_v31  ;;  %v4334_v63 = vmax.f32 %v4304_v51, 0.0 }
 0x87d   : > { %v3736_v43 = vpop.permute.xlu1 %3735  ;;  %v3447_v34 = vadd.f32 %v3431_v24, %v3119_v49  ;;  %v4414_v8 = vmul.f32 %v4388_v54, %v4334_v63  ;;  %v9065_v54 = vld [vmem:[#allocation131_spill] sm:$0xff]  ;;  %v9071_v63 = vld [vmem:[#allocation150_spill] sm:$0xff] }
 0x87e   : > { %v3759_v23 = vmul.f32 %v3736_v43, %v3679_v4 }
 0x880   : > { %v3775_v37 = vadd.f32 %v3759_v23, %v3447_v34  ;;  %v2025_v34 = vmax.f32 %v2007_v45, 0.0  ;;  %v3416_v23 = vpop.permute.xlu0 %3415 }
 0x882   : > { %v4392_v2 = vpop.permute.xlu1 %4391  ;;  %v4103_v27 = vadd.f32 %v4087_v11, %v3775_v37  ;;  %v2121_v12 = vmul.f32 %v2104_v20, %v2025_v34  ;;  %v9073_v34 = vld [vmem:[#allocation152_spill] sm:$0xff] }
 0x883   : > { %v4415_v60 = vmul.f32 %v4392_v2, %v4335_v21  ;;  %v2697_v21 = vmax.f32 %v2679_v46, 0.0  ;;  %v9062_v2 = vld [vmem:[#allocation102_spill] sm:$0xff]  ;;  %v9072_v46 = vld [vmem:[#allocation132_spill] sm:$0xff] }
 0x884   : > { %v4072_v15 = vpop.permute.xlu0 %4071 }
 0x885   : > { %v4431_v13 = vadd.f32 %v4415_v60, %v4103_v27  ;;  %v2777_v41 = vmul.f32 %v2760_v44, %v2697_v21  ;;  %v3025_v27 = vmax.f32 %v9062_v2, 0.0  ;;  %v9074_v21 = vld [vmem:[#allocation151_spill] sm:$0xff] }
 0x887   : > { %4447 = vst [vmem:[%s8163_s19 + $0x68] sm:$0xff] %v4431_v13  ;;  %v2089_v53 = vpop.permute.xlu1 %2088  ;;  %v9063_v13 = vld [vmem:[#allocation100_spill] sm:$0xff] }
 0x888   : > { %v2118_v59 = vmul.f32 %v2089_v53, %v2022_v57  ;;  %v3353_v57 = vmax.f32 %v9063_v13, 0.0  ;;  %v3991_v53 = vadd.f32 %v9064_v19, %v8129_v42  ;;  %v2428_v25 = vpop.permute.xlu0 %2427 }
 0x88a   : > { %v2462_v55 = vadd.f32 %v2446_v47, %v2118_v59  ;;  %v3433_v47 = vmul.f32 %v3416_v23, %v3353_v57  ;;  %v4009_v20 = vmax.f32 %v3991_v53, 0.0 }
 0x88c   : > { %v2748_v1 = vpop.permute.xlu1 %2747 }
 0x88d   : > { %v2774_v28 = vmul.f32 %v2748_v1, %v2694_v14  ;;  %v9066_v14 = vld [vmem:[#allocation57_spill] sm:$0xff] }
 0x88e   : > { %v2002_v1 = vadd.f32 %v9066_v14, %v8096_v31  ;;  %v3084_v31 = vpop.permute.xlu0 %3083 }
 0x88f   : > { %v2790_v16 = vadd.f32 %v2774_v28, %v2462_v55  ;;  %v3681_v55 = vmax.f32 %v9065_v54, 0.0 }
 0x890   : > { %v2024_v52 = vmax.f32 %v2002_v1, 0.0 }
 0x891   : > { %v3404_v32 = vpop.permute.xlu1 %3403  ;;  %v3118_v58 = vadd.f32 %v3102_v36, %v2790_v16 }
 0x892   : > { %v3430_v50 = vmul.f32 %v3404_v32, %v3350_v29  ;;  %v4089_v29 = vmul.f32 %v4072_v15, %v4009_v20  ;;  %v2368_v32 = vmax.f32 %v2346_v62, 0.0 }
 0x894   : > { %v3446_v0 = vadd.f32 %v3430_v50, %v3118_v58  ;;  %v9068_v58 = vld [vmem:[#allocation67_spill] sm:$0xff]  ;;  %v2448_v61 = vmul.f32 %v2428_v25, %v2368_v32 }
 0x895   : > { %v2674_v6 = vadd.f32 %v9068_v58, %v8104_v3 }
 0x896   : > { %v4060_v24 = vpop.permute.xlu1 %4059  ;;  %v3774_v49 = vadd.f32 %v3758_v22, %v3446_v0 }
 0x897   : > { %v4086_v4 = vmul.f32 %v4060_v24, %v4006_v10  ;;  %v2696_v0 = vmax.f32 %v2674_v6, 0.0  ;;  %v9069_v10 = vld [vmem:[#allocation104_spill] sm:$0xff]  ;;  %v3352_v24 = vmax.f32 %v9070_v48, 0.0 }
 0x898   : > { %v3024_v44 = vmax.f32 %v9069_v10, 0.0 }
 0x899   : > { %v4102_v43 = vadd.f32 %v4086_v4, %v3774_v49  ;;  %v3740_v49 = vpop.permute.xlu0 %3739  ;;  %v3986_v4 = vadd.f32 %v9071_v63, %v8129_v42 }
 0x89a   : > { %v3104_v45 = vmul.f32 %v3084_v31, %v3024_v44 }
 0x89b   : > { %v4430_v11 = vadd.f32 %v4414_v8, %v4102_v43  ;;  %v2432_v37 = vpop.permute.xlu1 %2431  ;;  %v3680_v8 = vmax.f32 %v9072_v46, 0.0 }
 0x89c   : > { %v2449_v56 = vmul.f32 %v2432_v37, %v2369_v17  ;;  %v4314_v17 = vadd.f32 %v9073_v34, %v8135_v5  ;;  %v4008_v37 = vmax.f32 %v3986_v4, 0.0 }
 0x89d   : > { %4446 = vst [vmem:[%s8163_s19 + $0x60] sm:$0xff] %v4430_v11  ;;  %v3760_v23 = vmul.f32 %v3740_v49, %v3680_v8 }
 0x89e   : > { %v2465_v39 = vadd.f32 %v2449_v56, %v2121_v12  ;;  %v4319_v12 = vadd.f32 %v9074_v21, %v8135_v5  ;;  %v4396_v56 = vpop.permute.xlu0 %4395  ;;  %v4336_v42 = vmax.f32 %v4314_v17, 0.0 }
 0x8a0   : > { %v3088_v18 = vpop.permute.xlu1 %3087  ;;  %v2793_v60 = vadd.f32 %v2777_v41, %v2465_v39 }
 0x8a1   : > { %v3105_v7 = vmul.f32 %v3088_v18, %v3025_v27  ;;  %v4416_v27 = vmul.f32 %v4396_v56, %v4336_v42 }
 0x8a3   : > { %v3121_v59 = vadd.f32 %v3105_v7, %v2793_v60  ;;  %v4337_v60 = vmax.f32 %v4319_v12, 0.0 }
 0x8a5   : > { %v3744_v28 = vpop.permute.xlu1 %3743  ;;  %v3449_v36 = vadd.f32 %v3433_v47, %v3121_v59 }
 0x8a6   : > { %v3761_v16 = vmul.f32 %v3744_v28, %v3681_v55 }
 0x8a8   : > { %v3777_v26 = vadd.f32 %v3761_v16, %v3449_v36 }
 0x8aa   : > { %v2099_v40 = vpop.permute.xlu1 %2098  ;;  %v4105_v50 = vadd.f32 %v4089_v29, %v3777_v26 }
 0x8ab   : > { %v2120_v51 = vmul.f32 %v2099_v40, %v2024_v52 }
 0x8ad   : > { %v2464_v22 = vadd.f32 %v2448_v61, %v2120_v51 }
 0x8af   : > { %v2756_v9 = vpop.permute.xlu1 %2755 }
 0x8b0   : > { %v2776_v38 = vmul.f32 %v2756_v9, %v2696_v0 }
 0x8b2   : > { %v2792_v30 = vadd.f32 %v2776_v38, %v2464_v22 }
 0x8b4   : > { %v3412_v3 = vpop.permute.xlu1 %3411  ;;  %v3120_v35 = vadd.f32 %v3104_v45, %v2792_v30 }
 0x8b5   : > { %v3432_v43 = vmul.f32 %v3412_v3, %v3352_v24 }
 0x8b7   : > { %v3448_v11 = vadd.f32 %v3432_v43, %v3120_v35 }
 0x8b9   : > { %v4068_v41 = vpop.permute.xlu1 %4067  ;;  %v3776_v39 = vadd.f32 %v3760_v23, %v3448_v11 }
 0x8ba   : > { %v4088_v2 = vmul.f32 %v4068_v41, %v4008_v37 }
 0x8bc   : > { %v4104_v18 = vadd.f32 %v4088_v2, %v3776_v39 }
 0x8be   : > { %v4432_v13 = vadd.f32 %v4416_v27, %v4104_v18  ;;  %v4400_v57 = vpop.permute.xlu1 %4399 }
 0x8bf   : > { %v4417_v15 = vmul.f32 %v4400_v57, %v4337_v60 }
 0x8c0   : > { %4448 = vst [vmem:[%s8163_s19 + $0x70] sm:$0xff] %v4432_v13 }
 0x8c1   : > { %v4433_v7 = vadd.f32 %v4417_v15, %v4105_v50 }
 0x8c3   : > { %4449 = vst [vmem:[%s8163_s19 + $0x78] sm:$0xff] %v4433_v7 }
 0x8c4 PF: > { %s18_s24 = sadd.s32 1, %s5560_s24  }
 0x8c5   : > { %p15_p5 = scmp.ge.s32.totalorder %s18_s24, 4  }
 0x8c7   :  { %17 = sbr.rel (!%p15_p5) target bundleno = 1 (0x1), region = 101 }

</bundles_post_ra>
